<compile_context>
chip_gen: v5e
topology: v5e:2x2
jax: 0.10.0
libtpu: 0.0.40
codegen_flags: <defaults>
</compile_context>

<pallas_src>
import functools
import math

import jax
import jax.numpy as jnp
from jax.experimental import pallas as pl

LN_EPS_TRANSFORMER = 1e-6   # speechbrain TransformerEncoder/Layer LayerNorm eps
LN_EPS_DEFAULT = 1e-5       # predictor / postnet LayerNorm eps
NEG_INF = -1e9
MEL_LEN_BUCKET = 32         # decoder length rounded up to this multiple


# --------------------------------------------------------------------------
# In-kernel helpers (operate on values; all row-wise work is B*T-flattened)
# --------------------------------------------------------------------------
def _layer_norm(y, gamma, beta, eps):
    mu = jnp.mean(y, axis=-1, keepdims=True)
    var = jnp.mean(jnp.square(y - mu), axis=-1, keepdims=True)
    return (y - mu) * jax.lax.rsqrt(var + eps) * gamma + beta


def _conv1d_same_flat(h, taps, bias, relu, batch, seq):
    """'same' 1-D conv over time on a row-flattened (B*T, Cin) value.

    taps: list of K (Cin, Cout) bf16 values; bias: (1, Cout) f32.
    The per-batch halo is built with small zero constants (only the K-1 halo
    rows) and each tap contributes one (B*T, Cin) @ (Cin, Cout) MXU matmul.
    """
    ksize = len(taps)
    cin = h.shape[1]
    if ksize == 1:
        acc = jnp.dot(h.astype(jnp.bfloat16), taps[0],
                      preferred_element_type=jnp.float32)
    else:
        pad_l = (ksize - 1) // 2
        pad_r = ksize - 1 - pad_l
        padded = []
        for b in range(batch):
            parts = []
            if pad_l:
                parts.append(jnp.zeros((pad_l, cin), jnp.float32))
            parts.append(h[b * seq:(b + 1) * seq, :])
            if pad_r:
                parts.append(jnp.zeros((pad_r, cin), jnp.float32))
            padded.append(jnp.concatenate(parts, axis=0))      # (T+K-1, Cin)
        acc = None
        for k in range(ksize):
            seg = jnp.concatenate([p[k:k + seq, :] for p in padded], axis=0)
            term = jnp.dot(seg.astype(jnp.bfloat16), taps[k],
                           preferred_element_type=jnp.float32)
            acc = term if acc is None else acc + term
    acc = acc + bias
    if relu:
        acc = jnp.maximum(acc, 0.0)
    return acc


def _embed_scalar_track_flat(pred, taps, bias, batch, seq):
    """Conv1d(1 -> D, 'same') over the (B*T, 1) scalar prediction track."""
    ksize = len(taps)
    if ksize == 1:
        return pred * taps[0] + bias
    pad_l = (ksize - 1) // 2
    pad_r = ksize - 1 - pad_l
    padded = []
    for b in range(batch):
        parts = []
        if pad_l:
            parts.append(jnp.zeros((pad_l, 1), jnp.float32))
        parts.append(pred[b * seq:(b + 1) * seq, :])
        if pad_r:
            parts.append(jnp.zeros((pad_r, 1), jnp.float32))
        padded.append(jnp.concatenate(parts, axis=0))
    emb = None
    for k in range(ksize):
        seg = jnp.concatenate([p[k:k + seq, :] for p in padded], axis=0)
        term = seg * taps[k]                                   # (B*T,1)*(1,D)
        emb = term if emb is None else emb + term
    return emb + bias


# --------------------------------------------------------------------------
# Fused transformer stack kernel (all layers + final LN [+ output linear])
# --------------------------------------------------------------------------
def _transformer_stack_kernel(x_ref, outmask_ref, tail_ref, abias_ref,
                              wqkv_ref, bqkv_ref, wo_ref, bo_ref,
                              ln1g_ref, ln1b_ref,
                              w1_ref, b1_ref, w2_ref, b2_ref,
                              ln2g_ref, ln2b_ref,
                              fg_ref, fb_ref,
                              *rest, nhead, batch, seq, has_proj):
    if has_proj:
        wout_ref, bout_ref, o_ref = rest
    else:
        (o_ref,) = rest

    num_layers = wqkv_ref.shape[0]
    d_model = x_ref.shape[1]
    dh = d_model // nhead
    scale = 1.0 / math.sqrt(dh)
    k1 = w1_ref.shape[1]
    k2 = w2_ref.shape[1]

    x = x_ref[...]                           # (B*T, D) f32
    tail = tail_ref[...]                     # (B*T, 1): zeros frames past max_len

    for l in range(num_layers):
        # ---- self-attention sub-layer (post-norm) ----
        qkv = jnp.dot(x.astype(jnp.bfloat16), wqkv_ref[l],
                      preferred_element_type=jnp.float32) + bqkv_ref[l]  # (B*T, 3D)
        ctx_rows = []
        for b in range(batch):
            rows = qkv[b * seq:(b + 1) * seq, :]
            heads = []
            for h in range(nhead):
                lo = h * dh
                qh = rows[:, lo:lo + dh].astype(jnp.bfloat16)
                kh = rows[:, d_model + lo:d_model + lo + dh].astype(jnp.bfloat16)
                vh = rows[:, 2 * d_model + lo:2 * d_model + lo + dh].astype(jnp.bfloat16)
                s = jax.lax.dot_general(qh, kh, (((1,), (1,)), ((), ())),
                                        preferred_element_type=jnp.float32)
                # replicated torch-MHA mask quirk is baked into abias
                s = s * scale + abias_ref[b * nhead + h]         # (T, T) + (1, T)
                s = s - jnp.max(s, axis=-1, keepdims=True)
                p = jnp.exp(s)
                p = p * pl.reciprocal(jnp.sum(p, axis=-1, keepdims=True),
                                      approx=True)
                heads.append(jnp.dot(p.astype(jnp.bfloat16), vh,
                                     preferred_element_type=jnp.float32))
            ctx_rows.append(jnp.concatenate(heads, axis=-1))     # (T, D)
        ctx = jnp.concatenate(ctx_rows, axis=0)                  # (B*T, D)
        proj = jnp.dot(ctx.astype(jnp.bfloat16), wo_ref[l],
                       preferred_element_type=jnp.float32) + bo_ref[l]
        y = _layer_norm(x + proj, ln1g_ref[l], ln1b_ref[l], LN_EPS_TRANSFORMER)

        # ---- 1d-cnn FFN sub-layer (post-norm) ----
        taps1 = [w1_ref[l, k] for k in range(k1)]
        taps2 = [w2_ref[l, k] for k in range(k2)]
        h1 = _conv1d_same_flat(y * tail, taps1, b1_ref[l], True, batch, seq)
        h2 = _conv1d_same_flat(h1 * tail, taps2, b2_ref[l], False, batch, seq)
        x = _layer_norm(y + h2, ln2g_ref[l], ln2b_ref[l], LN_EPS_TRANSFORMER)

    out = _layer_norm(x, fg_ref[...], fb_ref[...], LN_EPS_TRANSFORMER)
    if has_proj:
        out = jnp.dot(out.astype(jnp.bfloat16), wout_ref[...],
                      preferred_element_type=jnp.float32) + bout_ref[...]
    o_ref[...] = out * outmask_ref[...]


# --------------------------------------------------------------------------
# Fused variance adaptor kernel:
#   concat-proj + dur/pitch/energy predictors + pitch/energy embed + residuals
# --------------------------------------------------------------------------
def _variance_adaptor_kernel(tf_ref, spk_ref, inten_ref, mask_ref,
                             wtok_ref, wspk_ref, wint_ref,
                             c1w_ref, c1b_ref, ln1g_ref, ln1b_ref,
                             c2w_ref, c2b_ref, ln2g_ref, ln2b_ref,
                             lw_ref, lb_ref,
                             pew_ref, peb_ref, eew_ref, eeb_ref,
                             dur_ref, pitch_ref, energy_ref, feat_ref,
                             *, batch, seq, pitch_rate, energy_rate):
    d_model = tf_ref.shape[1]
    vk = c1w_ref.shape[1]
    m = mask_ref[...]                                            # (B*T, 1)

    # concat([token_feats, speaker, intensity]) @ W (bias=False), with the
    # (2D+5, D) weight split into D / D / 5 row chunks -> three matmuls.
    xw = jnp.dot(tf_ref[...].astype(jnp.bfloat16), wtok_ref[...],
                 preferred_element_type=jnp.float32)             # (B*T, D)
    sw = jnp.dot(spk_ref[...].astype(jnp.bfloat16), wspk_ref[...],
                 preferred_element_type=jnp.float32)             # (B, D)
    iw = jnp.dot(inten_ref[...].astype(jnp.bfloat16), wint_ref[...],
                 preferred_element_type=jnp.float32)             # (B*T, D)
    sw_rows = jnp.concatenate(
        [jnp.broadcast_to(sw[b:b + 1, :], (seq, d_model)) for b in range(batch)],
        axis=0)
    x = (xw + sw_rows + iw) * m

    def predictor(h, i):
        taps1 = [c1w_ref[i, k] for k in range(vk)]
        c = _conv1d_same_flat(h * m, taps1, c1b_ref[i], True, batch, seq)
        c = _layer_norm(c, ln1g_ref[i], ln1b_ref[i], LN_EPS_DEFAULT)
        taps2 = [c2w_ref[i, k] for k in range(vk)]
        c = _conv1d_same_flat(c * m, taps2, c2b_ref[i], True, batch, seq)
        c = _layer_norm(c, ln2g_ref[i], ln2b_ref[i], LN_EPS_DEFAULT)
        # final (D -> 1) projection as a lane reduction
        return jnp.sum((c * m) * lw_ref[i], axis=-1, keepdims=True) + lb_ref[i]

    def embed(pred, ew_ref, eb_ref):
        taps = [ew_ref[k] for k in range(ew_ref.shape[0])]
        return _embed_scalar_track_flat(pred, taps, eb_ref[...], batch, seq)

    dur_ref[...] = predictor(x, 0)

    p_pitch = predictor(x, 1) * pitch_rate
    pitch_ref[...] = p_pitch
    x = x + embed(p_pitch, pew_ref, peb_ref)

    p_energy = predictor(x, 2) * energy_rate
    energy_ref[...] = p_energy
    x = x + embed(p_energy, eew_ref, eeb_ref)

    feat_ref[...] = x


# --------------------------------------------------------------------------
# Fused postnet kernel (conv stack + LNs + tanh + mel residual)
# --------------------------------------------------------------------------
def _postnet_kernel(mel_ref, tail_ref,
                    prew_ref, preb_ref, ln1g_ref, ln1b_ref,
                    interw_ref, interb_ref, ln2g_ref, ln2b_ref,
                    postw_ref, postb_ref, ln3g_ref, ln3b_ref,
                    o_ref, *, batch, seq, n_inter):
    pk = prew_ref.shape[0]
    tail = tail_ref[...]
    mel = mel_ref[...]

    taps = [prew_ref[k] for k in range(pk)]
    x = _conv1d_same_flat(mel, taps, preb_ref[...], False, batch, seq)
    x = jnp.tanh(_layer_norm(x, ln1g_ref[...], ln1b_ref[...], LN_EPS_DEFAULT))
    for i in range(n_inter):
        taps = [interw_ref[i, k] for k in range(pk)]
        x = _conv1d_same_flat(x * tail, taps, interb_ref[i], False, batch, seq)
    x = jnp.tanh(_layer_norm(x, ln2g_ref[...], ln2b_ref[...], LN_EPS_DEFAULT))
    taps = [postw_ref[k] for k in range(pk)]
    x = _conv1d_same_flat(x * tail, taps, postb_ref[...], False, batch, seq)
    x = _layer_norm(x, ln3g_ref[...], ln3b_ref[...], LN_EPS_DEFAULT)
    o_ref[...] = x + mel        # postnet(mel) + mel


# --------------------------------------------------------------------------
# Thin wrappers (single pallas_call each, no grid, whole arrays in VMEM)
# --------------------------------------------------------------------------
def transformer_stack(x, outmask, tail, abias, sp, nhead, proj=None):
    B, T, D = x.shape
    has_proj = proj is not None
    n_out = proj[0].shape[1] if has_proj else D
    inputs = [x.reshape(B * T, D), outmask.reshape(B * T, 1),
              jnp.tile(tail, (B, 1)), abias,
              sp["wqkv"], sp["bqkv"], sp["wo"], sp["bo"],
              sp["ln1_g"], sp["ln1_b"],
              sp["ffn_w1"], sp["ffn_b1"], sp["ffn_w2"], sp["ffn_b2"],
              sp["ln2_g"], sp["ln2_b"],
              sp["final_ln_g"], sp["final_ln_b"]]
    if has_proj:
        inputs += [proj[0], proj[1]]
    out = pl.pallas_call(
        functools.partial(_transformer_stack_kernel, nhead=nhead, batch=B,
                          seq=T, has_proj=has_proj),
        out_shape=jax.ShapeDtypeStruct((B * T, n_out), jnp.float32),
    )(*inputs)
    return out.reshape(B, T, n_out)


def variance_adaptor(tf, spk, intensity, mask, params, pitch_rate, energy_rate):
    B, T, D = tf.shape
    vp = params["var_pred"]
    inputs = [tf.reshape(B * T, D), spk,
              intensity.reshape(B * T, intensity.shape[-1]),
              mask.reshape(B * T, 1),
              params["concat_w_tok"], params["concat_w_spk"], params["concat_w_int"],
              vp["conv1_w"], vp["conv1_b"], vp["ln1_g"], vp["ln1_b"],
              vp["conv2_w"], vp["conv2_b"], vp["ln2_g"], vp["ln2_b"],
              vp["lin_w"], vp["lin_b"],
              params["pitch_embed_w"], params["pitch_embed_b"],
              params["energy_embed_w"], params["energy_embed_b"]]
    dur, pitch, energy, feats = pl.pallas_call(
        functools.partial(_variance_adaptor_kernel, batch=B, seq=T,
                          pitch_rate=float(pitch_rate),
                          energy_rate=float(energy_rate)),
        out_shape=(jax.ShapeDtypeStruct((B * T, 1), jnp.float32),
                   jax.ShapeDtypeStruct((B * T, 1), jnp.float32),
                   jax.ShapeDtypeStruct((B * T, 1), jnp.float32),
                   jax.ShapeDtypeStruct((B * T, D), jnp.float32)),
    )(*inputs)
    return (dur.reshape(B, T), pitch.reshape(B, T, 1),
            energy.reshape(B, T, 1), feats.reshape(B, T, D))


def postnet_forward(mel, tail, p):
    B, T, n_mels = mel.shape
    n_inter = p["inter_w"].shape[0]
    inputs = [mel.reshape(B * T, n_mels), jnp.tile(tail, (B, 1)),
              p["conv_pre_w"], p["conv_pre_b"], p["ln1_g"], p["ln1_b"],
              p["inter_w"], p["inter_b"], p["ln2_g"], p["ln2_b"],
              p["conv_post_w"], p["conv_post_b"], p["ln3_g"], p["ln3_b"]]
    out = pl.pallas_call(
        functools.partial(_postnet_kernel, batch=B, seq=T, n_inter=n_inter),
        out_shape=jax.ShapeDtypeStruct((B * T, n_mels), jnp.float32),
    )(*inputs)
    return out.reshape(B, T, n_mels)


# --------------------------------------------------------------------------
# Model components computed in plain XLA (gathers, PE, masks, length regulation)
# --------------------------------------------------------------------------
def sinusoid_pe(T, D):
    pos = jnp.arange(T, dtype=jnp.float32)[:, None]
    div = jnp.exp(jnp.arange(0, D, 2, dtype=jnp.float32) * (-jnp.log(10000.0) / D))
    pe = jnp.zeros((T, D), jnp.float32)
    pe = pe.at[:, 0::2].set(jnp.sin(pos * div))
    pe = pe.at[:, 1::2].set(jnp.cos(pos * div))
    return pe[None]  # (1, T, D)


def attn_bias(valid, nhead):
    """Additive key bias per (batch, head), merging the key-padding mask with
    the reference's attn_mask construction quirk: the head-major repeated mask
    is read batch-major by torch MHA, so (b, h) also gets the mask of batch
    (b*nhead + h) % B."""
    B, T = valid.shape
    perm = (jnp.arange(B)[:, None] * nhead + jnp.arange(nhead)[None, :]) % B
    combined = valid[:, None, :] * valid[perm]                # (B, nhead, T)
    bias = (1.0 - combined) * NEG_INF
    return bias.reshape(B * nhead, 1, T)


def upsample(feats, durations, pace=1.0, bucket=MEL_LEN_BUCKET):
    """Device-side length regulation (repeat each token by its duration), with
    the output time axis bucketed to a multiple of `bucket`."""
    durs = jnp.maximum(jnp.round(durations.astype(jnp.float32) * pace),
                       0.0).astype(jnp.int32)
    mel_lens = jnp.sum(durs, axis=1)                          # (B,)
    # One scalar host read is unavoidable: it defines the output time dimension.
    max_len = int(jax.device_get(jnp.max(mel_lens)))
    t_pad = max(bucket, ((max_len + bucket - 1) // bucket) * bucket)
    B, T, D = feats.shape
    cum = jnp.cumsum(durs, axis=1)                            # (B, T)
    frame = jnp.arange(t_pad, dtype=jnp.int32)
    idx = jnp.sum(frame[None, :, None] >= cum[:, None, :], axis=-1).astype(jnp.int32)
    idx = jnp.minimum(idx, T - 1)                             # (B, t_pad)
    idx3 = jnp.broadcast_to(idx[..., None], (B, t_pad, D))
    gathered = jnp.take_along_axis(feats, idx3, axis=1)
    valid = (frame[None, :] < mel_lens[:, None]).astype(jnp.float32)
    return gathered * valid[..., None], mel_lens, max_len


# --------------------------------------------------------------------------
# Full forward pass
# --------------------------------------------------------------------------
def fastspeech2_forward(params, cfg, tokens, speakers, durations=None, pitch=None,
                        energy=None, pace=1.0, pitch_rate=1.0, energy_rate=1.0,
                        intensity=None):
    pad_idx = cfg["padding_idx"]
    nhead_e = cfg["enc_num_head"]
    nhead_d = cfg["dec_num_head"]

    valid = (tokens != pad_idx).astype(jnp.float32)           # (B, T) 1 = real token
    srcmask_inv = valid[..., None]                            # (B, T, 1)

    token_feats = params["tok_emb"][tokens]                   # (B, T, D)
    B, T, D = token_feats.shape
    token_feats = (token_feats + sinusoid_pe(T, D)) * srcmask_inv

    enc_abias = attn_bias(valid, nhead_e)
    ones_tail = jnp.ones((T, 1), jnp.float32)
    token_feats = transformer_stack(token_feats, srcmask_inv, ones_tail, enc_abias,
                                    params["encoder"], nhead_e)

    spk = params["spk_emb"][speakers]                         # (B, D)

    # TODO(synk): teacher-forced pitch/energy (average_over_durations) path is
    # not implemented; only the inference (pitch=None / energy=None) path is covered.
    predict_durations, predict_pitch, predict_energy, token_feats = variance_adaptor(
        token_feats, spk, intensity, srcmask_inv, params, pitch_rate, energy_rate)

    if durations is None:
        dur_for_upsample = jnp.maximum(jnp.expm1(predict_durations), 0.0)
    else:
        dur_for_upsample = durations

    spec_feats, mel_lens, max_len = upsample(token_feats, dur_for_upsample, pace=pace)
    Tm = spec_feats.shape[1]                                  # bucketed length
    frame = jnp.arange(Tm)
    mel_valid = (frame[None, :] < mel_lens[:, None]).astype(jnp.float32)
    melmask_inv = mel_valid[..., None]
    tail = (frame < max_len).astype(jnp.float32)[:, None]     # (Tm, 1) bucket-pad mask

    spec_feats = (spec_feats + sinusoid_pe(Tm, D)) * melmask_inv
    dec_abias = attn_bias(mel_valid, nhead_d)
    mel_post_pad = transformer_stack(spec_feats, melmask_inv, tail, dec_abias,
                                     params["decoder"], nhead_d,
                                     proj=(params["out_lin_w"], params["out_lin_b"]))

    postnet_output_pad = postnet_forward(mel_post_pad, tail, params["postnet"])

    # strip the bucket padding so returned shapes match the reference (max(mel_lens))
    mel_post = mel_post_pad[:, :max_len]
    postnet_output = postnet_output_pad[:, :max_len]

    return (mel_post, postnet_output, predict_durations, predict_pitch, None,
            predict_energy, None, mel_lens)


# --------------------------------------------------------------------------
# Deterministic parameter initialization (matmul weights bf16, LN/bias f32)
# --------------------------------------------------------------------------
class KeyGen:
    def __init__(self, key):
        self.key = key

    def __call__(self):
        self.key, sub = jax.random.split(self.key)
        return sub


def init_params(key, cfg):
    kg = KeyGen(key)
    D = cfg["d_model"]
    F = cfg["ffn_dim"]
    k1, k2 = cfg["ffn_cnn_kernel_size_list"]
    n_mels = cfg["n_mels"]
    P = cfg["postnet_embedding_dim"]
    pk = cfg["postnet_kernel_size"]
    vk = cfg["var_pred_kernel_size"]

    def nrm(shape, scale=0.02, dtype=jnp.bfloat16):
        return (scale * jax.random.normal(kg(), shape, dtype=jnp.float32)).astype(dtype)

    def zeros(shape):
        return jnp.zeros(shape, jnp.float32)

    def ones(shape):
        return jnp.ones(shape, jnp.float32)

    def stack(L):
        return dict(
            wqkv=nrm((L, D, 3 * D)),           # [Wq | Wk | Wv] fused along columns
            bqkv=zeros((L, 1, 3 * D)),
            wo=nrm((L, D, D)), bo=zeros((L, 1, D)),
            ln1_g=ones((L, 1, D)), ln1_b=zeros((L, 1, D)),
            ffn_w1=nrm((L, k1, D, F)), ffn_b1=zeros((L, 1, F)),
            ffn_w2=nrm((L, k2, F, D)), ffn_b2=zeros((L, 1, D)),
            ln2_g=ones((L, 1, D)), ln2_b=zeros((L, 1, D)),
            final_ln_g=ones((1, D)), final_ln_b=zeros((1, D)),
        )

    # duration / pitch / energy predictors stacked along the leading axis
    var_pred = dict(
        conv1_w=nrm((3, vk, D, D)), conv1_b=zeros((3, 1, D)),
        ln1_g=ones((3, 1, D)), ln1_b=zeros((3, 1, D)),
        conv2_w=nrm((3, vk, D, D)), conv2_b=zeros((3, 1, D)),
        ln2_g=ones((3, 1, D)), ln2_b=zeros((3, 1, D)),
        lin_w=nrm((3, 1, D), dtype=jnp.float32),    # (D -> 1) proj as lane reduction
        lin_b=zeros((3, 1, 1)),
    )

    tok_emb = nrm((cfg["n_char"], D), dtype=jnp.float32).at[cfg["padding_idx"]].set(0.0)

    n_inter = cfg["postnet_n_convolutions"] - 2
    assert n_inter >= 1  # TODO(synk): configs without intermediate postnet convs unsupported
    postnet_p = dict(
        conv_pre_w=nrm((pk, n_mels, P)), conv_pre_b=zeros((1, P)),
        ln1_g=ones((1, P)), ln1_b=zeros((1, P)),
        inter_w=nrm((n_inter, pk, P, P)), inter_b=zeros((n_inter, 1, P)),
        ln2_g=ones((1, P)), ln2_b=zeros((1, P)),
        conv_post_w=nrm((pk, P, n_mels)), conv_post_b=zeros((1, n_mels)),
        ln3_g=ones((1, n_mels)), ln3_b=zeros((1, n_mels)),
    )

    return dict(
        tok_emb=tok_emb,
        spk_emb=nrm((cfg["n_speakers"], D), dtype=jnp.float32),
        concat_w_tok=nrm((D, D)),              # concat_proj weight split D / D / 5
        concat_w_spk=nrm((D, D)),
        concat_w_int=nrm((5, D)),
        encoder=stack(cfg["enc_num_layers"]),
        decoder=stack(cfg["dec_num_layers"]),
        var_pred=var_pred,
        pitch_embed_w=nrm((cfg["pitch_pred_kernel_size"], 1, D), dtype=jnp.float32),
        pitch_embed_b=zeros((1, D)),
        energy_embed_w=nrm((cfg["energy_pred_kernel_size"], 1, D), dtype=jnp.float32),
        energy_embed_b=zeros((1, D)),
        out_lin_w=nrm((D, n_mels)),
        out_lin_b=zeros((1, n_mels)),
        postnet=postnet_p,
    )


# --------------------------------------------------------------------------
# Main
# --------------------------------------------------------------------------
if __name__ == "__main__":
    cfg = dict(
        enc_num_layers=2, enc_num_head=2, dec_num_layers=2, dec_num_head=2,
        d_model=32, ffn_dim=64, ffn_cnn_kernel_size_list=(9, 1),
        n_char=40, n_mels=16,
        postnet_embedding_dim=32, postnet_kernel_size=5, postnet_n_convolutions=3,
        padding_idx=0, var_pred_kernel_size=3,
        pitch_pred_kernel_size=3, energy_pred_kernel_size=3,
        n_speakers=4,
    )

    key = jax.random.PRNGKey(0)
    pkey, ikey = jax.random.split(key)
    params = init_params(pkey, cfg)

    tokens = jnp.array([[13, 12, 31, 14, 19, 8, 3, 7],
                        [31, 16, 30, 31, 2, 9, 0, 0]], dtype=jnp.int32)
    speakers = jnp.array([1, 3], dtype=jnp.int32)
    durations = jnp.array([[2, 4, 1, 5, 3, 1, 2, 1],
                           [1, 2, 4, 3, 2, 1, 0, 0]], dtype=jnp.int32)
    intensity = jax.random.normal(ikey, (2, 8, 5), dtype=jnp.float32)

    outputs = fastspeech2_forward(params, cfg, tokens, speakers,
                                  durations=durations, pitch=None, energy=None,
                                  pace=1.0, pitch_rate=1.0, energy_rate=1.0,
                                  intensity=intensity)

    (mel_post, postnet_output, predict_durations, predict_pitch, avg_pitch,
     predict_energy, avg_energy, mel_lens) = outputs

    for o in (mel_post, postnet_output, predict_durations, predict_pitch,
              predict_energy, mel_lens):
        jax.block_until_ready(o)

    assert mel_post.shape == postnet_output.shape
    assert predict_durations.shape == (2, 8)
    assert predict_pitch.shape == (2, 8, 1)
    assert predict_energy.shape == (2, 8, 1)
    assert mel_post.shape[0] == 2 and mel_post.shape[2] == cfg["n_mels"]
    assert int(mel_lens.max()) == mel_post.shape[1]
    assert avg_pitch is None and avg_energy is None
    for o in (mel_post, postnet_output, predict_durations, predict_pitch, predict_energy):
        assert bool(jnp.all(jnp.isfinite(o)))

    print("KERNEL_OK")
</pallas_src>

<mosaic_0001>
module attributes {stable_mosaic.version = 11 : i64} {
  func.func @_transformer_stack_kernel(%arg0: memref<16x32xf32, #tpu.memory_space<vmem>>, %arg1: memref<16x1xf32, #tpu.memory_space<vmem>>, %arg2: memref<16x1xf32, #tpu.memory_space<vmem>>, %arg3: memref<4x1x8xf32, #tpu.memory_space<vmem>>, %arg4: memref<2x32x96xbf16, #tpu.memory_space<vmem>>, %arg5: memref<2x1x96xf32, #tpu.memory_space<vmem>>, %arg6: memref<2x32x32xbf16, #tpu.memory_space<vmem>>, %arg7: memref<2x1x32xf32, #tpu.memory_space<vmem>>, %arg8: memref<2x1x32xf32, #tpu.memory_space<vmem>>, %arg9: memref<2x1x32xf32, #tpu.memory_space<vmem>>, %arg10: memref<2x9x32x64xbf16, #tpu.memory_space<vmem>>, %arg11: memref<2x1x64xf32, #tpu.memory_space<vmem>>, %arg12: memref<2x1x64x32xbf16, #tpu.memory_space<vmem>>, %arg13: memref<2x1x32xf32, #tpu.memory_space<vmem>>, %arg14: memref<2x1x32xf32, #tpu.memory_space<vmem>>, %arg15: memref<2x1x32xf32, #tpu.memory_space<vmem>>, %arg16: memref<1x32xf32, #tpu.memory_space<vmem>>, %arg17: memref<1x32xf32, #tpu.memory_space<vmem>>, %arg18: memref<16x32xf32, #tpu.memory_space<vmem>>) attributes {dimension_semantics = [], scalar_prefetch = 0 : i64, scratch_operands = 0 : i64, tpu.core_type = #tpu.core_type<tc>} {
    %c0 = arith.constant 0 : index
    %c0_0 = arith.constant 0 : index
    %0 = vector.load %arg0[%c0, %c0_0] : memref<16x32xf32, #tpu.memory_space<vmem>>, vector<16x32xf32>
    %c0_1 = arith.constant 0 : index
    %c0_2 = arith.constant 0 : index
    %1 = vector.load %arg2[%c0_1, %c0_2] : memref<16x1xf32, #tpu.memory_space<vmem>>, vector<16x1xf32>
    %2 = arith.truncf %0 : vector<16x32xf32> to vector<16x32xbf16>
    %c0_3 = arith.constant 0 : index
    %c0_4 = arith.constant 0 : index
    %c0_5 = arith.constant 0 : index
    %3 = vector.load %arg4[%c0_3, %c0_4, %c0_5] : memref<2x32x96xbf16, #tpu.memory_space<vmem>>, vector<1x32x96xbf16>
    %4 = vector.shape_cast %3 : vector<1x32x96xbf16> to vector<32x96xbf16>
    %cst = arith.constant dense<0.000000e+00> : vector<16x96xf32>
    %5 = tpu.matmul %2, %4, %cst {dimension_numbers = #tpu.dot_dimension_numbers<[1], [0], [0], [1], [0, 0, 1, 1], [], []>} : vector<16x32xbf16>, vector<32x96xbf16>, vector<16x96xf32> -> vector<16x96xf32>
    %c0_6 = arith.constant 0 : index
    %c0_7 = arith.constant 0 : index
    %c0_8 = arith.constant 0 : index
    %6 = vector.load %arg5[%c0_6, %c0_7, %c0_8] : memref<2x1x96xf32, #tpu.memory_space<vmem>>, vector<1x1x96xf32>
    %7 = vector.shape_cast %6 : vector<1x1x96xf32> to vector<1x96xf32>
    %8 = vector.broadcast %7 : vector<1x96xf32> to vector<16x96xf32>
    %9 = arith.addf %5, %8 : vector<16x96xf32>
    %10 = vector.extract_strided_slice %9 {offsets = [0, 0], sizes = [8, 96], strides = [1, 1]} : vector<16x96xf32> to vector<8x96xf32>
    %11 = vector.extract_strided_slice %10 {offsets = [0, 0], sizes = [8, 16], strides = [1, 1]} : vector<8x96xf32> to vector<8x16xf32>
    %12 = arith.truncf %11 : vector<8x16xf32> to vector<8x16xbf16>
    %13 = vector.extract_strided_slice %10 {offsets = [0, 32], sizes = [8, 16], strides = [1, 1]} : vector<8x96xf32> to vector<8x16xf32>
    %14 = arith.truncf %13 : vector<8x16xf32> to vector<8x16xbf16>
    %15 = vector.extract_strided_slice %10 {offsets = [0, 64], sizes = [8, 16], strides = [1, 1]} : vector<8x96xf32> to vector<8x16xf32>
    %16 = arith.truncf %15 : vector<8x16xf32> to vector<8x16xbf16>
    %cst_9 = arith.constant dense<0.000000e+00> : vector<8x8xf32>
    %17 = tpu.matmul %12, %14, %cst_9 {dimension_numbers = #tpu.dot_dimension_numbers<[1], [1], [0], [0], [0, 0, 1, 0], [], []>} : vector<8x16xbf16>, vector<8x16xbf16>, vector<8x8xf32> -> vector<8x8xf32>
    %cst_10 = arith.constant 2.500000e-01 : f32
    %18 = vector.broadcast %cst_10 : f32 to vector<8x8xf32>
    %19 = arith.mulf %17, %18 : vector<8x8xf32>
    %c0_11 = arith.constant 0 : index
    %c0_12 = arith.constant 0 : index
    %c0_13 = arith.constant 0 : index
    %20 = vector.load %arg3[%c0_11, %c0_12, %c0_13] : memref<4x1x8xf32, #tpu.memory_space<vmem>>, vector<1x1x8xf32>
    %21 = vector.shape_cast %20 : vector<1x1x8xf32> to vector<1x8xf32>
    %22 = vector.broadcast %21 : vector<1x8xf32> to vector<8x8xf32>
    %23 = arith.addf %19, %22 : vector<8x8xf32>
    %cst_14 = arith.constant dense<0xFF800000> : vector<8xf32>
    %24 = vector.multi_reduction <maximumf>, %23, %cst_14 [1] : vector<8x8xf32> to vector<8xf32>
    %25 = vector.shape_cast %24 : vector<8xf32> to vector<8x1xf32>
    %26 = vector.broadcast %25 : vector<8x1xf32> to vector<8x8xf32>
    %27 = arith.subf %23, %26 : vector<8x8xf32>
    %28 = math.exp %27 : vector<8x8xf32>
    %cst_15 = arith.constant dense<0.000000e+00> : vector<8xf32>
    %29 = vector.multi_reduction <add>, %28, %cst_15 [1] : vector<8x8xf32> to vector<8xf32>
    %30 = vector.shape_cast %29 : vector<8xf32> to vector<8x1xf32>
    %31 = tpu.reciprocal %30 {approx = true} : vector<8x1xf32> -> vector<8x1xf32>
    %32 = vector.broadcast %31 : vector<8x1xf32> to vector<8x8xf32>
    %33 = arith.mulf %28, %32 : vector<8x8xf32>
    %34 = arith.truncf %33 : vector<8x8xf32> to vector<8x8xbf16>
    %cst_16 = arith.constant dense<0.000000e+00> : vector<8x16xf32>
    %35 = tpu.matmul %34, %16, %cst_16 {dimension_numbers = #tpu.dot_dimension_numbers<[1], [0], [0], [1], [0, 0, 1, 1], [], []>} : vector<8x8xbf16>, vector<8x16xbf16>, vector<8x16xf32> -> vector<8x16xf32>
    %36 = vector.extract_strided_slice %10 {offsets = [0, 16], sizes = [8, 16], strides = [1, 1]} : vector<8x96xf32> to vector<8x16xf32>
    %37 = arith.truncf %36 : vector<8x16xf32> to vector<8x16xbf16>
    %38 = vector.extract_strided_slice %10 {offsets = [0, 48], sizes = [8, 16], strides = [1, 1]} : vector<8x96xf32> to vector<8x16xf32>
    %39 = arith.truncf %38 : vector<8x16xf32> to vector<8x16xbf16>
    %40 = vector.extract_strided_slice %10 {offsets = [0, 80], sizes = [8, 16], strides = [1, 1]} : vector<8x96xf32> to vector<8x16xf32>
    %41 = arith.truncf %40 : vector<8x16xf32> to vector<8x16xbf16>
    %cst_17 = arith.constant dense<0.000000e+00> : vector<8x8xf32>
    %42 = tpu.matmul %37, %39, %cst_17 {dimension_numbers = #tpu.dot_dimension_numbers<[1], [1], [0], [0], [0, 0, 1, 0], [], []>} : vector<8x16xbf16>, vector<8x16xbf16>, vector<8x8xf32> -> vector<8x8xf32>
    %cst_18 = arith.constant 2.500000e-01 : f32
    %43 = vector.broadcast %cst_18 : f32 to vector<8x8xf32>
    %44 = arith.mulf %42, %43 : vector<8x8xf32>
    %c1 = arith.constant 1 : index
    %c0_19 = arith.constant 0 : index
    %c0_20 = arith.constant 0 : index
    %45 = vector.load %arg3[%c1, %c0_19, %c0_20] : memref<4x1x8xf32, #tpu.memory_space<vmem>>, vector<1x1x8xf32>
    %46 = vector.shape_cast %45 : vector<1x1x8xf32> to vector<1x8xf32>
    %47 = vector.broadcast %46 : vector<1x8xf32> to vector<8x8xf32>
    %48 = arith.addf %44, %47 : vector<8x8xf32>
    %cst_21 = arith.constant dense<0xFF800000> : vector<8xf32>
    %49 = vector.multi_reduction <maximumf>, %48, %cst_21 [1] : vector<8x8xf32> to vector<8xf32>
    %50 = vector.shape_cast %49 : vector<8xf32> to vector<8x1xf32>
    %51 = vector.broadcast %50 : vector<8x1xf32> to vector<8x8xf32>
    %52 = arith.subf %48, %51 : vector<8x8xf32>
    %53 = math.exp %52 : vector<8x8xf32>
    %cst_22 = arith.constant dense<0.000000e+00> : vector<8xf32>
    %54 = vector.multi_reduction <add>, %53, %cst_22 [1] : vector<8x8xf32> to vector<8xf32>
    %55 = vector.shape_cast %54 : vector<8xf32> to vector<8x1xf32>
    %56 = tpu.reciprocal %55 {approx = true} : vector<8x1xf32> -> vector<8x1xf32>
    %57 = vector.broadcast %56 : vector<8x1xf32> to vector<8x8xf32>
    %58 = arith.mulf %53, %57 : vector<8x8xf32>
    %59 = arith.truncf %58 : vector<8x8xf32> to vector<8x8xbf16>
    %cst_23 = arith.constant dense<0.000000e+00> : vector<8x16xf32>
    %60 = tpu.matmul %59, %41, %cst_23 {dimension_numbers = #tpu.dot_dimension_numbers<[1], [0], [0], [1], [0, 0, 1, 1], [], []>} : vector<8x8xbf16>, vector<8x16xbf16>, vector<8x16xf32> -> vector<8x16xf32>
    %61 = tpu.concatenate %35, %60 in 1 : vector<8x16xf32>, vector<8x16xf32> -> vector<8x32xf32>
    %62 = vector.extract_strided_slice %9 {offsets = [8, 0], sizes = [8, 96], strides = [1, 1]} : vector<16x96xf32> to vector<8x96xf32>
    %63 = vector.extract_strided_slice %62 {offsets = [0, 0], sizes = [8, 16], strides = [1, 1]} : vector<8x96xf32> to vector<8x16xf32>
    %64 = arith.truncf %63 : vector<8x16xf32> to vector<8x16xbf16>
    %65 = vector.extract_strided_slice %62 {offsets = [0, 32], sizes = [8, 16], strides = [1, 1]} : vector<8x96xf32> to vector<8x16xf32>
    %66 = arith.truncf %65 : vector<8x16xf32> to vector<8x16xbf16>
    %67 = vector.extract_strided_slice %62 {offsets = [0, 64], sizes = [8, 16], strides = [1, 1]} : vector<8x96xf32> to vector<8x16xf32>
    %68 = arith.truncf %67 : vector<8x16xf32> to vector<8x16xbf16>
    %cst_24 = arith.constant dense<0.000000e+00> : vector<8x8xf32>
    %69 = tpu.matmul %64, %66, %cst_24 {dimension_numbers = #tpu.dot_dimension_numbers<[1], [1], [0], [0], [0, 0, 1, 0], [], []>} : vector<8x16xbf16>, vector<8x16xbf16>, vector<8x8xf32> -> vector<8x8xf32>
    %cst_25 = arith.constant 2.500000e-01 : f32
    %70 = vector.broadcast %cst_25 : f32 to vector<8x8xf32>
    %71 = arith.mulf %69, %70 : vector<8x8xf32>
    %c2 = arith.constant 2 : index
    %c0_26 = arith.constant 0 : index
    %c0_27 = arith.constant 0 : index
    %72 = vector.load %arg3[%c2, %c0_26, %c0_27] : memref<4x1x8xf32, #tpu.memory_space<vmem>>, vector<1x1x8xf32>
    %73 = vector.shape_cast %72 : vector<1x1x8xf32> to vector<1x8xf32>
    %74 = vector.broadcast %73 : vector<1x8xf32> to vector<8x8xf32>
    %75 = arith.addf %71, %74 : vector<8x8xf32>
    %cst_28 = arith.constant dense<0xFF800000> : vector<8xf32>
    %76 = vector.multi_reduction <maximumf>, %75, %cst_28 [1] : vector<8x8xf32> to vector<8xf32>
    %77 = vector.shape_cast %76 : vector<8xf32> to vector<8x1xf32>
    %78 = vector.broadcast %77 : vector<8x1xf32> to vector<8x8xf32>
    %79 = arith.subf %75, %78 : vector<8x8xf32>
    %80 = math.exp %79 : vector<8x8xf32>
    %cst_29 = arith.constant dense<0.000000e+00> : vector<8xf32>
    %81 = vector.multi_reduction <add>, %80, %cst_29 [1] : vector<8x8xf32> to vector<8xf32>
    %82 = vector.shape_cast %81 : vector<8xf32> to vector<8x1xf32>
    %83 = tpu.reciprocal %82 {approx = true} : vector<8x1xf32> -> vector<8x1xf32>
    %84 = vector.broadcast %83 : vector<8x1xf32> to vector<8x8xf32>
    %85 = arith.mulf %80, %84 : vector<8x8xf32>
    %86 = arith.truncf %85 : vector<8x8xf32> to vector<8x8xbf16>
    %cst_30 = arith.constant dense<0.000000e+00> : vector<8x16xf32>
    %87 = tpu.matmul %86, %68, %cst_30 {dimension_numbers = #tpu.dot_dimension_numbers<[1], [0], [0], [1], [0, 0, 1, 1], [], []>} : vector<8x8xbf16>, vector<8x16xbf16>, vector<8x16xf32> -> vector<8x16xf32>
    %88 = vector.extract_strided_slice %62 {offsets = [0, 16], sizes = [8, 16], strides = [1, 1]} : vector<8x96xf32> to vector<8x16xf32>
    %89 = arith.truncf %88 : vector<8x16xf32> to vector<8x16xbf16>
    %90 = vector.extract_strided_slice %62 {offsets = [0, 48], sizes = [8, 16], strides = [1, 1]} : vector<8x96xf32> to vector<8x16xf32>
    %91 = arith.truncf %90 : vector<8x16xf32> to vector<8x16xbf16>
    %92 = vector.extract_strided_slice %62 {offsets = [0, 80], sizes = [8, 16], strides = [1, 1]} : vector<8x96xf32> to vector<8x16xf32>
    %93 = arith.truncf %92 : vector<8x16xf32> to vector<8x16xbf16>
    %cst_31 = arith.constant dense<0.000000e+00> : vector<8x8xf32>
    %94 = tpu.matmul %89, %91, %cst_31 {dimension_numbers = #tpu.dot_dimension_numbers<[1], [1], [0], [0], [0, 0, 1, 0], [], []>} : vector<8x16xbf16>, vector<8x16xbf16>, vector<8x8xf32> -> vector<8x8xf32>
    %cst_32 = arith.constant 2.500000e-01 : f32
    %95 = vector.broadcast %cst_32 : f32 to vector<8x8xf32>
    %96 = arith.mulf %94, %95 : vector<8x8xf32>
    %c3 = arith.constant 3 : index
    %c0_33 = arith.constant 0 : index
    %c0_34 = arith.constant 0 : index
    %97 = vector.load %arg3[%c3, %c0_33, %c0_34] : memref<4x1x8xf32, #tpu.memory_space<vmem>>, vector<1x1x8xf32>
    %98 = vector.shape_cast %97 : vector<1x1x8xf32> to vector<1x8xf32>
    %99 = vector.broadcast %98 : vector<1x8xf32> to vector<8x8xf32>
    %100 = arith.addf %96, %99 : vector<8x8xf32>
    %cst_35 = arith.constant dense<0xFF800000> : vector<8xf32>
    %101 = vector.multi_reduction <maximumf>, %100, %cst_35 [1] : vector<8x8xf32> to vector<8xf32>
    %102 = vector.shape_cast %101 : vector<8xf32> to vector<8x1xf32>
    %103 = vector.broadcast %102 : vector<8x1xf32> to vector<8x8xf32>
    %104 = arith.subf %100, %103 : vector<8x8xf32>
    %105 = math.exp %104 : vector<8x8xf32>
    %cst_36 = arith.constant dense<0.000000e+00> : vector<8xf32>
    %106 = vector.multi_reduction <add>, %105, %cst_36 [1] : vector<8x8xf32> to vector<8xf32>
    %107 = vector.shape_cast %106 : vector<8xf32> to vector<8x1xf32>
    %108 = tpu.reciprocal %107 {approx = true} : vector<8x1xf32> -> vector<8x1xf32>
    %109 = vector.broadcast %108 : vector<8x1xf32> to vector<8x8xf32>
    %110 = arith.mulf %105, %109 : vector<8x8xf32>
    %111 = arith.truncf %110 : vector<8x8xf32> to vector<8x8xbf16>
    %cst_37 = arith.constant dense<0.000000e+00> : vector<8x16xf32>
    %112 = tpu.matmul %111, %93, %cst_37 {dimension_numbers = #tpu.dot_dimension_numbers<[1], [0], [0], [1], [0, 0, 1, 1], [], []>} : vector<8x8xbf16>, vector<8x16xbf16>, vector<8x16xf32> -> vector<8x16xf32>
    %113 = tpu.concatenate %87, %112 in 1 : vector<8x16xf32>, vector<8x16xf32> -> vector<8x32xf32>
    %114 = tpu.concatenate %61, %113 in 0 : vector<8x32xf32>, vector<8x32xf32> -> vector<16x32xf32>
    %115 = arith.truncf %114 : vector<16x32xf32> to vector<16x32xbf16>
    %c0_38 = arith.constant 0 : index
    %c0_39 = arith.constant 0 : index
    %c0_40 = arith.constant 0 : index
    %116 = vector.load %arg6[%c0_38, %c0_39, %c0_40] : memref<2x32x32xbf16, #tpu.memory_space<vmem>>, vector<1x32x32xbf16>
    %117 = vector.shape_cast %116 : vector<1x32x32xbf16> to vector<32x32xbf16>
    %cst_41 = arith.constant dense<0.000000e+00> : vector<16x32xf32>
    %118 = tpu.matmul %115, %117, %cst_41 {dimension_numbers = #tpu.dot_dimension_numbers<[1], [0], [0], [1], [0, 0, 1, 1], [], []>} : vector<16x32xbf16>, vector<32x32xbf16>, vector<16x32xf32> -> vector<16x32xf32>
    %c0_42 = arith.constant 0 : index
    %c0_43 = arith.constant 0 : index
    %c0_44 = arith.constant 0 : index
    %119 = vector.load %arg7[%c0_42, %c0_43, %c0_44] : memref<2x1x32xf32, #tpu.memory_space<vmem>>, vector<1x1x32xf32>
    %120 = vector.shape_cast %119 : vector<1x1x32xf32> to vector<1x32xf32>
    %121 = vector.broadcast %120 : vector<1x32xf32> to vector<16x32xf32>
    %122 = arith.addf %118, %121 : vector<16x32xf32>
    %123 = arith.addf %0, %122 : vector<16x32xf32>
    %c0_45 = arith.constant 0 : index
    %c0_46 = arith.constant 0 : index
    %c0_47 = arith.constant 0 : index
    %124 = vector.load %arg8[%c0_45, %c0_46, %c0_47] : memref<2x1x32xf32, #tpu.memory_space<vmem>>, vector<1x1x32xf32>
    %125 = vector.shape_cast %124 : vector<1x1x32xf32> to vector<1x32xf32>
    %c0_48 = arith.constant 0 : index
    %c0_49 = arith.constant 0 : index
    %c0_50 = arith.constant 0 : index
    %126 = vector.load %arg9[%c0_48, %c0_49, %c0_50] : memref<2x1x32xf32, #tpu.memory_space<vmem>>, vector<1x1x32xf32>
    %127 = vector.shape_cast %126 : vector<1x1x32xf32> to vector<1x32xf32>
    %cst_51 = arith.constant dense<0.000000e+00> : vector<16xf32>
    %128 = vector.multi_reduction <add>, %123, %cst_51 [1] : vector<16x32xf32> to vector<16xf32>
    %129 = vector.shape_cast %128 : vector<16xf32> to vector<16x1xf32>
    %cst_52 = arith.constant 3.200000e+01 : f32
    %130 = vector.broadcast %cst_52 : f32 to vector<16x1xf32>
    %131 = arith.divf %129, %130 : vector<16x1xf32>
    %132 = vector.broadcast %131 : vector<16x1xf32> to vector<16x32xf32>
    %133 = arith.subf %123, %132 : vector<16x32xf32>
    %134 = arith.mulf %133, %133 : vector<16x32xf32>
    %cst_53 = arith.constant dense<0.000000e+00> : vector<16xf32>
    %135 = vector.multi_reduction <add>, %134, %cst_53 [1] : vector<16x32xf32> to vector<16xf32>
    %136 = vector.shape_cast %135 : vector<16xf32> to vector<16x1xf32>
    %cst_54 = arith.constant 3.200000e+01 : f32
    %137 = vector.broadcast %cst_54 : f32 to vector<16x1xf32>
    %138 = arith.divf %136, %137 : vector<16x1xf32>
    %139 = vector.broadcast %131 : vector<16x1xf32> to vector<16x32xf32>
    %140 = arith.subf %123, %139 : vector<16x32xf32>
    %cst_55 = arith.constant 9.99999997E-7 : f32
    %141 = vector.broadcast %cst_55 : f32 to vector<16x1xf32>
    %142 = arith.addf %138, %141 : vector<16x1xf32>
    %143 = math.rsqrt %142 : vector<16x1xf32>
    %144 = vector.broadcast %143 : vector<16x1xf32> to vector<16x32xf32>
    %145 = arith.mulf %140, %144 : vector<16x32xf32>
    %146 = vector.broadcast %125 : vector<1x32xf32> to vector<16x32xf32>
    %147 = arith.mulf %145, %146 : vector<16x32xf32>
    %148 = vector.broadcast %127 : vector<1x32xf32> to vector<16x32xf32>
    %149 = arith.addf %147, %148 : vector<16x32xf32>
    %c0_56 = arith.constant 0 : index
    %c0_57 = arith.constant 0 : index
    %c0_58 = arith.constant 0 : index
    %c0_59 = arith.constant 0 : index
    %150 = vector.load %arg10[%c0_56, %c0_57, %c0_58, %c0_59] : memref<2x9x32x64xbf16, #tpu.memory_space<vmem>>, vector<1x1x32x64xbf16>
    %151 = vector.shape_cast %150 : vector<1x1x32x64xbf16> to vector<32x64xbf16>
    %c0_60 = arith.constant 0 : index
    %c1_61 = arith.constant 1 : index
    %c0_62 = arith.constant 0 : index
    %c0_63 = arith.constant 0 : index
    %152 = vector.load %arg10[%c0_60, %c1_61, %c0_62, %c0_63] : memref<2x9x32x64xbf16, #tpu.memory_space<vmem>>, vector<1x1x32x64xbf16>
    %153 = vector.shape_cast %152 : vector<1x1x32x64xbf16> to vector<32x64xbf16>
    %c0_64 = arith.constant 0 : index
    %c2_65 = arith.constant 2 : index
    %c0_66 = arith.constant 0 : index
    %c0_67 = arith.constant 0 : index
    %154 = vector.load %arg10[%c0_64, %c2_65, %c0_66, %c0_67] : memref<2x9x32x64xbf16, #tpu.memory_space<vmem>>, vector<1x1x32x64xbf16>
    %155 = vector.shape_cast %154 : vector<1x1x32x64xbf16> to vector<32x64xbf16>
    %c0_68 = arith.constant 0 : index
    %c3_69 = arith.constant 3 : index
    %c0_70 = arith.constant 0 : index
    %c0_71 = arith.constant 0 : index
    %156 = vector.load %arg10[%c0_68, %c3_69, %c0_70, %c0_71] : memref<2x9x32x64xbf16, #tpu.memory_space<vmem>>, vector<1x1x32x64xbf16>
    %157 = vector.shape_cast %156 : vector<1x1x32x64xbf16> to vector<32x64xbf16>
    %c0_72 = arith.constant 0 : index
    %c4 = arith.constant 4 : index
    %c0_73 = arith.constant 0 : index
    %c0_74 = arith.constant 0 : index
    %158 = vector.load %arg10[%c0_72, %c4, %c0_73, %c0_74] : memref<2x9x32x64xbf16, #tpu.memory_space<vmem>>, vector<1x1x32x64xbf16>
    %159 = vector.shape_cast %158 : vector<1x1x32x64xbf16> to vector<32x64xbf16>
    %c0_75 = arith.constant 0 : index
    %c5 = arith.constant 5 : index
    %c0_76 = arith.constant 0 : index
    %c0_77 = arith.constant 0 : index
    %160 = vector.load %arg10[%c0_75, %c5, %c0_76, %c0_77] : memref<2x9x32x64xbf16, #tpu.memory_space<vmem>>, vector<1x1x32x64xbf16>
    %161 = vector.shape_cast %160 : vector<1x1x32x64xbf16> to vector<32x64xbf16>
    %c0_78 = arith.constant 0 : index
    %c6 = arith.constant 6 : index
    %c0_79 = arith.constant 0 : index
    %c0_80 = arith.constant 0 : index
    %162 = vector.load %arg10[%c0_78, %c6, %c0_79, %c0_80] : memref<2x9x32x64xbf16, #tpu.memory_space<vmem>>, vector<1x1x32x64xbf16>
    %163 = vector.shape_cast %162 : vector<1x1x32x64xbf16> to vector<32x64xbf16>
    %c0_81 = arith.constant 0 : index
    %c7 = arith.constant 7 : index
    %c0_82 = arith.constant 0 : index
    %c0_83 = arith.constant 0 : index
    %164 = vector.load %arg10[%c0_81, %c7, %c0_82, %c0_83] : memref<2x9x32x64xbf16, #tpu.memory_space<vmem>>, vector<1x1x32x64xbf16>
    %165 = vector.shape_cast %164 : vector<1x1x32x64xbf16> to vector<32x64xbf16>
    %c0_84 = arith.constant 0 : index
    %c8 = arith.constant 8 : index
    %c0_85 = arith.constant 0 : index
    %c0_86 = arith.constant 0 : index
    %166 = vector.load %arg10[%c0_84, %c8, %c0_85, %c0_86] : memref<2x9x32x64xbf16, #tpu.memory_space<vmem>>, vector<1x1x32x64xbf16>
    %167 = vector.shape_cast %166 : vector<1x1x32x64xbf16> to vector<32x64xbf16>
    %c0_87 = arith.constant 0 : index
    %c0_88 = arith.constant 0 : index
    %c0_89 = arith.constant 0 : index
    %c0_90 = arith.constant 0 : index
    %168 = vector.load %arg12[%c0_87, %c0_88, %c0_89, %c0_90] : memref<2x1x64x32xbf16, #tpu.memory_space<vmem>>, vector<1x1x64x32xbf16>
    %169 = vector.shape_cast %168 : vector<1x1x64x32xbf16> to vector<64x32xbf16>
    %170 = vector.broadcast %1 : vector<16x1xf32> to vector<16x32xf32>
    %171 = arith.mulf %149, %170 : vector<16x32xf32>
    %c0_91 = arith.constant 0 : index
    %c0_92 = arith.constant 0 : index
    %c0_93 = arith.constant 0 : index
    %172 = vector.load %arg11[%c0_91, %c0_92, %c0_93] : memref<2x1x64xf32, #tpu.memory_space<vmem>>, vector<1x1x64xf32>
    %173 = vector.shape_cast %172 : vector<1x1x64xf32> to vector<1x64xf32>
    %cst_94 = arith.constant 0.000000e+00 : f32
    %174 = vector.broadcast %cst_94 : f32 to vector<4x32xf32>
    %175 = vector.extract_strided_slice %171 {offsets = [0, 0], sizes = [8, 32], strides = [1, 1]} : vector<16x32xf32> to vector<8x32xf32>
    %cst_95 = arith.constant 0.000000e+00 : f32
    %176 = vector.broadcast %cst_95 : f32 to vector<4x32xf32>
    %177 = tpu.concatenate %174, %175, %176 in 0 : vector<4x32xf32>, vector<8x32xf32>, vector<4x32xf32> -> vector<16x32xf32>
    %cst_96 = arith.constant 0.000000e+00 : f32
    %178 = vector.broadcast %cst_96 : f32 to vector<4x32xf32>
    %179 = vector.extract_strided_slice %171 {offsets = [8, 0], sizes = [8, 32], strides = [1, 1]} : vector<16x32xf32> to vector<8x32xf32>
    %cst_97 = arith.constant 0.000000e+00 : f32
    %180 = vector.broadcast %cst_97 : f32 to vector<4x32xf32>
    %181 = tpu.concatenate %178, %179, %180 in 0 : vector<4x32xf32>, vector<8x32xf32>, vector<4x32xf32> -> vector<16x32xf32>
    %182 = vector.extract_strided_slice %177 {offsets = [0, 0], sizes = [8, 32], strides = [1, 1]} : vector<16x32xf32> to vector<8x32xf32>
    %183 = vector.extract_strided_slice %181 {offsets = [0, 0], sizes = [8, 32], strides = [1, 1]} : vector<16x32xf32> to vector<8x32xf32>
    %184 = tpu.concatenate %182, %183 in 0 : vector<8x32xf32>, vector<8x32xf32> -> vector<16x32xf32>
    %185 = arith.truncf %184 : vector<16x32xf32> to vector<16x32xbf16>
    %cst_98 = arith.constant dense<0.000000e+00> : vector<16x64xf32>
    %186 = tpu.matmul %185, %151, %cst_98 {dimension_numbers = #tpu.dot_dimension_numbers<[1], [0], [0], [1], [0, 0, 1, 1], [], []>} : vector<16x32xbf16>, vector<32x64xbf16>, vector<16x64xf32> -> vector<16x64xf32>
    %187 = vector.extract_strided_slice %177 {offsets = [1, 0], sizes = [8, 32], strides = [1, 1]} : vector<16x32xf32> to vector<8x32xf32>
    %188 = vector.extract_strided_slice %181 {offsets = [1, 0], sizes = [8, 32], strides = [1, 1]} : vector<16x32xf32> to vector<8x32xf32>
    %189 = tpu.concatenate %187, %188 in 0 : vector<8x32xf32>, vector<8x32xf32> -> vector<16x32xf32>
    %190 = arith.truncf %189 : vector<16x32xf32> to vector<16x32xbf16>
    %cst_99 = arith.constant dense<0.000000e+00> : vector<16x64xf32>
    %191 = tpu.matmul %190, %153, %cst_99 {dimension_numbers = #tpu.dot_dimension_numbers<[1], [0], [0], [1], [0, 0, 1, 1], [], []>} : vector<16x32xbf16>, vector<32x64xbf16>, vector<16x64xf32> -> vector<16x64xf32>
    %192 = arith.addf %186, %191 : vector<16x64xf32>
    %193 = vector.extract_strided_slice %177 {offsets = [2, 0], sizes = [8, 32], strides = [1, 1]} : vector<16x32xf32> to vector<8x32xf32>
    %194 = vector.extract_strided_slice %181 {offsets = [2, 0], sizes = [8, 32], strides = [1, 1]} : vector<16x32xf32> to vector<8x32xf32>
    %195 = tpu.concatenate %193, %194 in 0 : vector<8x32xf32>, vector<8x32xf32> -> vector<16x32xf32>
    %196 = arith.truncf %195 : vector<16x32xf32> to vector<16x32xbf16>
    %cst_100 = arith.constant dense<0.000000e+00> : vector<16x64xf32>
    %197 = tpu.matmul %196, %155, %cst_100 {dimension_numbers = #tpu.dot_dimension_numbers<[1], [0], [0], [1], [0, 0, 1, 1], [], []>} : vector<16x32xbf16>, vector<32x64xbf16>, vector<16x64xf32> -> vector<16x64xf32>
    %198 = arith.addf %192, %197 : vector<16x64xf32>
    %199 = vector.extract_strided_slice %177 {offsets = [3, 0], sizes = [8, 32], strides = [1, 1]} : vector<16x32xf32> to vector<8x32xf32>
    %200 = vector.extract_strided_slice %181 {offsets = [3, 0], sizes = [8, 32], strides = [1, 1]} : vector<16x32xf32> to vector<8x32xf32>
    %201 = tpu.concatenate %199, %200 in 0 : vector<8x32xf32>, vector<8x32xf32> -> vector<16x32xf32>
    %202 = arith.truncf %201 : vector<16x32xf32> to vector<16x32xbf16>
    %cst_101 = arith.constant dense<0.000000e+00> : vector<16x64xf32>
    %203 = tpu.matmul %202, %157, %cst_101 {dimension_numbers = #tpu.dot_dimension_numbers<[1], [0], [0], [1], [0, 0, 1, 1], [], []>} : vector<16x32xbf16>, vector<32x64xbf16>, vector<16x64xf32> -> vector<16x64xf32>
    %204 = arith.addf %198, %203 : vector<16x64xf32>
    %205 = vector.extract_strided_slice %177 {offsets = [4, 0], sizes = [8, 32], strides = [1, 1]} : vector<16x32xf32> to vector<8x32xf32>
    %206 = vector.extract_strided_slice %181 {offsets = [4, 0], sizes = [8, 32], strides = [1, 1]} : vector<16x32xf32> to vector<8x32xf32>
    %207 = tpu.concatenate %205, %206 in 0 : vector<8x32xf32>, vector<8x32xf32> -> vector<16x32xf32>
    %208 = arith.truncf %207 : vector<16x32xf32> to vector<16x32xbf16>
    %cst_102 = arith.constant dense<0.000000e+00> : vector<16x64xf32>
    %209 = tpu.matmul %208, %159, %cst_102 {dimension_numbers = #tpu.dot_dimension_numbers<[1], [0], [0], [1], [0, 0, 1, 1], [], []>} : vector<16x32xbf16>, vector<32x64xbf16>, vector<16x64xf32> -> vector<16x64xf32>
    %210 = arith.addf %204, %209 : vector<16x64xf32>
    %211 = vector.extract_strided_slice %177 {offsets = [5, 0], sizes = [8, 32], strides = [1, 1]} : vector<16x32xf32> to vector<8x32xf32>
    %212 = vector.extract_strided_slice %181 {offsets = [5, 0], sizes = [8, 32], strides = [1, 1]} : vector<16x32xf32> to vector<8x32xf32>
    %213 = tpu.concatenate %211, %212 in 0 : vector<8x32xf32>, vector<8x32xf32> -> vector<16x32xf32>
    %214 = arith.truncf %213 : vector<16x32xf32> to vector<16x32xbf16>
    %cst_103 = arith.constant dense<0.000000e+00> : vector<16x64xf32>
    %215 = tpu.matmul %214, %161, %cst_103 {dimension_numbers = #tpu.dot_dimension_numbers<[1], [0], [0], [1], [0, 0, 1, 1], [], []>} : vector<16x32xbf16>, vector<32x64xbf16>, vector<16x64xf32> -> vector<16x64xf32>
    %216 = arith.addf %210, %215 : vector<16x64xf32>
    %217 = vector.extract_strided_slice %177 {offsets = [6, 0], sizes = [8, 32], strides = [1, 1]} : vector<16x32xf32> to vector<8x32xf32>
    %218 = vector.extract_strided_slice %181 {offsets = [6, 0], sizes = [8, 32], strides = [1, 1]} : vector<16x32xf32> to vector<8x32xf32>
    %219 = tpu.concatenate %217, %218 in 0 : vector<8x32xf32>, vector<8x32xf32> -> vector<16x32xf32>
    %220 = arith.truncf %219 : vector<16x32xf32> to vector<16x32xbf16>
    %cst_104 = arith.constant dense<0.000000e+00> : vector<16x64xf32>
    %221 = tpu.matmul %220, %163, %cst_104 {dimension_numbers = #tpu.dot_dimension_numbers<[1], [0], [0], [1], [0, 0, 1, 1], [], []>} : vector<16x32xbf16>, vector<32x64xbf16>, vector<16x64xf32> -> vector<16x64xf32>
    %222 = arith.addf %216, %221 : vector<16x64xf32>
    %223 = vector.extract_strided_slice %177 {offsets = [7, 0], sizes = [8, 32], strides = [1, 1]} : vector<16x32xf32> to vector<8x32xf32>
    %224 = vector.extract_strided_slice %181 {offsets = [7, 0], sizes = [8, 32], strides = [1, 1]} : vector<16x32xf32> to vector<8x32xf32>
    %225 = tpu.concatenate %223, %224 in 0 : vector<8x32xf32>, vector<8x32xf32> -> vector<16x32xf32>
    %226 = arith.truncf %225 : vector<16x32xf32> to vector<16x32xbf16>
    %cst_105 = arith.constant dense<0.000000e+00> : vector<16x64xf32>
    %227 = tpu.matmul %226, %165, %cst_105 {dimension_numbers = #tpu.dot_dimension_numbers<[1], [0], [0], [1], [0, 0, 1, 1], [], []>} : vector<16x32xbf16>, vector<32x64xbf16>, vector<16x64xf32> -> vector<16x64xf32>
    %228 = arith.addf %222, %227 : vector<16x64xf32>
    %229 = vector.extract_strided_slice %177 {offsets = [8, 0], sizes = [8, 32], strides = [1, 1]} : vector<16x32xf32> to vector<8x32xf32>
    %230 = vector.extract_strided_slice %181 {offsets = [8, 0], sizes = [8, 32], strides = [1, 1]} : vector<16x32xf32> to vector<8x32xf32>
    %231 = tpu.concatenate %229, %230 in 0 : vector<8x32xf32>, vector<8x32xf32> -> vector<16x32xf32>
    %232 = arith.truncf %231 : vector<16x32xf32> to vector<16x32xbf16>
    %cst_106 = arith.constant dense<0.000000e+00> : vector<16x64xf32>
    %233 = tpu.matmul %232, %167, %cst_106 {dimension_numbers = #tpu.dot_dimension_numbers<[1], [0], [0], [1], [0, 0, 1, 1], [], []>} : vector<16x32xbf16>, vector<32x64xbf16>, vector<16x64xf32> -> vector<16x64xf32>
    %234 = arith.addf %228, %233 : vector<16x64xf32>
    %235 = vector.broadcast %173 : vector<1x64xf32> to vector<16x64xf32>
    %236 = arith.addf %234, %235 : vector<16x64xf32>
    %cst_107 = arith.constant 0.000000e+00 : f32
    %237 = vector.broadcast %cst_107 : f32 to vector<16x64xf32>
    %238 = arith.maximumf %236, %237 : vector<16x64xf32>
    %239 = vector.broadcast %1 : vector<16x1xf32> to vector<16x64xf32>
    %240 = arith.mulf %238, %239 : vector<16x64xf32>
    %c0_108 = arith.constant 0 : index
    %c0_109 = arith.constant 0 : index
    %c0_110 = arith.constant 0 : index
    %241 = vector.load %arg13[%c0_108, %c0_109, %c0_110] : memref<2x1x32xf32, #tpu.memory_space<vmem>>, vector<1x1x32xf32>
    %242 = vector.shape_cast %241 : vector<1x1x32xf32> to vector<1x32xf32>
    %243 = arith.truncf %240 : vector<16x64xf32> to vector<16x64xbf16>
    %cst_111 = arith.constant dense<0.000000e+00> : vector<16x32xf32>
    %244 = tpu.matmul %243, %169, %cst_111 {dimension_numbers = #tpu.dot_dimension_numbers<[1], [0], [0], [1], [0, 0, 1, 1], [], []>} : vector<16x64xbf16>, vector<64x32xbf16>, vector<16x32xf32> -> vector<16x32xf32>
    %245 = vector.broadcast %242 : vector<1x32xf32> to vector<16x32xf32>
    %246 = arith.addf %244, %245 : vector<16x32xf32>
    %247 = arith.addf %149, %246 : vector<16x32xf32>
    %c0_112 = arith.constant 0 : index
    %c0_113 = arith.constant 0 : index
    %c0_114 = arith.constant 0 : index
    %248 = vector.load %arg14[%c0_112, %c0_113, %c0_114] : memref<2x1x32xf32, #tpu.memory_space<vmem>>, vector<1x1x32xf32>
    %249 = vector.shape_cast %248 : vector<1x1x32xf32> to vector<1x32xf32>
    %c0_115 = arith.constant 0 : index
    %c0_116 = arith.constant 0 : index
    %c0_117 = arith.constant 0 : index
    %250 = vector.load %arg15[%c0_115, %c0_116, %c0_117] : memref<2x1x32xf32, #tpu.memory_space<vmem>>, vector<1x1x32xf32>
    %251 = vector.shape_cast %250 : vector<1x1x32xf32> to vector<1x32xf32>
    %cst_118 = arith.constant dense<0.000000e+00> : vector<16xf32>
    %252 = vector.multi_reduction <add>, %247, %cst_118 [1] : vector<16x32xf32> to vector<16xf32>
    %253 = vector.shape_cast %252 : vector<16xf32> to vector<16x1xf32>
    %cst_119 = arith.constant 3.200000e+01 : f32
    %254 = vector.broadcast %cst_119 : f32 to vector<16x1xf32>
    %255 = arith.divf %253, %254 : vector<16x1xf32>
    %256 = vector.broadcast %255 : vector<16x1xf32> to vector<16x32xf32>
    %257 = arith.subf %247, %256 : vector<16x32xf32>
    %258 = arith.mulf %257, %257 : vector<16x32xf32>
    %cst_120 = arith.constant dense<0.000000e+00> : vector<16xf32>
    %259 = vector.multi_reduction <add>, %258, %cst_120 [1] : vector<16x32xf32> to vector<16xf32>
    %260 = vector.shape_cast %259 : vector<16xf32> to vector<16x1xf32>
    %cst_121 = arith.constant 3.200000e+01 : f32
    %261 = vector.broadcast %cst_121 : f32 to vector<16x1xf32>
    %262 = arith.divf %260, %261 : vector<16x1xf32>
    %263 = vector.broadcast %255 : vector<16x1xf32> to vector<16x32xf32>
    %264 = arith.subf %247, %263 : vector<16x32xf32>
    %cst_122 = arith.constant 9.99999997E-7 : f32
    %265 = vector.broadcast %cst_122 : f32 to vector<16x1xf32>
    %266 = arith.addf %262, %265 : vector<16x1xf32>
    %267 = math.rsqrt %266 : vector<16x1xf32>
    %268 = vector.broadcast %267 : vector<16x1xf32> to vector<16x32xf32>
    %269 = arith.mulf %264, %268 : vector<16x32xf32>
    %270 = vector.broadcast %249 : vector<1x32xf32> to vector<16x32xf32>
    %271 = arith.mulf %269, %270 : vector<16x32xf32>
    %272 = vector.broadcast %251 : vector<1x32xf32> to vector<16x32xf32>
    %273 = arith.addf %271, %272 : vector<16x32xf32>
    %274 = arith.truncf %273 : vector<16x32xf32> to vector<16x32xbf16>
    %c1_123 = arith.constant 1 : index
    %c0_124 = arith.constant 0 : index
    %c0_125 = arith.constant 0 : index
    %275 = vector.load %arg4[%c1_123, %c0_124, %c0_125] : memref<2x32x96xbf16, #tpu.memory_space<vmem>>, vector<1x32x96xbf16>
    %276 = vector.shape_cast %275 : vector<1x32x96xbf16> to vector<32x96xbf16>
    %cst_126 = arith.constant dense<0.000000e+00> : vector<16x96xf32>
    %277 = tpu.matmul %274, %276, %cst_126 {dimension_numbers = #tpu.dot_dimension_numbers<[1], [0], [0], [1], [0, 0, 1, 1], [], []>} : vector<16x32xbf16>, vector<32x96xbf16>, vector<16x96xf32> -> vector<16x96xf32>
    %c1_127 = arith.constant 1 : index
    %c0_128 = arith.constant 0 : index
    %c0_129 = arith.constant 0 : index
    %278 = vector.load %arg5[%c1_127, %c0_128, %c0_129] : memref<2x1x96xf32, #tpu.memory_space<vmem>>, vector<1x1x96xf32>
    %279 = vector.shape_cast %278 : vector<1x1x96xf32> to vector<1x96xf32>
    %280 = vector.broadcast %279 : vector<1x96xf32> to vector<16x96xf32>
    %281 = arith.addf %277, %280 : vector<16x96xf32>
    %282 = vector.extract_strided_slice %281 {offsets = [0, 0], sizes = [8, 96], strides = [1, 1]} : vector<16x96xf32> to vector<8x96xf32>
    %283 = vector.extract_strided_slice %282 {offsets = [0, 0], sizes = [8, 16], strides = [1, 1]} : vector<8x96xf32> to vector<8x16xf32>
    %284 = arith.truncf %283 : vector<8x16xf32> to vector<8x16xbf16>
    %285 = vector.extract_strided_slice %282 {offsets = [0, 32], sizes = [8, 16], strides = [1, 1]} : vector<8x96xf32> to vector<8x16xf32>
    %286 = arith.truncf %285 : vector<8x16xf32> to vector<8x16xbf16>
    %287 = vector.extract_strided_slice %282 {offsets = [0, 64], sizes = [8, 16], strides = [1, 1]} : vector<8x96xf32> to vector<8x16xf32>
    %288 = arith.truncf %287 : vector<8x16xf32> to vector<8x16xbf16>
    %cst_130 = arith.constant dense<0.000000e+00> : vector<8x8xf32>
    %289 = tpu.matmul %284, %286, %cst_130 {dimension_numbers = #tpu.dot_dimension_numbers<[1], [1], [0], [0], [0, 0, 1, 0], [], []>} : vector<8x16xbf16>, vector<8x16xbf16>, vector<8x8xf32> -> vector<8x8xf32>
    %cst_131 = arith.constant 2.500000e-01 : f32
    %290 = vector.broadcast %cst_131 : f32 to vector<8x8xf32>
    %291 = arith.mulf %289, %290 : vector<8x8xf32>
    %c0_132 = arith.constant 0 : index
    %c0_133 = arith.constant 0 : index
    %c0_134 = arith.constant 0 : index
    %292 = vector.load %arg3[%c0_132, %c0_133, %c0_134] : memref<4x1x8xf32, #tpu.memory_space<vmem>>, vector<1x1x8xf32>
    %293 = vector.shape_cast %292 : vector<1x1x8xf32> to vector<1x8xf32>
    %294 = vector.broadcast %293 : vector<1x8xf32> to vector<8x8xf32>
    %295 = arith.addf %291, %294 : vector<8x8xf32>
    %cst_135 = arith.constant dense<0xFF800000> : vector<8xf32>
    %296 = vector.multi_reduction <maximumf>, %295, %cst_135 [1] : vector<8x8xf32> to vector<8xf32>
    %297 = vector.shape_cast %296 : vector<8xf32> to vector<8x1xf32>
    %298 = vector.broadcast %297 : vector<8x1xf32> to vector<8x8xf32>
    %299 = arith.subf %295, %298 : vector<8x8xf32>
    %300 = math.exp %299 : vector<8x8xf32>
    %cst_136 = arith.constant dense<0.000000e+00> : vector<8xf32>
    %301 = vector.multi_reduction <add>, %300, %cst_136 [1] : vector<8x8xf32> to vector<8xf32>
    %302 = vector.shape_cast %301 : vector<8xf32> to vector<8x1xf32>
    %303 = tpu.reciprocal %302 {approx = true} : vector<8x1xf32> -> vector<8x1xf32>
    %304 = vector.broadcast %303 : vector<8x1xf32> to vector<8x8xf32>
    %305 = arith.mulf %300, %304 : vector<8x8xf32>
    %306 = arith.truncf %305 : vector<8x8xf32> to vector<8x8xbf16>
    %cst_137 = arith.constant dense<0.000000e+00> : vector<8x16xf32>
    %307 = tpu.matmul %306, %288, %cst_137 {dimension_numbers = #tpu.dot_dimension_numbers<[1], [0], [0], [1], [0, 0, 1, 1], [], []>} : vector<8x8xbf16>, vector<8x16xbf16>, vector<8x16xf32> -> vector<8x16xf32>
    %308 = vector.extract_strided_slice %282 {offsets = [0, 16], sizes = [8, 16], strides = [1, 1]} : vector<8x96xf32> to vector<8x16xf32>
    %309 = arith.truncf %308 : vector<8x16xf32> to vector<8x16xbf16>
    %310 = vector.extract_strided_slice %282 {offsets = [0, 48], sizes = [8, 16], strides = [1, 1]} : vector<8x96xf32> to vector<8x16xf32>
    %311 = arith.truncf %310 : vector<8x16xf32> to vector<8x16xbf16>
    %312 = vector.extract_strided_slice %282 {offsets = [0, 80], sizes = [8, 16], strides = [1, 1]} : vector<8x96xf32> to vector<8x16xf32>
    %313 = arith.truncf %312 : vector<8x16xf32> to vector<8x16xbf16>
    %cst_138 = arith.constant dense<0.000000e+00> : vector<8x8xf32>
    %314 = tpu.matmul %309, %311, %cst_138 {dimension_numbers = #tpu.dot_dimension_numbers<[1], [1], [0], [0], [0, 0, 1, 0], [], []>} : vector<8x16xbf16>, vector<8x16xbf16>, vector<8x8xf32> -> vector<8x8xf32>
    %cst_139 = arith.constant 2.500000e-01 : f32
    %315 = vector.broadcast %cst_139 : f32 to vector<8x8xf32>
    %316 = arith.mulf %314, %315 : vector<8x8xf32>
    %c1_140 = arith.constant 1 : index
    %c0_141 = arith.constant 0 : index
    %c0_142 = arith.constant 0 : index
    %317 = vector.load %arg3[%c1_140, %c0_141, %c0_142] : memref<4x1x8xf32, #tpu.memory_space<vmem>>, vector<1x1x8xf32>
    %318 = vector.shape_cast %317 : vector<1x1x8xf32> to vector<1x8xf32>
    %319 = vector.broadcast %318 : vector<1x8xf32> to vector<8x8xf32>
    %320 = arith.addf %316, %319 : vector<8x8xf32>
    %cst_143 = arith.constant dense<0xFF800000> : vector<8xf32>
    %321 = vector.multi_reduction <maximumf>, %320, %cst_143 [1] : vector<8x8xf32> to vector<8xf32>
    %322 = vector.shape_cast %321 : vector<8xf32> to vector<8x1xf32>
    %323 = vector.broadcast %322 : vector<8x1xf32> to vector<8x8xf32>
    %324 = arith.subf %320, %323 : vector<8x8xf32>
    %325 = math.exp %324 : vector<8x8xf32>
    %cst_144 = arith.constant dense<0.000000e+00> : vector<8xf32>
    %326 = vector.multi_reduction <add>, %325, %cst_144 [1] : vector<8x8xf32> to vector<8xf32>
    %327 = vector.shape_cast %326 : vector<8xf32> to vector<8x1xf32>
    %328 = tpu.reciprocal %327 {approx = true} : vector<8x1xf32> -> vector<8x1xf32>
    %329 = vector.broadcast %328 : vector<8x1xf32> to vector<8x8xf32>
    %330 = arith.mulf %325, %329 : vector<8x8xf32>
    %331 = arith.truncf %330 : vector<8x8xf32> to vector<8x8xbf16>
    %cst_145 = arith.constant dense<0.000000e+00> : vector<8x16xf32>
    %332 = tpu.matmul %331, %313, %cst_145 {dimension_numbers = #tpu.dot_dimension_numbers<[1], [0], [0], [1], [0, 0, 1, 1], [], []>} : vector<8x8xbf16>, vector<8x16xbf16>, vector<8x16xf32> -> vector<8x16xf32>
    %333 = tpu.concatenate %307, %332 in 1 : vector<8x16xf32>, vector<8x16xf32> -> vector<8x32xf32>
    %334 = vector.extract_strided_slice %281 {offsets = [8, 0], sizes = [8, 96], strides = [1, 1]} : vector<16x96xf32> to vector<8x96xf32>
    %335 = vector.extract_strided_slice %334 {offsets = [0, 0], sizes = [8, 16], strides = [1, 1]} : vector<8x96xf32> to vector<8x16xf32>
    %336 = arith.truncf %335 : vector<8x16xf32> to vector<8x16xbf16>
    %337 = vector.extract_strided_slice %334 {offsets = [0, 32], sizes = [8, 16], strides = [1, 1]} : vector<8x96xf32> to vector<8x16xf32>
    %338 = arith.truncf %337 : vector<8x16xf32> to vector<8x16xbf16>
    %339 = vector.extract_strided_slice %334 {offsets = [0, 64], sizes = [8, 16], strides = [1, 1]} : vector<8x96xf32> to vector<8x16xf32>
    %340 = arith.truncf %339 : vector<8x16xf32> to vector<8x16xbf16>
    %cst_146 = arith.constant dense<0.000000e+00> : vector<8x8xf32>
    %341 = tpu.matmul %336, %338, %cst_146 {dimension_numbers = #tpu.dot_dimension_numbers<[1], [1], [0], [0], [0, 0, 1, 0], [], []>} : vector<8x16xbf16>, vector<8x16xbf16>, vector<8x8xf32> -> vector<8x8xf32>
    %cst_147 = arith.constant 2.500000e-01 : f32
    %342 = vector.broadcast %cst_147 : f32 to vector<8x8xf32>
    %343 = arith.mulf %341, %342 : vector<8x8xf32>
    %c2_148 = arith.constant 2 : index
    %c0_149 = arith.constant 0 : index
    %c0_150 = arith.constant 0 : index
    %344 = vector.load %arg3[%c2_148, %c0_149, %c0_150] : memref<4x1x8xf32, #tpu.memory_space<vmem>>, vector<1x1x8xf32>
    %345 = vector.shape_cast %344 : vector<1x1x8xf32> to vector<1x8xf32>
    %346 = vector.broadcast %345 : vector<1x8xf32> to vector<8x8xf32>
    %347 = arith.addf %343, %346 : vector<8x8xf32>
    %cst_151 = arith.constant dense<0xFF800000> : vector<8xf32>
    %348 = vector.multi_reduction <maximumf>, %347, %cst_151 [1] : vector<8x8xf32> to vector<8xf32>
    %349 = vector.shape_cast %348 : vector<8xf32> to vector<8x1xf32>
    %350 = vector.broadcast %349 : vector<8x1xf32> to vector<8x8xf32>
    %351 = arith.subf %347, %350 : vector<8x8xf32>
    %352 = math.exp %351 : vector<8x8xf32>
    %cst_152 = arith.constant dense<0.000000e+00> : vector<8xf32>
    %353 = vector.multi_reduction <add>, %352, %cst_152 [1] : vector<8x8xf32> to vector<8xf32>
    %354 = vector.shape_cast %353 : vector<8xf32> to vector<8x1xf32>
    %355 = tpu.reciprocal %354 {approx = true} : vector<8x1xf32> -> vector<8x1xf32>
    %356 = vector.broadcast %355 : vector<8x1xf32> to vector<8x8xf32>
    %357 = arith.mulf %352, %356 : vector<8x8xf32>
    %358 = arith.truncf %357 : vector<8x8xf32> to vector<8x8xbf16>
    %cst_153 = arith.constant dense<0.000000e+00> : vector<8x16xf32>
    %359 = tpu.matmul %358, %340, %cst_153 {dimension_numbers = #tpu.dot_dimension_numbers<[1], [0], [0], [1], [0, 0, 1, 1], [], []>} : vector<8x8xbf16>, vector<8x16xbf16>, vector<8x16xf32> -> vector<8x16xf32>
    %360 = vector.extract_strided_slice %334 {offsets = [0, 16], sizes = [8, 16], strides = [1, 1]} : vector<8x96xf32> to vector<8x16xf32>
    %361 = arith.truncf %360 : vector<8x16xf32> to vector<8x16xbf16>
    %362 = vector.extract_strided_slice %334 {offsets = [0, 48], sizes = [8, 16], strides = [1, 1]} : vector<8x96xf32> to vector<8x16xf32>
    %363 = arith.truncf %362 : vector<8x16xf32> to vector<8x16xbf16>
    %364 = vector.extract_strided_slice %334 {offsets = [0, 80], sizes = [8, 16], strides = [1, 1]} : vector<8x96xf32> to vector<8x16xf32>
    %365 = arith.truncf %364 : vector<8x16xf32> to vector<8x16xbf16>
    %cst_154 = arith.constant dense<0.000000e+00> : vector<8x8xf32>
    %366 = tpu.matmul %361, %363, %cst_154 {dimension_numbers = #tpu.dot_dimension_numbers<[1], [1], [0], [0], [0, 0, 1, 0], [], []>} : vector<8x16xbf16>, vector<8x16xbf16>, vector<8x8xf32> -> vector<8x8xf32>
    %cst_155 = arith.constant 2.500000e-01 : f32
    %367 = vector.broadcast %cst_155 : f32 to vector<8x8xf32>
    %368 = arith.mulf %366, %367 : vector<8x8xf32>
    %c3_156 = arith.constant 3 : index
    %c0_157 = arith.constant 0 : index
    %c0_158 = arith.constant 0 : index
    %369 = vector.load %arg3[%c3_156, %c0_157, %c0_158] : memref<4x1x8xf32, #tpu.memory_space<vmem>>, vector<1x1x8xf32>
    %370 = vector.shape_cast %369 : vector<1x1x8xf32> to vector<1x8xf32>
    %371 = vector.broadcast %370 : vector<1x8xf32> to vector<8x8xf32>
    %372 = arith.addf %368, %371 : vector<8x8xf32>
    %cst_159 = arith.constant dense<0xFF800000> : vector<8xf32>
    %373 = vector.multi_reduction <maximumf>, %372, %cst_159 [1] : vector<8x8xf32> to vector<8xf32>
    %374 = vector.shape_cast %373 : vector<8xf32> to vector<8x1xf32>
    %375 = vector.broadcast %374 : vector<8x1xf32> to vector<8x8xf32>
    %376 = arith.subf %372, %375 : vector<8x8xf32>
    %377 = math.exp %376 : vector<8x8xf32>
    %cst_160 = arith.constant dense<0.000000e+00> : vector<8xf32>
    %378 = vector.multi_reduction <add>, %377, %cst_160 [1] : vector<8x8xf32> to vector<8xf32>
    %379 = vector.shape_cast %378 : vector<8xf32> to vector<8x1xf32>
    %380 = tpu.reciprocal %379 {approx = true} : vector<8x1xf32> -> vector<8x1xf32>
    %381 = vector.broadcast %380 : vector<8x1xf32> to vector<8x8xf32>
    %382 = arith.mulf %377, %381 : vector<8x8xf32>
    %383 = arith.truncf %382 : vector<8x8xf32> to vector<8x8xbf16>
    %cst_161 = arith.constant dense<0.000000e+00> : vector<8x16xf32>
    %384 = tpu.matmul %383, %365, %cst_161 {dimension_numbers = #tpu.dot_dimension_numbers<[1], [0], [0], [1], [0, 0, 1, 1], [], []>} : vector<8x8xbf16>, vector<8x16xbf16>, vector<8x16xf32> -> vector<8x16xf32>
    %385 = tpu.concatenate %359, %384 in 1 : vector<8x16xf32>, vector<8x16xf32> -> vector<8x32xf32>
    %386 = tpu.concatenate %333, %385 in 0 : vector<8x32xf32>, vector<8x32xf32> -> vector<16x32xf32>
    %387 = arith.truncf %386 : vector<16x32xf32> to vector<16x32xbf16>
    %c1_162 = arith.constant 1 : index
    %c0_163 = arith.constant 0 : index
    %c0_164 = arith.constant 0 : index
    %388 = vector.load %arg6[%c1_162, %c0_163, %c0_164] : memref<2x32x32xbf16, #tpu.memory_space<vmem>>, vector<1x32x32xbf16>
    %389 = vector.shape_cast %388 : vector<1x32x32xbf16> to vector<32x32xbf16>
    %cst_165 = arith.constant dense<0.000000e+00> : vector<16x32xf32>
    %390 = tpu.matmul %387, %389, %cst_165 {dimension_numbers = #tpu.dot_dimension_numbers<[1], [0], [0], [1], [0, 0, 1, 1], [], []>} : vector<16x32xbf16>, vector<32x32xbf16>, vector<16x32xf32> -> vector<16x32xf32>
    %c1_166 = arith.constant 1 : index
    %c0_167 = arith.constant 0 : index
    %c0_168 = arith.constant 0 : index
    %391 = vector.load %arg7[%c1_166, %c0_167, %c0_168] : memref<2x1x32xf32, #tpu.memory_space<vmem>>, vector<1x1x32xf32>
    %392 = vector.shape_cast %391 : vector<1x1x32xf32> to vector<1x32xf32>
    %393 = vector.broadcast %392 : vector<1x32xf32> to vector<16x32xf32>
    %394 = arith.addf %390, %393 : vector<16x32xf32>
    %395 = arith.addf %273, %394 : vector<16x32xf32>
    %c1_169 = arith.constant 1 : index
    %c0_170 = arith.constant 0 : index
    %c0_171 = arith.constant 0 : index
    %396 = vector.load %arg8[%c1_169, %c0_170, %c0_171] : memref<2x1x32xf32, #tpu.memory_space<vmem>>, vector<1x1x32xf32>
    %397 = vector.shape_cast %396 : vector<1x1x32xf32> to vector<1x32xf32>
    %c1_172 = arith.constant 1 : index
    %c0_173 = arith.constant 0 : index
    %c0_174 = arith.constant 0 : index
    %398 = vector.load %arg9[%c1_172, %c0_173, %c0_174] : memref<2x1x32xf32, #tpu.memory_space<vmem>>, vector<1x1x32xf32>
    %399 = vector.shape_cast %398 : vector<1x1x32xf32> to vector<1x32xf32>
    %cst_175 = arith.constant dense<0.000000e+00> : vector<16xf32>
    %400 = vector.multi_reduction <add>, %395, %cst_175 [1] : vector<16x32xf32> to vector<16xf32>
    %401 = vector.shape_cast %400 : vector<16xf32> to vector<16x1xf32>
    %cst_176 = arith.constant 3.200000e+01 : f32
    %402 = vector.broadcast %cst_176 : f32 to vector<16x1xf32>
    %403 = arith.divf %401, %402 : vector<16x1xf32>
    %404 = vector.broadcast %403 : vector<16x1xf32> to vector<16x32xf32>
    %405 = arith.subf %395, %404 : vector<16x32xf32>
    %406 = arith.mulf %405, %405 : vector<16x32xf32>
    %cst_177 = arith.constant dense<0.000000e+00> : vector<16xf32>
    %407 = vector.multi_reduction <add>, %406, %cst_177 [1] : vector<16x32xf32> to vector<16xf32>
    %408 = vector.shape_cast %407 : vector<16xf32> to vector<16x1xf32>
    %cst_178 = arith.constant 3.200000e+01 : f32
    %409 = vector.broadcast %cst_178 : f32 to vector<16x1xf32>
    %410 = arith.divf %408, %409 : vector<16x1xf32>
    %411 = vector.broadcast %403 : vector<16x1xf32> to vector<16x32xf32>
    %412 = arith.subf %395, %411 : vector<16x32xf32>
    %cst_179 = arith.constant 9.99999997E-7 : f32
    %413 = vector.broadcast %cst_179 : f32 to vector<16x1xf32>
    %414 = arith.addf %410, %413 : vector<16x1xf32>
    %415 = math.rsqrt %414 : vector<16x1xf32>
    %416 = vector.broadcast %415 : vector<16x1xf32> to vector<16x32xf32>
    %417 = arith.mulf %412, %416 : vector<16x32xf32>
    %418 = vector.broadcast %397 : vector<1x32xf32> to vector<16x32xf32>
    %419 = arith.mulf %417, %418 : vector<16x32xf32>
    %420 = vector.broadcast %399 : vector<1x32xf32> to vector<16x32xf32>
    %421 = arith.addf %419, %420 : vector<16x32xf32>
    %c1_180 = arith.constant 1 : index
    %c0_181 = arith.constant 0 : index
    %c0_182 = arith.constant 0 : index
    %c0_183 = arith.constant 0 : index
    %422 = vector.load %arg10[%c1_180, %c0_181, %c0_182, %c0_183] : memref<2x9x32x64xbf16, #tpu.memory_space<vmem>>, vector<1x1x32x64xbf16>
    %423 = vector.shape_cast %422 : vector<1x1x32x64xbf16> to vector<32x64xbf16>
    %c1_184 = arith.constant 1 : index
    %c1_185 = arith.constant 1 : index
    %c0_186 = arith.constant 0 : index
    %c0_187 = arith.constant 0 : index
    %424 = vector.load %arg10[%c1_184, %c1_185, %c0_186, %c0_187] : memref<2x9x32x64xbf16, #tpu.memory_space<vmem>>, vector<1x1x32x64xbf16>
    %425 = vector.shape_cast %424 : vector<1x1x32x64xbf16> to vector<32x64xbf16>
    %c1_188 = arith.constant 1 : index
    %c2_189 = arith.constant 2 : index
    %c0_190 = arith.constant 0 : index
    %c0_191 = arith.constant 0 : index
    %426 = vector.load %arg10[%c1_188, %c2_189, %c0_190, %c0_191] : memref<2x9x32x64xbf16, #tpu.memory_space<vmem>>, vector<1x1x32x64xbf16>
    %427 = vector.shape_cast %426 : vector<1x1x32x64xbf16> to vector<32x64xbf16>
    %c1_192 = arith.constant 1 : index
    %c3_193 = arith.constant 3 : index
    %c0_194 = arith.constant 0 : index
    %c0_195 = arith.constant 0 : index
    %428 = vector.load %arg10[%c1_192, %c3_193, %c0_194, %c0_195] : memref<2x9x32x64xbf16, #tpu.memory_space<vmem>>, vector<1x1x32x64xbf16>
    %429 = vector.shape_cast %428 : vector<1x1x32x64xbf16> to vector<32x64xbf16>
    %c1_196 = arith.constant 1 : index
    %c4_197 = arith.constant 4 : index
    %c0_198 = arith.constant 0 : index
    %c0_199 = arith.constant 0 : index
    %430 = vector.load %arg10[%c1_196, %c4_197, %c0_198, %c0_199] : memref<2x9x32x64xbf16, #tpu.memory_space<vmem>>, vector<1x1x32x64xbf16>
    %431 = vector.shape_cast %430 : vector<1x1x32x64xbf16> to vector<32x64xbf16>
    %c1_200 = arith.constant 1 : index
    %c5_201 = arith.constant 5 : index
    %c0_202 = arith.constant 0 : index
    %c0_203 = arith.constant 0 : index
    %432 = vector.load %arg10[%c1_200, %c5_201, %c0_202, %c0_203] : memref<2x9x32x64xbf16, #tpu.memory_space<vmem>>, vector<1x1x32x64xbf16>
    %433 = vector.shape_cast %432 : vector<1x1x32x64xbf16> to vector<32x64xbf16>
    %c1_204 = arith.constant 1 : index
    %c6_205 = arith.constant 6 : index
    %c0_206 = arith.constant 0 : index
    %c0_207 = arith.constant 0 : index
    %434 = vector.load %arg10[%c1_204, %c6_205, %c0_206, %c0_207] : memref<2x9x32x64xbf16, #tpu.memory_space<vmem>>, vector<1x1x32x64xbf16>
    %435 = vector.shape_cast %434 : vector<1x1x32x64xbf16> to vector<32x64xbf16>
    %c1_208 = arith.constant 1 : index
    %c7_209 = arith.constant 7 : index
    %c0_210 = arith.constant 0 : index
    %c0_211 = arith.constant 0 : index
    %436 = vector.load %arg10[%c1_208, %c7_209, %c0_210, %c0_211] : memref<2x9x32x64xbf16, #tpu.memory_space<vmem>>, vector<1x1x32x64xbf16>
    %437 = vector.shape_cast %436 : vector<1x1x32x64xbf16> to vector<32x64xbf16>
    %c1_212 = arith.constant 1 : index
    %c8_213 = arith.constant 8 : index
    %c0_214 = arith.constant 0 : index
    %c0_215 = arith.constant 0 : index
    %438 = vector.load %arg10[%c1_212, %c8_213, %c0_214, %c0_215] : memref<2x9x32x64xbf16, #tpu.memory_space<vmem>>, vector<1x1x32x64xbf16>
    %439 = vector.shape_cast %438 : vector<1x1x32x64xbf16> to vector<32x64xbf16>
    %c1_216 = arith.constant 1 : index
    %c0_217 = arith.constant 0 : index
    %c0_218 = arith.constant 0 : index
    %c0_219 = arith.constant 0 : index
    %440 = vector.load %arg12[%c1_216, %c0_217, %c0_218, %c0_219] : memref<2x1x64x32xbf16, #tpu.memory_space<vmem>>, vector<1x1x64x32xbf16>
    %441 = vector.shape_cast %440 : vector<1x1x64x32xbf16> to vector<64x32xbf16>
    %442 = vector.broadcast %1 : vector<16x1xf32> to vector<16x32xf32>
    %443 = arith.mulf %421, %442 : vector<16x32xf32>
    %c1_220 = arith.constant 1 : index
    %c0_221 = arith.constant 0 : index
    %c0_222 = arith.constant 0 : index
    %444 = vector.load %arg11[%c1_220, %c0_221, %c0_222] : memref<2x1x64xf32, #tpu.memory_space<vmem>>, vector<1x1x64xf32>
    %445 = vector.shape_cast %444 : vector<1x1x64xf32> to vector<1x64xf32>
    %cst_223 = arith.constant 0.000000e+00 : f32
    %446 = vector.broadcast %cst_223 : f32 to vector<4x32xf32>
    %447 = vector.extract_strided_slice %443 {offsets = [0, 0], sizes = [8, 32], strides = [1, 1]} : vector<16x32xf32> to vector<8x32xf32>
    %cst_224 = arith.constant 0.000000e+00 : f32
    %448 = vector.broadcast %cst_224 : f32 to vector<4x32xf32>
    %449 = tpu.concatenate %446, %447, %448 in 0 : vector<4x32xf32>, vector<8x32xf32>, vector<4x32xf32> -> vector<16x32xf32>
    %cst_225 = arith.constant 0.000000e+00 : f32
    %450 = vector.broadcast %cst_225 : f32 to vector<4x32xf32>
    %451 = vector.extract_strided_slice %443 {offsets = [8, 0], sizes = [8, 32], strides = [1, 1]} : vector<16x32xf32> to vector<8x32xf32>
    %cst_226 = arith.constant 0.000000e+00 : f32
    %452 = vector.broadcast %cst_226 : f32 to vector<4x32xf32>
    %453 = tpu.concatenate %450, %451, %452 in 0 : vector<4x32xf32>, vector<8x32xf32>, vector<4x32xf32> -> vector<16x32xf32>
    %454 = vector.extract_strided_slice %449 {offsets = [0, 0], sizes = [8, 32], strides = [1, 1]} : vector<16x32xf32> to vector<8x32xf32>
    %455 = vector.extract_strided_slice %453 {offsets = [0, 0], sizes = [8, 32], strides = [1, 1]} : vector<16x32xf32> to vector<8x32xf32>
    %456 = tpu.concatenate %454, %455 in 0 : vector<8x32xf32>, vector<8x32xf32> -> vector<16x32xf32>
    %457 = arith.truncf %456 : vector<16x32xf32> to vector<16x32xbf16>
    %cst_227 = arith.constant dense<0.000000e+00> : vector<16x64xf32>
    %458 = tpu.matmul %457, %423, %cst_227 {dimension_numbers = #tpu.dot_dimension_numbers<[1], [0], [0], [1], [0, 0, 1, 1], [], []>} : vector<16x32xbf16>, vector<32x64xbf16>, vector<16x64xf32> -> vector<16x64xf32>
    %459 = vector.extract_strided_slice %449 {offsets = [1, 0], sizes = [8, 32], strides = [1, 1]} : vector<16x32xf32> to vector<8x32xf32>
    %460 = vector.extract_strided_slice %453 {offsets = [1, 0], sizes = [8, 32], strides = [1, 1]} : vector<16x32xf32> to vector<8x32xf32>
    %461 = tpu.concatenate %459, %460 in 0 : vector<8x32xf32>, vector<8x32xf32> -> vector<16x32xf32>
    %462 = arith.truncf %461 : vector<16x32xf32> to vector<16x32xbf16>
    %cst_228 = arith.constant dense<0.000000e+00> : vector<16x64xf32>
    %463 = tpu.matmul %462, %425, %cst_228 {dimension_numbers = #tpu.dot_dimension_numbers<[1], [0], [0], [1], [0, 0, 1, 1], [], []>} : vector<16x32xbf16>, vector<32x64xbf16>, vector<16x64xf32> -> vector<16x64xf32>
    %464 = arith.addf %458, %463 : vector<16x64xf32>
    %465 = vector.extract_strided_slice %449 {offsets = [2, 0], sizes = [8, 32], strides = [1, 1]} : vector<16x32xf32> to vector<8x32xf32>
    %466 = vector.extract_strided_slice %453 {offsets = [2, 0], sizes = [8, 32], strides = [1, 1]} : vector<16x32xf32> to vector<8x32xf32>
    %467 = tpu.concatenate %465, %466 in 0 : vector<8x32xf32>, vector<8x32xf32> -> vector<16x32xf32>
    %468 = arith.truncf %467 : vector<16x32xf32> to vector<16x32xbf16>
    %cst_229 = arith.constant dense<0.000000e+00> : vector<16x64xf32>
    %469 = tpu.matmul %468, %427, %cst_229 {dimension_numbers = #tpu.dot_dimension_numbers<[1], [0], [0], [1], [0, 0, 1, 1], [], []>} : vector<16x32xbf16>, vector<32x64xbf16>, vector<16x64xf32> -> vector<16x64xf32>
    %470 = arith.addf %464, %469 : vector<16x64xf32>
    %471 = vector.extract_strided_slice %449 {offsets = [3, 0], sizes = [8, 32], strides = [1, 1]} : vector<16x32xf32> to vector<8x32xf32>
    %472 = vector.extract_strided_slice %453 {offsets = [3, 0], sizes = [8, 32], strides = [1, 1]} : vector<16x32xf32> to vector<8x32xf32>
    %473 = tpu.concatenate %471, %472 in 0 : vector<8x32xf32>, vector<8x32xf32> -> vector<16x32xf32>
    %474 = arith.truncf %473 : vector<16x32xf32> to vector<16x32xbf16>
    %cst_230 = arith.constant dense<0.000000e+00> : vector<16x64xf32>
    %475 = tpu.matmul %474, %429, %cst_230 {dimension_numbers = #tpu.dot_dimension_numbers<[1], [0], [0], [1], [0, 0, 1, 1], [], []>} : vector<16x32xbf16>, vector<32x64xbf16>, vector<16x64xf32> -> vector<16x64xf32>
    %476 = arith.addf %470, %475 : vector<16x64xf32>
    %477 = vector.extract_strided_slice %449 {offsets = [4, 0], sizes = [8, 32], strides = [1, 1]} : vector<16x32xf32> to vector<8x32xf32>
    %478 = vector.extract_strided_slice %453 {offsets = [4, 0], sizes = [8, 32], strides = [1, 1]} : vector<16x32xf32> to vector<8x32xf32>
    %479 = tpu.concatenate %477, %478 in 0 : vector<8x32xf32>, vector<8x32xf32> -> vector<16x32xf32>
    %480 = arith.truncf %479 : vector<16x32xf32> to vector<16x32xbf16>
    %cst_231 = arith.constant dense<0.000000e+00> : vector<16x64xf32>
    %481 = tpu.matmul %480, %431, %cst_231 {dimension_numbers = #tpu.dot_dimension_numbers<[1], [0], [0], [1], [0, 0, 1, 1], [], []>} : vector<16x32xbf16>, vector<32x64xbf16>, vector<16x64xf32> -> vector<16x64xf32>
    %482 = arith.addf %476, %481 : vector<16x64xf32>
    %483 = vector.extract_strided_slice %449 {offsets = [5, 0], sizes = [8, 32], strides = [1, 1]} : vector<16x32xf32> to vector<8x32xf32>
    %484 = vector.extract_strided_slice %453 {offsets = [5, 0], sizes = [8, 32], strides = [1, 1]} : vector<16x32xf32> to vector<8x32xf32>
    %485 = tpu.concatenate %483, %484 in 0 : vector<8x32xf32>, vector<8x32xf32> -> vector<16x32xf32>
    %486 = arith.truncf %485 : vector<16x32xf32> to vector<16x32xbf16>
    %cst_232 = arith.constant dense<0.000000e+00> : vector<16x64xf32>
    %487 = tpu.matmul %486, %433, %cst_232 {dimension_numbers = #tpu.dot_dimension_numbers<[1], [0], [0], [1], [0, 0, 1, 1], [], []>} : vector<16x32xbf16>, vector<32x64xbf16>, vector<16x64xf32> -> vector<16x64xf32>
    %488 = arith.addf %482, %487 : vector<16x64xf32>
    %489 = vector.extract_strided_slice %449 {offsets = [6, 0], sizes = [8, 32], strides = [1, 1]} : vector<16x32xf32> to vector<8x32xf32>
    %490 = vector.extract_strided_slice %453 {offsets = [6, 0], sizes = [8, 32], strides = [1, 1]} : vector<16x32xf32> to vector<8x32xf32>
    %491 = tpu.concatenate %489, %490 in 0 : vector<8x32xf32>, vector<8x32xf32> -> vector<16x32xf32>
    %492 = arith.truncf %491 : vector<16x32xf32> to vector<16x32xbf16>
    %cst_233 = arith.constant dense<0.000000e+00> : vector<16x64xf32>
    %493 = tpu.matmul %492, %435, %cst_233 {dimension_numbers = #tpu.dot_dimension_numbers<[1], [0], [0], [1], [0, 0, 1, 1], [], []>} : vector<16x32xbf16>, vector<32x64xbf16>, vector<16x64xf32> -> vector<16x64xf32>
    %494 = arith.addf %488, %493 : vector<16x64xf32>
    %495 = vector.extract_strided_slice %449 {offsets = [7, 0], sizes = [8, 32], strides = [1, 1]} : vector<16x32xf32> to vector<8x32xf32>
    %496 = vector.extract_strided_slice %453 {offsets = [7, 0], sizes = [8, 32], strides = [1, 1]} : vector<16x32xf32> to vector<8x32xf32>
    %497 = tpu.concatenate %495, %496 in 0 : vector<8x32xf32>, vector<8x32xf32> -> vector<16x32xf32>
    %498 = arith.truncf %497 : vector<16x32xf32> to vector<16x32xbf16>
    %cst_234 = arith.constant dense<0.000000e+00> : vector<16x64xf32>
    %499 = tpu.matmul %498, %437, %cst_234 {dimension_numbers = #tpu.dot_dimension_numbers<[1], [0], [0], [1], [0, 0, 1, 1], [], []>} : vector<16x32xbf16>, vector<32x64xbf16>, vector<16x64xf32> -> vector<16x64xf32>
    %500 = arith.addf %494, %499 : vector<16x64xf32>
    %501 = vector.extract_strided_slice %449 {offsets = [8, 0], sizes = [8, 32], strides = [1, 1]} : vector<16x32xf32> to vector<8x32xf32>
    %502 = vector.extract_strided_slice %453 {offsets = [8, 0], sizes = [8, 32], strides = [1, 1]} : vector<16x32xf32> to vector<8x32xf32>
    %503 = tpu.concatenate %501, %502 in 0 : vector<8x32xf32>, vector<8x32xf32> -> vector<16x32xf32>
    %504 = arith.truncf %503 : vector<16x32xf32> to vector<16x32xbf16>
    %cst_235 = arith.constant dense<0.000000e+00> : vector<16x64xf32>
    %505 = tpu.matmul %504, %439, %cst_235 {dimension_numbers = #tpu.dot_dimension_numbers<[1], [0], [0], [1], [0, 0, 1, 1], [], []>} : vector<16x32xbf16>, vector<32x64xbf16>, vector<16x64xf32> -> vector<16x64xf32>
    %506 = arith.addf %500, %505 : vector<16x64xf32>
    %507 = vector.broadcast %445 : vector<1x64xf32> to vector<16x64xf32>
    %508 = arith.addf %506, %507 : vector<16x64xf32>
    %cst_236 = arith.constant 0.000000e+00 : f32
    %509 = vector.broadcast %cst_236 : f32 to vector<16x64xf32>
    %510 = arith.maximumf %508, %509 : vector<16x64xf32>
    %511 = vector.broadcast %1 : vector<16x1xf32> to vector<16x64xf32>
    %512 = arith.mulf %510, %511 : vector<16x64xf32>
    %c1_237 = arith.constant 1 : index
    %c0_238 = arith.constant 0 : index
    %c0_239 = arith.constant 0 : index
    %513 = vector.load %arg13[%c1_237, %c0_238, %c0_239] : memref<2x1x32xf32, #tpu.memory_space<vmem>>, vector<1x1x32xf32>
    %514 = vector.shape_cast %513 : vector<1x1x32xf32> to vector<1x32xf32>
    %515 = arith.truncf %512 : vector<16x64xf32> to vector<16x64xbf16>
    %cst_240 = arith.constant dense<0.000000e+00> : vector<16x32xf32>
    %516 = tpu.matmul %515, %441, %cst_240 {dimension_numbers = #tpu.dot_dimension_numbers<[1], [0], [0], [1], [0, 0, 1, 1], [], []>} : vector<16x64xbf16>, vector<64x32xbf16>, vector<16x32xf32> -> vector<16x32xf32>
    %517 = vector.broadcast %514 : vector<1x32xf32> to vector<16x32xf32>
    %518 = arith.addf %516, %517 : vector<16x32xf32>
    %519 = arith.addf %421, %518 : vector<16x32xf32>
    %c1_241 = arith.constant 1 : index
    %c0_242 = arith.constant 0 : index
    %c0_243 = arith.constant 0 : index
    %520 = vector.load %arg14[%c1_241, %c0_242, %c0_243] : memref<2x1x32xf32, #tpu.memory_space<vmem>>, vector<1x1x32xf32>
    %521 = vector.shape_cast %520 : vector<1x1x32xf32> to vector<1x32xf32>
    %c1_244 = arith.constant 1 : index
    %c0_245 = arith.constant 0 : index
    %c0_246 = arith.constant 0 : index
    %522 = vector.load %arg15[%c1_244, %c0_245, %c0_246] : memref<2x1x32xf32, #tpu.memory_space<vmem>>, vector<1x1x32xf32>
    %523 = vector.shape_cast %522 : vector<1x1x32xf32> to vector<1x32xf32>
    %cst_247 = arith.constant dense<0.000000e+00> : vector<16xf32>
    %524 = vector.multi_reduction <add>, %519, %cst_247 [1] : vector<16x32xf32> to vector<16xf32>
    %525 = vector.shape_cast %524 : vector<16xf32> to vector<16x1xf32>
    %cst_248 = arith.constant 3.200000e+01 : f32
    %526 = vector.broadcast %cst_248 : f32 to vector<16x1xf32>
    %527 = arith.divf %525, %526 : vector<16x1xf32>
    %528 = vector.broadcast %527 : vector<16x1xf32> to vector<16x32xf32>
    %529 = arith.subf %519, %528 : vector<16x32xf32>
    %530 = arith.mulf %529, %529 : vector<16x32xf32>
    %cst_249 = arith.constant dense<0.000000e+00> : vector<16xf32>
    %531 = vector.multi_reduction <add>, %530, %cst_249 [1] : vector<16x32xf32> to vector<16xf32>
    %532 = vector.shape_cast %531 : vector<16xf32> to vector<16x1xf32>
    %cst_250 = arith.constant 3.200000e+01 : f32
    %533 = vector.broadcast %cst_250 : f32 to vector<16x1xf32>
    %534 = arith.divf %532, %533 : vector<16x1xf32>
    %535 = vector.broadcast %527 : vector<16x1xf32> to vector<16x32xf32>
    %536 = arith.subf %519, %535 : vector<16x32xf32>
    %cst_251 = arith.constant 9.99999997E-7 : f32
    %537 = vector.broadcast %cst_251 : f32 to vector<16x1xf32>
    %538 = arith.addf %534, %537 : vector<16x1xf32>
    %539 = math.rsqrt %538 : vector<16x1xf32>
    %540 = vector.broadcast %539 : vector<16x1xf32> to vector<16x32xf32>
    %541 = arith.mulf %536, %540 : vector<16x32xf32>
    %542 = vector.broadcast %521 : vector<1x32xf32> to vector<16x32xf32>
    %543 = arith.mulf %541, %542 : vector<16x32xf32>
    %544 = vector.broadcast %523 : vector<1x32xf32> to vector<16x32xf32>
    %545 = arith.addf %543, %544 : vector<16x32xf32>
    %c0_252 = arith.constant 0 : index
    %c0_253 = arith.constant 0 : index
    %546 = vector.load %arg16[%c0_252, %c0_253] : memref<1x32xf32, #tpu.memory_space<vmem>>, vector<1x32xf32>
    %c0_254 = arith.constant 0 : index
    %c0_255 = arith.constant 0 : index
    %547 = vector.load %arg17[%c0_254, %c0_255] : memref<1x32xf32, #tpu.memory_space<vmem>>, vector<1x32xf32>
    %cst_256 = arith.constant dense<0.000000e+00> : vector<16xf32>
    %548 = vector.multi_reduction <add>, %545, %cst_256 [1] : vector<16x32xf32> to vector<16xf32>
    %549 = vector.shape_cast %548 : vector<16xf32> to vector<16x1xf32>
    %cst_257 = arith.constant 3.200000e+01 : f32
    %550 = vector.broadcast %cst_257 : f32 to vector<16x1xf32>
    %551 = arith.divf %549, %550 : vector<16x1xf32>
    %552 = vector.broadcast %551 : vector<16x1xf32> to vector<16x32xf32>
    %553 = arith.subf %545, %552 : vector<16x32xf32>
    %554 = arith.mulf %553, %553 : vector<16x32xf32>
    %cst_258 = arith.constant dense<0.000000e+00> : vector<16xf32>
    %555 = vector.multi_reduction <add>, %554, %cst_258 [1] : vector<16x32xf32> to vector<16xf32>
    %556 = vector.shape_cast %555 : vector<16xf32> to vector<16x1xf32>
    %cst_259 = arith.constant 3.200000e+01 : f32
    %557 = vector.broadcast %cst_259 : f32 to vector<16x1xf32>
    %558 = arith.divf %556, %557 : vector<16x1xf32>
    %559 = vector.broadcast %551 : vector<16x1xf32> to vector<16x32xf32>
    %560 = arith.subf %545, %559 : vector<16x32xf32>
    %cst_260 = arith.constant 9.99999997E-7 : f32
    %561 = vector.broadcast %cst_260 : f32 to vector<16x1xf32>
    %562 = arith.addf %558, %561 : vector<16x1xf32>
    %563 = math.rsqrt %562 : vector<16x1xf32>
    %564 = vector.broadcast %563 : vector<16x1xf32> to vector<16x32xf32>
    %565 = arith.mulf %560, %564 : vector<16x32xf32>
    %566 = vector.broadcast %546 : vector<1x32xf32> to vector<16x32xf32>
    %567 = arith.mulf %565, %566 : vector<16x32xf32>
    %568 = vector.broadcast %547 : vector<1x32xf32> to vector<16x32xf32>
    %569 = arith.addf %567, %568 : vector<16x32xf32>
    %c0_261 = arith.constant 0 : index
    %c0_262 = arith.constant 0 : index
    %570 = vector.load %arg1[%c0_261, %c0_262] : memref<16x1xf32, #tpu.memory_space<vmem>>, vector<16x1xf32>
    %571 = vector.broadcast %570 : vector<16x1xf32> to vector<16x32xf32>
    %572 = arith.mulf %569, %571 : vector<16x32xf32>
    %c0_263 = arith.constant 0 : index
    %c0_264 = arith.constant 0 : index
    %573 = vector.load %arg18[%c0_263, %c0_264] : memref<16x32xf32, #tpu.memory_space<vmem>>, vector<16x32xf32>
    tpu.vector_store %arg18[%c0_263, %c0_264], %572 {strides = array<i32>} : memref<16x32xf32, #tpu.memory_space<vmem>>, vector<16x32xf32>,
    return
  }
}

</mosaic_0001>

<bundles_post_ra>
// kernel: tpu_custom_call.1
= control target key start
LH: loop header
LB: loop body
LE: loop exit
PB: predicated region body
PF: predicated region fallthrough
CT: control target
= control target key end

     0   :  { %s3082_s0 = inlined_call_operand.vmem [shape: f32[16,32], index: 0, kind: input, shape index: {}]   ;;  %s3083_s1 = inlined_call_operand.vmem [shape: f32[16,1], index: 1, kind: input, shape index: {}]   ;;  %s3084_s2 = inlined_call_operand.vmem [shape: f32[16,1], index: 2, kind: input, shape index: {}]   ;;  %s3085_s3 = inlined_call_operand.vmem [shape: f32[4,1,8], index: 3, kind: input, shape index: {}]   ;;  %s3086_s4 = inlined_call_operand.vmem [shape: bf16[2,32,96], index: 4, kind: input, shape index: {}]   ;;  %s3087_s5 = inlined_call_operand.vmem [shape: f32[2,1,96], index: 5, kind: input, shape index: {}]   ;;  %s3088_s6 = inlined_call_operand.vmem [shape: bf16[2,32,32], index: 6, kind: input, shape index: {}]   ;;  %s3089_s7 = inlined_call_operand.vmem [shape: f32[2,1,32], index: 7, kind: input, shape index: {}]   ;;  %s3090_s8 = inlined_call_operand.vmem [shape: f32[2,1,32], index: 8, kind: input, shape index: {}]   ;;  %s3091_s9 = inlined_call_operand.vmem [shape: f32[2,1,32], index: 9, kind: input, shape index: {}]   ;;  %s3092_s10 = inlined_call_operand.hbm [shape: bf16[2,9,32,64], index: 10, kind: input, shape index: {}]   ;;  %s3093_s11 = inlined_call_operand.vmem [shape: f32[2,1,64], index: 11, kind: input, shape index: {}]   ;;  %s3094_s12 = inlined_call_operand.vmem [shape: bf16[2,1,64,32], index: 12, kind: input, shape index: {}]   ;;  %s3095_s13 = inlined_call_operand.vmem [shape: f32[2,1,32], index: 13, kind: input, shape index: {}]   ;;  %s3096_s14 = inlined_call_operand.vmem [shape: f32[2,1,32], index: 14, kind: input, shape index: {}]   ;;  %s3097_s15 = inlined_call_operand.vmem [shape: f32[2,1,32], index: 15, kind: input, shape index: {}]   ;;  %s3098_s16 = inlined_call_operand.vmem [shape: f32[1,32], index: 16, kind: input, shape index: {}]   ;;  %s3099_s17 = inlined_call_operand.vmem [shape: f32[1,32], index: 17, kind: input, shape index: {}]   ;;  %s3100_s18 = inlined_call_operand.hbm [shape: f32[16,32], index: 18, kind: output, shape index: {}]  }
   0x1   :  { %3105 = sst [smem:[#allocation8_spill]] %s3082_s0 }
   0x2   :  { %3106 = sst [smem:[#allocation9_spill]] %s3083_s1 }
   0x3   :  { %3107 = sst [smem:[#allocation10_spill]] %s3084_s2 }
   0x4   :  { %23 = vsyncpa [#allocation3], 0 }
   0x5   :  { %24 = vsyncpa [#allocation4], 0  ;;  %s49_s29 = sshll.u32 %s3092_s10, 4  ;;  %s2507_s30 = smov [#allocation2]   ;;  %s50_s29 = int_to_ptr.hbm [resolvable:$true] %s49_s29 }
   0x6   :  { %s51_s0 = sshll.u32 %s2507_s30, 4  ;;  %s2508_s19 = smov 64   ;;  %s52_s0 = int_to_ptr.vmem [resolvable:$true] %s51_s0 }
   0x7   :  { %s2509_s1 = smov 4  }
   0x8   :  { %57 = dma.hbm_to_vmem [thread:$0]  %s50_s29, 4608, %s52_s0, [#allocation3], %s2508_s19, %s2508_s19, %s2509_s1  }
   0x9   :  { %2503 = dma.done.wait [#allocation3], 4608  }
   0xa   :  { %2504 = vsyncadd [#allocation3], 4294962688  ;;  %v2303_v0 = vld [vmem:[%s3086_s4 + $0x8] sm:$0xff]  ;;  %v2302_v1 = vld [vmem:[%s3086_s4] sm:$0xff]  ;;  %s3108_s24 = sld [smem:[#allocation8_spill]]  ;;  %vm102_vm0 = vcmask 261120  }
   0xb   :  { %112 = vmatpush.bf16.msra.mxu0 %v2303_v0  ;;  %v2379_v5 = vld [vmem:[%s3087_s5] ss:$0 sm:$0xff]  ;;  %s2510_s29 = smov 112   ;;  %s2511_s30 = smov 96   ;;  %vm124_vm1 = vcmask 130048   ;;  %vm150_vm2 = vcmask 64512  }
   0xc   :  { %s2512_s0 = smov 80   ;;  %v2665_v23 = vld [vmem:[%s3085_s3] ss:$0 sm:$0xff]  ;;  %v2672_v30 = vld [vmem:[%s3085_s3 + $0x1] ss:$0 sm:$0xff]  ;;  %s2513_s23 = smov 48  }
   0xd   :  { %v2681_v36 = vld [vmem:[%s3085_s3 + $0x3] ss:$0 sm:$0xff]  ;;  %vm168_vm3 = vcmask 1043456   ;;  %v2693_v56 = vld [vmem:[%s3085_s3 + $0x2] ss:$0 sm:$0xff]  ;;  %s2514_s3 = smov 16  }
   0xe   :  { %s3109_s10 = sld [smem:[#allocation10_spill]]  ;;  %vm565_vm11 = vcmask 1046528   ;;  %vm635_vm12 = vcmask 1045504   ;;  %vm676_vm13 = vcmask 1044480   ;;  %vm757_vm14 = vcmask 1042432  }
   0xf   :  { %113 = vmatpush.bf16.msra.mxu0 %v2302_v1  ;;  %vm798_vm15 = vcmask 1041408  }
  0x10   :  { %v2629_v2 = vld [vmem:[%s3108_s24] sm:$0xff]  ;;  %v2634_v3 = vld [vmem:[%s3108_s24 + $0x8] sm:$0xff] }
  0x11   :  { %v81_v4 = vpack.c.bf16 %v2634_v3, %v2629_v2 }
  0x13   :  { %2035 = vmatmul.msk.bf16.vlgmr.msra.gmra.mxu0 %vm102_vm0, %v81_v4 }
  0x90   :  { %v115_v6 = vpop.f32.mrf.mxu0 }
  0x91   :  { %v116_v7 = vadd.f32 %v2379_v5, %v115_v6 }
  0x93   :  { %v2642_v8 = vpack.c.bf16 %v116_v7, %v116_v7 }
  0x95   :  { %185 = vrot.lane.b32.xlu1 %v2642_v8, %s2510_s29  ;;  %122 = vrot.lane.b32.xlu0 %v2642_v8, %s2511_s30 }
  0x98   :  { %v117_v9 = vpop.f32.mrf.mxu0 }
  0x99   :  { %v118_v10 = vadd.f32 %v2379_v5, %v117_v9 }
  0x9b   :  { %v253_v11 = vpack.c.bf16 %v118_v10, %v118_v10 }
  0x9d   :  { %316 = vrot.lane.b32.xlu2 %v253_v11, %s2510_s29  ;;  %318 = vrot.lane.b32.xlu1 %v253_v11, %s2512_s0 }
  0x9e   :  { %187 = vrot.lane.b32.xlu0 %v2642_v8, %s2512_s0 }
  0xa5   :  { %255 = vrot.lane.b32.xlu2 %v253_v11, %s2511_s30 }
  0xf7   :  { %v317_v12 = vpop.permute.xlu2 %316 }
  0xff   :  { %v256_v13 = vpop.permute.xlu2 %255 }
 0x100   :  { %v261_v14 = vsel %vm124_vm1, %v256_v13, 0 }
 0x101   :  { %270 = vmatpush.bf16.xpose.msrb.mxu0 %v261_v14 }
 0x107   :  { %v186_v15 = vpop.permute.xlu1 %185  ;;  %v123_v16 = vpop.permute.xlu0 %122 }
 0x108   :  { %2041 = vmatmul.msk.bf16.vlgmr.msrb.gmra.mxu0 %vm124_vm1, %v253_v11  ;;  %v129_v17 = vsel %vm124_vm1, %v123_v16, 0 }
 0x109   :  { %138 = vmatpush.bf16.xpose.msra.mxu1 %v129_v17 }
 0x10f   :  { %v319_v18 = vpop.permute.xlu1 %318 }
 0x110   :  { %v188_v19 = vpop.permute.xlu0 %187  ;;  %2036 = vmatmul.msk.bf16.vlgmr.msra.gmra.mxu1 %vm124_vm1, %v2642_v8  ;;  %v324_v20 = vsel %vm124_vm1, %v319_v18, 0 }
 0x111   :  { %v193_v21 = vsel %vm124_vm1, %v188_v19, 0 }
 0x112   :  { %202 = vmatpush.bf16.xpose.msra.mxu3 %v193_v21 }
 0x119   :  { %2038 = vmatmul.msk.bf16.vlgmr.msra.gmra.mxu3 %vm124_vm1, %v186_v15 }
 0x11a   :  { %333 = vmatpush.bf16.xpose.msrb.mxu3 %v324_v20 }
 0x129   :  { %2044 = vmatmul.msk.bf16.vlgmr.msrb.gmra.mxu3 %vm124_vm1, %v317_v12 }
 0x185   :  { %v272_v22 = vpop.f32.mrf.mxu0 }
 0x186   :  { %v276_v53 = vmul.f32 0.25, %v272_v22 }
 0x188   :  { %v282_v58 = vadd.f32 %v2693_v56, %v276_v53 }
 0x18a   :  { %v283_v61 = vsel %vm150_vm2, %v282_v58, -inf }
 0x18d   :  { %v140_v24 = vpop.f32.mrf.mxu1  ;;  %v274_v25 = vpop.f32.mrf.mxu0 }
 0x18e   :  { %v144_v26 = vmul.f32 0.25, %v140_v24 }
 0x190   :  { %v149_v27 = vadd.f32 %v2665_v23, %v144_v26 }
 0x192   :  { %v151_v28 = vsel %vm150_vm2, %v149_v27, -inf }
 0x193   :  { %152 = vmax.xlane.f32.xlu0 %v151_v28 }
 0x195   :  { %v142_v29 = vpop.f32.mrf.mxu1 }
 0x19c   :  { %v204_v31 = vpop.f32.mrf.mxu3 }
 0x19d   :  { %v208_v32 = vmul.f32 0.25, %v204_v31 }
 0x19f   :  { %v214_v33 = vadd.f32 %v2672_v30, %v208_v32 }
 0x1a1   :  { %v215_v34 = vsel %vm150_vm2, %v214_v33, -inf }
 0x1a2   :  { %216 = vmax.xlane.f32.xlu1 %v215_v34 }
 0x1a4   :  { %v206_v35 = vpop.f32.mrf.mxu3 }
 0x1a7   :  { %163 = vrot.lane.b32.xlu0 %v2642_v8, %s2508_s19 }
 0x1ac   :  { %v335_v37 = vpop.f32.mrf.mxu3 }
 0x1ad   :  { %v339_v38 = vmul.f32 0.25, %v335_v37 }
 0x1af   :  { %358 = vrot.lane.b32.xlu0 %v253_v11, %s2513_s23  ;;  %v345_v39 = vadd.f32 %v2681_v36, %v339_v38  ;;  %v2305_v38 = vld [vmem:[%s3088_s6 + $0x8] sm:$0xff] }
 0x1b0   :  { %414 = vmatpush.bf16.msra.mxu0 %v2305_v38  ;;  %v2319_v38 = vld [vmem:[#allocation2 + $0x68] sm:$0xff] }
 0x1b1   :  { %v346_v40 = vsel %vm150_vm2, %v345_v39, -inf }
 0x1b2   :  { %347 = vmax.xlane.f32.xlu2 %v346_v40 }
 0x1b4   :  { %v337_v41 = vpop.f32.mrf.mxu3 }
 0x1b7   :  { %295 = vrot.lane.b32.xlu0 %v253_v11, %s2508_s19 }
 0x206   :  { %v153_v42 = vpop.xlane.xlu0 %152 }
 0x207   :  { %v154_v43 = vsub.f32 %v149_v27, %v153_v42 }
 0x209   :  { %v155_v44 = vmul.f32 1.442695, %v154_v43 }
 0x20b   :  { %2401 = vpow2.f32 %v155_v44 }
 0x211   :  { %v2402_v45 = vpop.eup %2401 }
 0x212   :  { %v157_v46 = vsel %vm150_vm2, %v2402_v45, 0.0 }
 0x213   :  { %158 = vadd.xlane.f32.xlu2 %v157_v46 }
 0x215   :  { %v217_v47 = vpop.xlane.xlu1 %216 }
 0x216   :  { %v218_v48 = vsub.f32 %v214_v33, %v217_v47 }
 0x218   :  { %v219_v49 = vmul.f32 1.442695, %v218_v48  ;;  %v2515_v48 = vmov 0  }
 0x219   :  { %v164_v50 = vpop.permute.xlu0 %163  ;;  %2372 = vset.pattern.permute.xlu1 %v2515_v48  ;;  %2378 = vset.pattern.permute.xlu0 %v2515_v48 }
 0x21a   :  { %2403 = vpow2.f32 %v219_v49  ;;  %v170_v51 = vsel %vm168_vm3, %v164_v50, 0  ;;  %v2384_v49 = vld [vmem:[%s3089_s7] ss:$0 sm:$0xff] }
 0x21b   :  { %179 = vmatpush.bf16.msra.mxu2 %v170_v51 }
 0x220   :  { %v2404_v52 = vpop.eup %2403 }
 0x221   :  { %v221_v54 = vsel %vm150_vm2, %v2404_v52, 0.0  ;;  %v359_v55 = vpop.permute.xlu0 %358 }
 0x222   :  { %222 = vadd.xlane.f32.xlu1 %v221_v54  ;;  %v364_v11 = vsel %vm168_vm3, %v359_v55, 0 }
 0x225   :  { %v348_v57 = vpop.xlane.xlu2 %347 }
 0x226   :  { %v349_v59 = vsub.f32 %v345_v39, %v348_v57  ;;  %v2304_v39 = vld [vmem:[%s3088_s6] sm:$0xff] }
 0x227   :  { %415 = vmatpush.bf16.msra.mxu0 %v2304_v39  ;;  %v2321_v39 = vld [vmem:[#allocation2 + $0x78] sm:$0xff] }
 0x228   :  { %v350_v60 = vmul.f32 1.442695, %v349_v59  ;;  %v79_v59 = vld [vmem:[%s3109_s10] sm:$0xff] }
 0x229   :  { %v296_v62 = vpop.permute.xlu0 %295 }
 0x22a   :  { %2405 = vpow2.f32 %v350_v60  ;;  %284 = vmax.xlane.f32.xlu1 %v283_v61  ;;  %v301_v63 = vsel %vm168_vm3, %v296_v62, 0  ;;  %v2516_v60 = vmov 32.0  }
 0x22b   :  { %227 = vrot.lane.b32.xlu2 %v2642_v8, %s2513_s23  ;;  %310 = vmatpush.bf16.msrb.mxu1 %v301_v63 }
 0x230   :  { %v2406_v0 = vpop.eup %2405 }
 0x231   :  { %v352_v1 = vsel %vm150_vm2, %v2406_v0, 0.0 }
 0x232   :  { %353 = vadd.xlane.f32.xlu1 %v352_v1 }
 0x286   :  { %v159_v4 = vpop.xlane.xlu2 %158 }
 0x287   :  { %2407 = vrcp.f32 %v159_v4 }
 0x28d   :  { %v2408_v5 = vpop.eup %2407 }
 0x28e   :  { %v228_v6 = vpop.permute.xlu2 %227  ;;  %v161_v7 = vmul.f32 %v2408_v5, %v2402_v45 }
 0x28f   :  { %v233_v9 = vsel %vm168_vm3, %v228_v6, 0 }
 0x290   :  { %242 = vmatpush.bf16.msrb.mxu2 %v233_v9  ;;  %v162_v10 = vpack.c.bf16 %v161_v7, %v161_v7 }
 0x292   :  { %2037 = vmatmul.msk.bf16.vlgmr.msra.gmra.mxu2 %vm150_vm2, %v162_v10 }
 0x294   :  { %373 = vmatpush.bf16.msra.mxu2 %v364_v11 }
 0x295   :  { %v223_v8 = vpop.xlane.xlu1 %222 }
 0x296   :  { %2409 = vrcp.f32 %v223_v8 }
 0x29c   :  { %v2410_v12 = vpop.eup %2409 }
 0x29d   :  { %v225_v13 = vmul.f32 %v2410_v12, %v2404_v52  ;;  %v285_v14 = vpop.xlane.xlu1 %284 }
 0x29e   :  { %v286_v15 = vsub.f32 %v282_v58, %v285_v14  ;;  %v2309_v14 = vld [vmem:[#allocation2 + $0x18] sm:$0xff] }
 0x29f   :  { %v226_v17 = vpack.c.bf16 %v225_v13, %v225_v13  ;;  %v80_v13 = vld [vmem:[%s3109_s10 + $0x8] sm:$0xff]  ;;  %598 = vmatpush.bf16.msra.mxu1 %v2309_v14 }
 0x2a0   :  { %v287_v16 = vmul.f32 1.442695, %v286_v15 }
 0x2a2   :  { %2411 = vpow2.f32 %v287_v16  ;;  %2040 = vmatmul.msk.bf16.vlgmr.msrb.gmra.mxu2 %vm150_vm2, %v226_v17 }
 0x2a5   :  { %v354_v18 = vpop.xlane.xlu1 %353 }
 0x2a6   :  { %2413 = vrcp.f32 %v354_v18 }
 0x2a8   :  { %v2412_v19 = vpop.eup %2411 }
 0x2a9   :  { %v289_v20 = vsel %vm150_vm2, %v2412_v19, 0.0 }
 0x2aa   :  { %290 = vadd.xlane.f32.xlu1 %v289_v20  ;;  %v2311_v20 = vld [vmem:[#allocation2 + $0x28] sm:$0xff] }
 0x2ab   :  { %666 = vmatpush.bf16.msrb.mxu2 %v2311_v20 }
 0x2ac   :  { %v2414_v21 = vpop.eup %2413 }
 0x2ad   :  { %v356_v22 = vmul.f32 %v2414_v21, %v2406_v0  ;;  %v2313_v21 = vld [vmem:[#allocation2 + $0x38] sm:$0xff] }
 0x2ae   :  { %707 = vmatpush.bf16.msrb.mxu0 %v2313_v21 }
 0x2af   :  { %v357_v24 = vpack.c.bf16 %v356_v22, %v356_v22  ;;  %v2306_v22 = vld [vmem:[#allocation2] sm:$0xff] }
 0x2b2   :  { %2046 = vmatmul.msk.bf16.vlgmr.msra.gmra.mxu2 %vm150_vm2, %v357_v24 }
 0x315   :  { %v181_v25 = vpop.f32.mrf.mxu2 }
 0x31d   :  { %v291_v26 = vpop.xlane.xlu1 %290  ;;  %v183_v27 = vpop.f32.mrf.mxu2 }
 0x31e   :  { %2415 = vrcp.f32 %v291_v26  ;;  %v2308_v26 = vld [vmem:[#allocation2 + $0x10] sm:$0xff]  ;;  %v2310_v27 = vld [vmem:[#allocation2 + $0x20] sm:$0xff] }
 0x31f   :  { %2417 = vrcp.f32 %v2516_v60  ;;  %599 = vmatpush.bf16.msra.mxu1 %v2308_v26  ;;  %667 = vmatpush.bf16.msrb.mxu2 %v2310_v27 }
 0x323   :  { %829 = vmatpush.bf16.msra.mxu2 %v2319_v38 }
 0x324   :  { %v2416_v28 = vpop.eup %2415 }
 0x325   :  { %v293_v29 = vmul.f32 %v2416_v28, %v2412_v19  ;;  %v244_v31 = vpop.f32.mrf.mxu2  ;;  %v2418_v61 = vpop.eup %2417  ;;  %v2307_v19 = vld [vmem:[#allocation2 + $0x8] sm:$0xff]  ;;  %v2312_v28 = vld [vmem:[#allocation2 + $0x30] sm:$0xff] }
 0x326   :  { %v433_v62 = vmul.f32 32.0, %v2418_v61  ;;  %vm437_vm4 = vweird.f32 %v2418_v61  ;;  %627 = vmatpush.bf16.msra.mxu3 %v2307_v19  ;;  %708 = vmatpush.bf16.msrb.mxu0 %v2312_v28 }
 0x327   :  { %v294_v32 = vpack.c.bf16 %v293_v29, %v293_v29 }
 0x329   :  { %2043 = vmatmul.msk.bf16.vlgmr.msrb.gmra.mxu1 %vm150_vm2, %v294_v32 }
 0x32a   :  { %628 = vmatpush.bf16.msra.mxu3 %v2306_v22 }
 0x32d   :  { %v246_v33 = vpop.f32.mrf.mxu2 }
 0x335   :  { %v375_v34 = vpop.f32.mrf.mxu2 }
 0x336   :  { %v2367_v35 = vpack.i.bf16 %v375_v34, %v244_v31 }
 0x338   :  { %2368 = vrot.lane.b32.xlu2 %v2367_v35, %s2514_s3  ;;  %v2315_v35 = vld [vmem:[#allocation2 + $0x48] sm:$0xff] }
 0x339   :  { %747 = vmatpush.bf16.msrb.mxu1 %v2315_v35  ;;  %v2322_v35 = vld [vmem:[#allocation2 + $0x80] sm:$0xff] }
 0x33d   :  { %v377_v37 = vpop.f32.mrf.mxu2 }
 0x33e   :  { %v2317_v37 = vld [vmem:[#allocation2 + $0x58] sm:$0xff] }
 0x33f   :  { %788 = vmatpush.bf16.msrb.mxu3 %v2317_v37 }
 0x392   :  { %v2369_v40 = vpop.permute.xlu2 %2368 }
 0x393   :  { %v2370_v41 = vunpack.i.l.bf16 %v2369_v40  ;;  %v2371_v42 = vunpack.i.h.bf16 %v2369_v40 }
 0x395   :  { %v252_v44 = vsel %vm124_vm1, %v181_v25, %v2370_v41  ;;  %v2314_v41 = vld [vmem:[#allocation2 + $0x40] sm:$0xff] }
 0x396   :  { %748 = vmatpush.bf16.msrb.mxu1 %v2314_v41 }
 0x3a6   :  { %v312_v43 = vpop.f32.mrf.mxu1 }
 0x3a7   :  { %v383_v45 = vsel %vm124_vm1, %v312_v43, %v2371_v42  ;;  %v2316_v42 = vld [vmem:[#allocation2 + $0x50] sm:$0xff] }
 0x3a8   :  { %v384_v46 = vpack.c.bf16 %v383_v45, %v252_v44  ;;  %789 = vmatpush.bf16.msrb.mxu3 %v2316_v42 }
 0x3aa   :  { %2055 = vmatmul.msk.bf16.vlgmr.msra.gmra.mxu0 %vm102_vm0, %v384_v46  ;;  %v2385_v46 = vld [vmem:[%s3090_s8] ss:$0 sm:$0xff] }
 0x3ab   :  { %870 = vmatpush.bf16.msra.mxu0 %v2321_v39 }
 0x3ae   :  { %v314_v47 = vpop.f32.mrf.mxu1 }
 0x427   :  { %v417_v50 = vpop.f32.mrf.mxu0 }
 0x428   :  { %v418_v51 = vadd.f32 %v2384_v49, %v417_v50  ;;  %v2386_v50 = vld [vmem:[%s3091_s9] ss:$0 sm:$0xff] }
 0x42a   :  { %v422_v52 = vadd.f32 %v418_v51, %v2629_v2  ;;  %v434_v2 = vsub.f32 1.0, %v433_v62 }
 0x42c   :  { %v426_v53 = vsel %vm102_vm0, %v422_v52, 0.0  ;;  %v435_v63 = vmul.f32 %v2418_v61, %v434_v2 }
 0x42d   :  { %427 = vadd.xlane.f32.xlu1 %v426_v53 }
 0x42e   :  { %v436_v0 = vadd.f32 %v2418_v61, %v435_v63 }
 0x42f   :  { %v419_v54 = vpop.f32.mrf.mxu0 }
 0x430   :  { %v420_v55 = vadd.f32 %v2384_v49, %v419_v54  ;;  %v2728_v1 = vsel %vm437_vm4, %v2418_v61, %v436_v0  ;;  %vm839_vm4 = vcmask 1040384  }
 0x432   :  { %v423_v57 = vadd.f32 %v420_v55, %v2634_v3 }
 0x434   :  { %v429_v58 = vsel %vm102_vm0, %v423_v57, 0.0 }
 0x435   :  { %430 = vadd.xlane.f32.xlu0 %v429_v58  ;;  %v2320_v58 = vld [vmem:[#allocation2 + $0x70] sm:$0xff] }
 0x436   :  { %871 = vmatpush.bf16.msra.mxu0 %v2320_v58 }
 0x446   :  { %541 = vperm.xlu1 %2372, %v79_v59  }
 0x4a0   :  { %v428_v4 = vpop.xlane.xlu1 %427 }
 0x4a1   :  { %v439_v3 = vmul.f32 %v2728_v1, %v428_v4 }
 0x4a3   :  { %v2731_v5 = vsub.f32 %v422_v52, %v439_v3 }
 0x4a5   :  { %v443_v6 = vmul.f32 %v2731_v5, %v2731_v5 }
 0x4a7   :  { %v445_v7 = vsel %vm102_vm0, %v443_v6, 0.0 }
 0x4a8   :  { %v431_v9 = vpop.xlane.xlu0 %430  ;;  %446 = vadd.xlane.f32.xlu2 %v445_v7 }
 0x4a9   :  { %v440_v10 = vmul.f32 %v2728_v1, %v431_v9 }
 0x4ab   :  { %v2737_v11 = vsub.f32 %v423_v57, %v440_v10  ;;  %v2318_v57 = vld [vmem:[#allocation2 + $0x60] sm:$0xff] }
 0x4ac   :  { %830 = vmatpush.bf16.msra.mxu2 %v2318_v57 }
 0x4ad   :  { %v444_v8 = vmul.f32 %v2737_v11, %v2737_v11 }
 0x4af   :  { %v448_v12 = vsel %vm102_vm0, %v444_v8, 0.0 }
 0x4b0   :  { %449 = vadd.xlane.f32.xlu1 %v448_v12 }
 0x4b8   :  { %v2745_v15 = vpop.permute.xlu1 %541 }
 0x4c9   :  { %546 = vperm.xlu1 %2372, %v80_v13  }
 0x51b   :  { %v447_v16 = vpop.xlane.xlu2 %446 }
 0x51c   :  { %v451_v17 = vmul.f32 %v447_v16, %v2728_v1 }
 0x51e   :  { %v453_v18 = vadd.f32 1e-06, %v451_v17 }
 0x520   :  { %2419 = vrsqrt.f32 %v453_v18  ;;  %vm461_vm6 = vweird.f32 %v453_v18 }
 0x523   :  { %v450_v24 = vpop.xlane.xlu1 %449 }
 0x524   :  { %v452_v25 = vmul.f32 %v450_v24, %v2728_v1 }
 0x526   :  { %v2420_v29 = vpop.eup %2419  ;;  %v454_v31 = vadd.f32 1e-06, %v452_v25 }
 0x527   :  { %v456_v32 = vmul.f32 %v2420_v29, %v453_v18  ;;  %vm462_vm5 = vweird.f32 %v2420_v29 }
 0x528   :  { %2421 = vrsqrt.f32 %v454_v31  ;;  %vm463_vm7 = vmor %vm461_vm6, %vm462_vm5  ;;  %vm471_vm9 = vweird.f32 %v454_v31  ;;  %vm3104_vm5 = vcmask 523264  }
 0x529   :  { %v457_v33 = vmul.f32 %v2420_v29, %v456_v32  ;;  %v2323_v32 = vld [vmem:[#allocation2 + $0x88] sm:$0xff] }
 0x52b   :  { %v458_v34 = vmul.f32 0.5, %v457_v33 }
 0x52d   :  { %v459_v40 = vsub.f32 1.5, %v458_v34 }
 0x52e   :  { %v2422_v43 = vpop.eup %2421 }
 0x52f   :  { %v460_v44 = vmul.f32 %v2420_v29, %v459_v40  ;;  %v466_v45 = vmul.f32 %v2422_v43, %v454_v31  ;;  %vm472_vm8 = vweird.f32 %v2422_v43 }
 0x530   :  { %vm473_vm10 = vmor %vm471_vm9, %vm472_vm8 }
 0x531   :  { %v464_v47 = vsel %vm463_vm7, %v2420_v29, %v460_v44  ;;  %v467_v48 = vmul.f32 %v2422_v43, %v466_v45 }
 0x532   :  { %v475_v49 = vmul.f32 %v464_v47, %v2731_v5 }
 0x533   :  { %v468_v51 = vmul.f32 0.5, %v467_v48 }
 0x534   :  { %v480_v52 = vmul.f32 %v2385_v46, %v475_v49 }
 0x535   :  { %v469_v53 = vsub.f32 1.5, %v468_v51 }
 0x536   :  { %v2756_v54 = vadd.f32 %v2386_v50, %v480_v52 }
 0x537   :  { %v470_v55 = vmul.f32 %v2422_v43, %v469_v53 }
 0x538   :  { %v549_v59 = vmul.f32 %v2745_v15, %v2756_v54 }
 0x539   :  { %v474_v60 = vsel %vm473_vm10, %v2422_v43, %v470_v55 }
 0x53a   :  { %v476_v61 = vmul.f32 %v474_v60, %v2737_v11  ;;  %v553_v2 = vrot.slane %v549_v59, 4 }
 0x53b   :  { %v2763_v0 = vpop.permute.xlu1 %546 }
 0x53c   :  { %v481_v62 = vmul.f32 %v2385_v46, %v476_v61  ;;  %v2766_v4 = vsel %vm168_vm3, 0.0, %v553_v2  ;;  %v2769_v3 = vsel %vm168_vm3, %v553_v2, 0.0 }
 0x53d   :  { %v566_v7 = vrot.slane %v2766_v4, 1  ;;  %v567_v9 = vrot.slane %v2769_v3, 1  ;;  %v636_v10 = vrot.slane %v2766_v4, 2  ;;  %v637_v11 = vrot.slane %v2769_v3, 2 }
 0x53e   :  { %v2761_v63 = vadd.f32 %v2386_v50, %v481_v62  ;;  %v677_v13 = vrot.slane %v2766_v4, 3  ;;  %v678_v14 = vrot.slane %v2769_v3, 3  ;;  %v758_v39 = vrot.slane %v2766_v4, 5 }
 0x53f   :  { %v568_v24 = vsel %vm565_vm11, %v566_v7, %v567_v9  ;;  %v638_v26 = vsel %vm635_vm12, %v636_v10, %v637_v11  ;;  %v759_v40 = vrot.slane %v2769_v3, 5  ;;  %v717_v48 = vrot.slane %v2766_v4, 4 }
 0x540   :  { %v550_v5 = vmul.f32 %v2763_v0, %v2761_v63  ;;  %v679_v29 = vsel %vm676_vm13, %v677_v13, %v678_v14  ;;  %v718_v49 = vrot.slane %v2769_v3, 4  ;;  %v799_v50 = vrot.slane %v2766_v4, 6 }
 0x541   :  { %v760_v51 = vsel %vm757_vm14, %v758_v39, %v759_v40  ;;  %v800_v52 = vrot.slane %v2769_v3, 6  ;;  %v840_v53 = vrot.slane %v2766_v4, 7  ;;  %v841_v55 = vrot.slane %v2769_v3, 7 }
 0x542   :  { %v558_v6 = vrot.slane %v550_v5, 4  ;;  %v719_v61 = vsel %vm168_vm3, %v717_v48, %v718_v49 }
 0x543   :  { %v801_v2 = vsel %vm798_vm15, %v799_v50, %v800_v52 }
 0x544   :  { %v560_v8 = vsel %vm168_vm3, 0.0, %v558_v6  ;;  %v2779_v12 = vsel %vm168_vm3, %v558_v6, 0.0 }
 0x545   :  { %v562_v16 = vpack.c.bf16 %v560_v8, %v2766_v4  ;;  %v572_v17 = vrot.slane %v560_v8, 1  ;;  %v573_v18 = vrot.slane %v2779_v12, 1  ;;  %v640_v19 = vrot.slane %v560_v8, 2 }
 0x546   :  { %v641_v20 = vrot.slane %v2779_v12, 2  ;;  %v681_v21 = vrot.slane %v560_v8, 3  ;;  %v682_v22 = vrot.slane %v2779_v12, 3  ;;  %v762_v37 = vrot.slane %v560_v8, 5 }
 0x547   :  { %2073 = vmatmul.msk.bf16.vlgmr.msra.gmra.mxu3 %vm102_vm0, %v562_v16  ;;  %v574_v25 = vsel %vm565_vm11, %v572_v17, %v573_v18  ;;  %v763_v38 = vrot.slane %v2779_v12, 5  ;;  %v721_v41 = vrot.slane %v560_v8, 4  ;;  %v722_v42 = vrot.slane %v2779_v12, 4  ;;  %v2326_v16 = vld [vmem:[%s3094_s12 + $0x10] sm:$0xff] }
 0x548   :  { %v576_v27 = vpack.c.bf16 %v574_v25, %v568_v24  ;;  %v642_v28 = vsel %vm635_vm12, %v640_v19, %v641_v20  ;;  %v683_v31 = vsel %vm676_vm13, %v681_v21, %v682_v22  ;;  %v803_v43 = vrot.slane %v560_v8, 6  ;;  %v2325_v20 = vld [vmem:[%s3094_s12 + $0x8] sm:$0xff]  ;;  %v2324_v24 = vld [vmem:[%s3094_s12] sm:$0xff] }
 0x549   :  { %v644_v33 = vpack.c.bf16 %v642_v28, %v638_v26  ;;  %v685_v34 = vpack.c.bf16 %v683_v31, %v679_v29  ;;  %v764_v44 = vsel %vm757_vm14, %v762_v37, %v763_v38  ;;  %v804_v45 = vrot.slane %v2779_v12, 6 }
 0x54a   :  { %2064 = vmatmul.msk.bf16.vlgmr.msra.gmra.mxu1 %vm102_vm0, %v576_v27  ;;  %v844_v46 = vrot.slane %v560_v8, 7  ;;  %v845_v47 = vrot.slane %v2779_v12, 7  ;;  %v766_v57 = vpack.c.bf16 %v764_v44, %v760_v51  ;;  %v723_v58 = vsel %vm168_vm3, %v721_v41, %v722_v42  ;;  %v2327_v8 = vld [vmem:[%s3094_s12 + $0x18] sm:$0xff] }
 0x54b   :  { %2082 = vmatmul.msk.bf16.vlgmr.msrb.gmra.mxu2 %vm102_vm0, %v644_v33  ;;  %2091 = vmatmul.msk.bf16.vlgmr.msrb.gmra.mxu0 %vm102_vm0, %v685_v34  ;;  %v805_v59 = vsel %vm798_vm15, %v803_v43, %v804_v45  ;;  %v725_v62 = vpack.c.bf16 %v723_v58, %v719_v61  ;;  %v842_v4 = vsel %vm839_vm4, %v840_v53, %v841_v55  ;;  %v2387_v45 = vld [vmem:[%s3093_s11] ss:$0 sm:$0xff] }
 0x54c   :  { %902 = vmatpush.bf16.msra.mxu1 %v2323_v32  ;;  %v846_v60 = vsel %vm839_vm4, %v844_v46, %v845_v47  ;;  %v807_v5 = vpack.c.bf16 %v805_v59, %v801_v2  ;;  %v880_v7 = vpack.c.bf16 %v2779_v12, %v2769_v3  ;;  %958 = vmatpush.bf16.msra.mxu3 %v2327_v8  ;;  %v2388_v59 = vld [vmem:[%s3095_s13] ss:$0 sm:$0xff] }
 0x54d   :  { %v848_v6 = vpack.c.bf16 %v846_v60, %v842_v4 }
 0x550   :  { %903 = vmatpush.bf16.msra.mxu1 %v2322_v35  ;;  %959 = vmatpush.bf16.msra.mxu3 %v2326_v16 }
 0x554   :  { %960 = vmatpush.bf16.msra.mxu3 %v2325_v20  ;;  %v2328_v20 = vld [vmem:[%s3086_s4 + $0x10] sm:$0xff] }
 0x557   :  { %2109 = vmatmul.msk.bf16.vlgmr.msrb.gmra.mxu3 %vm102_vm0, %v766_v57 }
 0x558   :  { %961 = vmatpush.bf16.msra.mxu3 %v2324_v24 }
 0x55a   :  { %2100 = vmatmul.msk.bf16.vlgmr.msrb.gmra.mxu1 %vm102_vm0, %v725_v62 }
 0x55b   :  { %2118 = vmatmul.msk.bf16.vlgmr.msra.gmra.mxu2 %vm102_vm0, %v807_v5  ;;  %2127 = vmatmul.msk.bf16.vlgmr.msra.gmra.mxu0 %vm102_vm0, %v848_v6 }
 0x56a   :  { %2136 = vmatmul.msk.bf16.vlgmr.msra.gmra.mxu1 %vm102_vm0, %v880_v7 }
 0x5c7   :  { %v601_v9 = vpop.f32.mrf.mxu1 }
 0x5c8   :  { %v710_v13 = vpop.f32.mrf.mxu0 }
 0x5ca   :  { %v630_v10 = vpop.f32.mrf.mxu3 }
 0x5cb   :  { %v631_v17 = vadd.f32 %v630_v10, %v601_v9 }
 0x5ce   :  { %v669_v11 = vpop.f32.mrf.mxu2 }
 0x5cf   :  { %v603_v14 = vpop.f32.mrf.mxu1  ;;  %v674_v3 = vadd.f32 %v669_v11, %v631_v17 }
 0x5d0   :  { %v712_v22 = vpop.f32.mrf.mxu0 }
 0x5d1   :  { %v715_v25 = vadd.f32 %v710_v13, %v674_v3 }
 0x5d2   :  { %v632_v18 = vpop.f32.mrf.mxu3 }
 0x5d3   :  { %v633_v21 = vadd.f32 %v632_v18, %v603_v14 }
 0x5d6   :  { %v671_v12 = vpop.f32.mrf.mxu2 }
 0x5d7   :  { %v750_v19 = vpop.f32.mrf.mxu1  ;;  %v675_v27 = vadd.f32 %v671_v12, %v633_v21 }
 0x5d8   :  { %v755_v28 = vadd.f32 %v750_v19, %v715_v25  ;;  %v873_v35 = vpop.f32.mrf.mxu0  ;;  %v2329_v19 = vld [vmem:[%s3086_s4 + $0x18] sm:$0xff] }
 0x5d9   :  { %v716_v33 = vadd.f32 %v712_v22, %v675_v27  ;;  %1058 = vmatpush.bf16.msrb.mxu2 %v2329_v19 }
 0x5da   :  { %v791_v26 = vpop.f32.mrf.mxu3 }
 0x5db   :  { %v796_v32 = vadd.f32 %v791_v26, %v755_v28 }
 0x5dd   :  { %1059 = vmatpush.bf16.msrb.mxu2 %v2328_v20 }
 0x5de   :  { %v832_v29 = vpop.f32.mrf.mxu2 }
 0x5df   :  { %v752_v31 = vpop.f32.mrf.mxu1  ;;  %v837_v38 = vadd.f32 %v832_v29, %v796_v32 }
 0x5e0   :  { %v756_v34 = vadd.f32 %v752_v31, %v716_v33  ;;  %v875_v46 = vpop.f32.mrf.mxu0 }
 0x5e1   :  { %v878_v42 = vadd.f32 %v873_v35, %v837_v38 }
 0x5e2   :  { %v793_v37 = vpop.f32.mrf.mxu3 }
 0x5e3   :  { %v797_v39 = vadd.f32 %v793_v37, %v756_v34 }
 0x5e6   :  { %v834_v40 = vpop.f32.mrf.mxu2 }
 0x5e7   :  { %v905_v41 = vpop.f32.mrf.mxu1  ;;  %v838_v43 = vadd.f32 %v834_v40, %v797_v39  ;;  %v2389_v39 = vld [vmem:[%s3096_s14] ss:$0 sm:$0xff] }
 0x5e8   :  { %v910_v44 = vadd.f32 %v905_v41, %v878_v42 }
 0x5e9   :  { %v879_v48 = vadd.f32 %v875_v46, %v838_v43  ;;  %v2390_v43 = vld [vmem:[%s3097_s15] ss:$0 sm:$0xff] }
 0x5ea   :  { %v915_v47 = vadd.f32 %v2387_v45, %v910_v44 }
 0x5ec   :  { %v917_v51 = vmax.f32 %v915_v47, 0.0 }
 0x5ee   :  { %v919_v55 = vmul.f32 %v917_v51, %v2745_v15 }
 0x5ef   :  { %v907_v49 = vpop.f32.mrf.mxu1 }
 0x5f0   :  { %v911_v50 = vadd.f32 %v907_v49, %v879_v48 }
 0x5f2   :  { %v916_v52 = vadd.f32 %v2387_v45, %v911_v50  ;;  %v2391_v50 = vld [vmem:[%s3087_s5 + $0x1] ss:$0 sm:$0xff]  ;;  %s3111_s5 = sld [smem:[#allocation9_spill]] }
 0x5f4   :  { %v918_v53 = vmax.f32 %v916_v52, 0.0 }
 0x5f6   :  { %v920_v57 = vmul.f32 %v918_v53, %v2763_v0 }
 0x5f8   :  { %v922_v58 = vpack.c.bf16 %v920_v57, %v919_v55 }
 0x5fa   :  { %2153 = vmatmul.msk.bf16.vlgmr.msra.gmra.mxu3 %vm3104_vm5, %v922_v58 }
 0x67d   :  { %v963_v60 = vpop.f32.mrf.mxu3 }
 0x67e   :  { %v964_v61 = vadd.f32 %v2388_v59, %v963_v60 }
 0x680   :  { %v968_v62 = vadd.f32 %v964_v61, %v2756_v54 }
 0x682   :  { %v972_v2 = vsel %vm102_vm0, %v968_v62, 0.0 }
 0x683   :  { %973 = vadd.xlane.f32.xlu0 %v972_v2 }
 0x685   :  { %v965_v4 = vpop.f32.mrf.mxu3 }
 0x686   :  { %v966_v5 = vadd.f32 %v2388_v59, %v965_v4 }
 0x688   :  { %v969_v6 = vadd.f32 %v966_v5, %v2761_v63 }
 0x68a   :  { %v975_v7 = vsel %vm102_vm0, %v969_v6, 0.0 }
 0x68b   :  { %976 = vadd.xlane.f32.xlu2 %v975_v7 }
 0x6f6   :  { %v974_v9 = vpop.xlane.xlu0 %973 }
 0x6f7   :  { %v978_v10 = vmul.f32 %v974_v9, %v2728_v1 }
 0x6f9   :  { %v980_v11 = vsub.f32 %v968_v62, %v978_v10 }
 0x6fb   :  { %v982_v8 = vmul.f32 %v980_v11, %v980_v11 }
 0x6fd   :  { %v984_v13 = vsel %vm102_vm0, %v982_v8, 0.0 }
 0x6fe   :  { %v977_v14 = vpop.xlane.xlu2 %976  ;;  %985 = vadd.xlane.f32.xlu1 %v984_v13 }
 0x6ff   :  { %v979_v54 = vmul.f32 %v977_v14, %v2728_v1 }
 0x701   :  { %v981_v16 = vsub.f32 %v969_v6, %v979_v54 }
 0x703   :  { %v983_v17 = vmul.f32 %v981_v16, %v981_v16 }
 0x705   :  { %v987_v18 = vsel %vm102_vm0, %v983_v17, 0.0 }
 0x706   :  { %988 = vadd.xlane.f32.xlu0 %v987_v18 }
 0x771   :  { %v986_v63 = vpop.xlane.xlu1 %985 }
 0x772   :  { %v990_v3 = vmul.f32 %v986_v63, %v2728_v1 }
 0x774   :  { %v992_v12 = vadd.f32 1e-06, %v990_v3 }
 0x776   :  { %2423 = vrsqrt.f32 %v992_v12  ;;  %vm1000_vm7 = vweird.f32 %v992_v12 }
 0x779   :  { %v989_v21 = vpop.xlane.xlu0 %988 }
 0x77a   :  { %v991_v22 = vmul.f32 %v989_v21, %v2728_v1 }
 0x77c   :  { %v2424_v24 = vpop.eup %2423  ;;  %v993_v25 = vadd.f32 1e-06, %v991_v22 }
 0x77d   :  { %v995_v26 = vmul.f32 %v2424_v24, %v992_v12  ;;  %vm1001_vm6 = vweird.f32 %v2424_v24 }
 0x77e   :  { %2425 = vrsqrt.f32 %v993_v25  ;;  %vm1002_vm8 = vmor %vm1000_vm7, %vm1001_vm6  ;;  %vm1010_vm10 = vweird.f32 %v993_v25 }
 0x77f   :  { %v996_v27 = vmul.f32 %v2424_v24, %v995_v26 }
 0x781   :  { %v997_v28 = vmul.f32 0.5, %v996_v27 }
 0x783   :  { %v998_v29 = vsub.f32 1.5, %v997_v28 }
 0x784   :  { %v2426_v31 = vpop.eup %2425 }
 0x785   :  { %v999_v32 = vmul.f32 %v2424_v24, %v998_v29  ;;  %v1005_v33 = vmul.f32 %v2426_v31, %v993_v25  ;;  %vm1011_vm9 = vweird.f32 %v2426_v31 }
 0x786   :  { %vm1012_vm5 = vmor %vm1010_vm10, %vm1011_vm9 }
 0x787   :  { %v1006_v34 = vmul.f32 %v2426_v31, %v1005_v33  ;;  %v1003_v35 = vsel %vm1002_vm8, %v2424_v24, %v999_v32 }
 0x788   :  { %v1014_v40 = vmul.f32 %v1003_v35, %v980_v11 }
 0x789   :  { %v1007_v37 = vmul.f32 0.5, %v1006_v34 }
 0x78a   :  { %v1019_v44 = vmul.f32 %v2389_v39, %v1014_v40 }
 0x78b   :  { %v1008_v38 = vsub.f32 1.5, %v1007_v37 }
 0x78c   :  { %v2867_v47 = vadd.f32 %v2390_v43, %v1019_v44 }
 0x78d   :  { %v1009_v41 = vmul.f32 %v2426_v31, %v1008_v38 }
 0x78f   :  { %v1013_v42 = vsel %vm1012_vm5, %v2426_v31, %v1009_v41 }
 0x790   :  { %v1015_v45 = vmul.f32 %v1013_v42, %v981_v16 }
 0x792   :  { %v1020_v46 = vmul.f32 %v2389_v39, %v1015_v45 }
 0x794   :  { %v2869_v48 = vadd.f32 %v2390_v43, %v1020_v46 }
 0x796   :  { %v1026_v49 = vpack.c.bf16 %v2869_v48, %v2867_v47 }
 0x798   :  { %2167 = vmatmul.msk.bf16.vlgmr.msrb.gmra.mxu2 %vm102_vm0, %v1026_v49 }
 0x81b   :  { %v1061_v51 = vpop.f32.mrf.mxu2 }
 0x81c   :  { %v1062_v52 = vadd.f32 %v2391_v50, %v1061_v51 }
 0x81e   :  { %v2877_v53 = vpack.c.bf16 %v1062_v52, %v1062_v52 }
 0x820   :  { %1124 = vrot.lane.b32.xlu0 %v2877_v53, %s2510_s29  ;;  %1126 = vrot.lane.b32.xlu2 %v2877_v53, %s2512_s0 }
 0x823   :  { %v1063_v55 = vpop.f32.mrf.mxu2 }
 0x824   :  { %v1064_v57 = vadd.f32 %v2391_v50, %v1063_v55 }
 0x826   :  { %v2883_v58 = vpack.c.bf16 %v1064_v57, %v1064_v57 }
 0x828   :  { %1245 = vrot.lane.b32.xlu0 %v2883_v58, %s2510_s29  ;;  %1247 = vrot.lane.b32.xlu2 %v2883_v58, %s2512_s0 }
 0x830   :  { %1189 = vrot.lane.b32.xlu0 %v2883_v58, %s2511_s30  ;;  %1068 = vrot.lane.b32.xlu2 %v2877_v53, %s2511_s30 }
 0x87a   :  { %v1127_v59 = vpop.permute.xlu2 %1126 }
 0x87b   :  { %v1132_v60 = vsel %vm124_vm1, %v1127_v59, 0 }
 0x87c   :  { %1141 = vmatpush.bf16.xpose.msrb.mxu3 %v1132_v60 }
 0x882   :  { %v1248_v61 = vpop.permute.xlu2 %1247 }
 0x883   :  { %v1253_v62 = vsel %vm124_vm1, %v1248_v61, 0 }
 0x884   :  { %1262 = vmatpush.bf16.xpose.msra.mxu3 %v1253_v62 }
 0x88a   :  { %v1069_v2 = vpop.permute.xlu2 %1068 }
 0x88b   :  { %v1074_v4 = vsel %vm124_vm1, %v1069_v2, 0 }
 0x88c   :  { %1083 = vmatpush.bf16.xpose.msrb.mxu0 %v1074_v4 }
 0x892   :  { %v1125_v5 = vpop.permute.xlu0 %1124 }
 0x893   :  { %2168 = vmatmul.msk.bf16.vlgmr.msrb.gmra.mxu0 %vm124_vm1, %v2877_v53  ;;  %2170 = vmatmul.msk.bf16.vlgmr.msrb.gmra.mxu3 %vm124_vm1, %v1125_v5 }
 0x89a   :  { %v1246_v6 = vpop.permute.xlu0 %1245 }
 0x8a2   :  { %v1190_v7 = vpop.permute.xlu0 %1189 }
 0x8a3   :  { %v1195_v9 = vsel %vm124_vm1, %v1190_v7, 0  ;;  %2174 = vmatmul.msk.bf16.vlgmr.msra.gmra.mxu3 %vm124_vm1, %v1246_v6 }
 0x8a4   :  { %1204 = vmatpush.bf16.xpose.msra.mxu0 %v1195_v9 }
 0x8ab   :  { %2172 = vmatmul.msk.bf16.vlgmr.msra.gmra.mxu0 %vm124_vm1, %v2883_v58 }
 0x910   :  { %v1085_v10 = vpop.f32.mrf.mxu0 }
 0x911   :  { %v1089_v11 = vmul.f32 0.25, %v1085_v10 }
 0x913   :  { %v1090_v8 = vadd.f32 %v2665_v23, %v1089_v11 }
 0x915   :  { %v1091_v13 = vsel %vm150_vm2, %v1090_v8, -inf }
 0x916   :  { %v1143_v14 = vpop.f32.mrf.mxu3  ;;  %1092 = vmax.xlane.f32.xlu0 %v1091_v13 }
 0x917   :  { %v1147_v54 = vmul.f32 0.25, %v1143_v14 }
 0x918   :  { %v1087_v16 = vpop.f32.mrf.mxu0 }
 0x919   :  { %v1148_v17 = vadd.f32 %v2672_v30, %v1147_v54 }
 0x91b   :  { %v1149_v18 = vsel %vm150_vm2, %v1148_v17, -inf }
 0x91c   :  { %1150 = vmax.xlane.f32.xlu1 %v1149_v18 }
 0x91e   :  { %v1145_v63 = vpop.f32.mrf.mxu3 }
 0x926   :  { %v1264_v3 = vpop.f32.mrf.mxu3 }
 0x927   :  { %v1268_v12 = vmul.f32 0.25, %v1264_v3 }
 0x928   :  { %v1206_v19 = vpop.f32.mrf.mxu0 }
 0x929   :  { %v1269_v20 = vadd.f32 %v2681_v36, %v1268_v12  ;;  %v1210_v39 = vmul.f32 0.25, %v1206_v19  ;;  %v2331_v19 = vld [vmem:[%s3088_s6 + $0x18] sm:$0xff] }
 0x92a   :  { %1282 = vrot.lane.b32.xlu0 %v2883_v58, %s2513_s23  ;;  %1340 = vmatpush.bf16.msrb.mxu0 %v2331_v19 }
 0x92b   :  { %v1270_v23 = vsel %vm150_vm2, %v1269_v20, -inf  ;;  %v1211_v40 = vadd.f32 %v2693_v56, %v1210_v39 }
 0x92c   :  { %1271 = vmax.xlane.f32.xlu2 %v1270_v23 }
 0x92d   :  { %v1212_v41 = vsel %vm150_vm2, %v1211_v40, -inf }
 0x92e   :  { %v1266_v21 = vpop.f32.mrf.mxu3 }
 0x930   :  { %v1208_v22 = vpop.f32.mrf.mxu0 }
 0x989   :  { %v1093_v24 = vpop.xlane.xlu0 %1092 }
 0x98a   :  { %v1094_v25 = vsub.f32 %v1090_v8, %v1093_v24 }
 0x98c   :  { %v1095_v30 = vmul.f32 1.442695, %v1094_v25 }
 0x98e   :  { %2427 = vpow2.f32 %v1095_v30 }
 0x98f   :  { %v1151_v26 = vpop.xlane.xlu1 %1150 }
 0x990   :  { %v1152_v27 = vsub.f32 %v1148_v17, %v1151_v26 }
 0x992   :  { %v1153_v28 = vmul.f32 1.442695, %v1152_v27 }
 0x994   :  { %v2428_v29 = vpop.eup %2427  ;;  %2429 = vpow2.f32 %v1153_v28  ;;  %v2392_v28 = vld [vmem:[%s3089_s7 + $0x1] ss:$0 sm:$0xff] }
 0x995   :  { %v1097_v31 = vsel %vm150_vm2, %v2428_v29, 0.0 }
 0x996   :  { %1098 = vadd.xlane.f32.xlu2 %v1097_v31 }
 0x99a   :  { %v2430_v36 = vpop.eup %2429 }
 0x99b   :  { %v1155_v32 = vsel %vm150_vm2, %v2430_v36, 0.0 }
 0x99c   :  { %1156 = vadd.xlane.f32.xlu1 %v1155_v32  ;;  %v1283_v49 = vpop.permute.xlu0 %1282 }
 0x99d   :  { %v1288_v57 = vsel %vm168_vm3, %v1283_v49, 0 }
 0x99f   :  { %v1272_v33 = vpop.xlane.xlu2 %1271 }
 0x9a0   :  { %v1273_v34 = vsub.f32 %v1269_v20, %v1272_v33  ;;  %v2330_v20 = vld [vmem:[%s3088_s6 + $0x10] sm:$0xff] }
 0x9a1   :  { %1341 = vmatpush.bf16.msrb.mxu0 %v2330_v20 }
 0x9a2   :  { %v1274_v35 = vmul.f32 1.442695, %v1273_v34 }
 0x9a4   :  { %2431 = vpow2.f32 %v1274_v35 }
 0x9aa   :  { %v2432_v37 = vpop.eup %2431 }
 0x9ab   :  { %v1276_v38 = vsel %vm150_vm2, %v2432_v37, 0.0 }
 0x9ac   :  { %1277 = vadd.xlane.f32.xlu2 %v1276_v38 }
 0x9b5   :  { %1161 = vrot.lane.b32.xlu1 %v2877_v53, %s2513_s23 }
 0x9c4   :  { %1103 = vrot.lane.b32.xlu2 %v2877_v53, %s2508_s19 }
 0x9df   :  { %1213 = vmax.xlane.f32.xlu1 %v1212_v41 }
 0x9f8   :  { %1224 = vrot.lane.b32.xlu1 %v2883_v58, %s2508_s19 }
 0xa09   :  { %v1099_v42 = vpop.xlane.xlu2 %1098 }
 0xa0a   :  { %2433 = vrcp.f32 %v1099_v42 }
 0xa0f   :  { %v1157_v43 = vpop.xlane.xlu1 %1156 }
 0xa10   :  { %2435 = vrcp.f32 %v1157_v43  ;;  %v2434_v45 = vpop.eup %2433 }
 0xa11   :  { %v1101_v50 = vmul.f32 %v2434_v45, %v2428_v29 }
 0xa13   :  { %v1102_v58 = vpack.c.bf16 %v1101_v50, %v1101_v50 }
 0xa16   :  { %v2436_v46 = vpop.eup %2435 }
 0xa17   :  { %v1159_v51 = vmul.f32 %v2436_v46, %v2430_v36 }
 0xa19   :  { %v1160_v59 = vpack.c.bf16 %v1159_v51, %v1159_v51 }
 0xa1f   :  { %v1278_v44 = vpop.xlane.xlu2 %1277 }
 0xa20   :  { %2437 = vrcp.f32 %v1278_v44 }
 0xa26   :  { %v2438_v60 = vpop.eup %2437 }
 0xa27   :  { %v1162_v52 = vpop.permute.xlu1 %1161  ;;  %v1104_v53 = vpop.permute.xlu2 %1103  ;;  %v1280_v61 = vmul.f32 %v2438_v60, %v2432_v37  ;;  %v2334_v60 = vld [vmem:[#allocation2 + $0xa0] sm:$0xff] }
 0xa28   :  { %v1167_v56 = vsel %vm168_vm3, %v1162_v52, 0  ;;  %v1109_v55 = vsel %vm168_vm3, %v1104_v53, 0  ;;  %v2335_v53 = vld [vmem:[#allocation2 + $0xa8] sm:$0xff] }
 0xa29   :  { %1118 = vmatpush.bf16.msrb.mxu1 %v1109_v55  ;;  %1176 = vmatpush.bf16.msra.mxu2 %v1167_v56  ;;  %v1281_v62 = vpack.c.bf16 %v1280_v61, %v1280_v61  ;;  %v2333_v56 = vld [vmem:[#allocation2 + $0x98] sm:$0xff]  ;;  %v2332_v61 = vld [vmem:[#allocation2 + $0x90] sm:$0xff] }
 0xa2a   :  { %v2337_v55 = vld [vmem:[#allocation2 + $0xb8] sm:$0xff]  ;;  %1540 = vmatpush.bf16.msrb.mxu3 %v2333_v56 }
 0xa2c   :  { %2169 = vmatmul.msk.bf16.vlgmr.msrb.gmra.mxu1 %vm150_vm2, %v1102_v58  ;;  %2171 = vmatmul.msk.bf16.vlgmr.msra.gmra.mxu2 %vm150_vm2, %v1160_v59 }
 0xa2d   :  { %1297 = vmatpush.bf16.msrb.mxu2 %v1288_v57  ;;  %v2339_v57 = vld [vmem:[#allocation2 + $0xc8] sm:$0xff] }
 0xa2e   :  { %1618 = vmatpush.bf16.msra.mxu0 %v2339_v57  ;;  %1541 = vmatpush.bf16.msrb.mxu3 %v2332_v61 }
 0xa31   :  { %1578 = vmatpush.bf16.msra.mxu2 %v2337_v55 }
 0xa3c   :  { %2175 = vmatmul.msk.bf16.vlgmr.msrb.gmra.mxu2 %vm150_vm2, %v1281_v62 }
 0xa52   :  { %v1214_v2 = vpop.xlane.xlu1 %1213 }
 0xa53   :  { %v1215_v4 = vsub.f32 %v1211_v40, %v1214_v2  ;;  %v2336_v2 = vld [vmem:[#allocation2 + $0xb0] sm:$0xff] }
 0xa54   :  { %1579 = vmatpush.bf16.msra.mxu2 %v2336_v2  ;;  %v2348_v2 = vld [vmem:[#allocation2 + $0x110] sm:$0xff] }
 0xa55   :  { %v1216_v5 = vmul.f32 1.442695, %v1215_v4  ;;  %v2338_v4 = vld [vmem:[#allocation2 + $0xc0] sm:$0xff] }
 0xa56   :  { %1619 = vmatpush.bf16.msra.mxu0 %v2338_v4 }
 0xa57   :  { %2439 = vpow2.f32 %v1216_v5 }
 0xa5d   :  { %v2440_v6 = vpop.eup %2439 }
 0xa5e   :  { %v1218_v7 = vsel %vm150_vm2, %v2440_v6, 0.0 }
 0xa5f   :  { %1219 = vadd.xlane.f32.xlu0 %v1218_v7  ;;  %v2341_v7 = vld [vmem:[#allocation2 + $0xd8] sm:$0xff] }
 0xa6a   :  { %v1225_v9 = vpop.permute.xlu1 %1224 }
 0xa6b   :  { %v1230_v10 = vsel %vm168_vm3, %v1225_v9, 0  ;;  %v2343_v9 = vld [vmem:[#allocation2 + $0xe8] sm:$0xff] }
 0xa6c   :  { %1239 = vmatpush.bf16.msra.mxu1 %v1230_v10  ;;  %v2345_v10 = vld [vmem:[#allocation2 + $0xf8] sm:$0xff]  ;;  %1698 = vmatpush.bf16.msra.mxu3 %v2343_v9 }
 0xa6d   :  { %1738 = vmatpush.bf16.msrb.mxu2 %v2345_v10 }
 0xa70   :  { %1511 = vmatpush.bf16.msrb.mxu1 %v2335_v53 }
 0xa74   :  { %1512 = vmatpush.bf16.msrb.mxu1 %v2334_v60  ;;  %v2349_v60 = vld [vmem:[#allocation2 + $0x118] sm:$0xff] }
 0xaa9   :  { %v1120_v11 = vpop.f32.mrf.mxu1 }
 0xaaf   :  { %v1178_v8 = vpop.f32.mrf.mxu2 }
 0xab1   :  { %v1122_v13 = vpop.f32.mrf.mxu1 }
 0xab2   :  { %v2340_v13 = vld [vmem:[#allocation2 + $0xd0] sm:$0xff] }
 0xab7   :  { %v1180_v14 = vpop.f32.mrf.mxu2 }
 0xab8   :  { %v2342_v14 = vld [vmem:[#allocation2 + $0xe0] sm:$0xff] }
 0xab9   :  { %1699 = vmatpush.bf16.msra.mxu3 %v2342_v14 }
 0xabf   :  { %v1299_v54 = vpop.f32.mrf.mxu2 }
 0xac0   :  { %v2373_v16 = vpack.i.bf16 %v1299_v54, %v1178_v8 }
 0xac2   :  { %2374 = vrot.lane.b32.xlu2 %v2373_v16, %s2514_s3 }
 0xac7   :  { %v1301_v17 = vpop.f32.mrf.mxu2 }
 0xad2   :  { %v1220_v18 = vpop.xlane.xlu0 %1219 }
 0xad3   :  { %2441 = vrcp.f32 %v1220_v18  ;;  %v2393_v18 = vld [vmem:[%s3090_s8 + $0x1] ss:$0 sm:$0xff]  ;;  %s2518_s8 = smov 128  }
 0xad9   :  { %v2442_v63 = vpop.eup %2441 }
 0xada   :  { %v1222_v3 = vmul.f32 %v2442_v63, %v2440_v6 }
 0xadc   :  { %v1223_v12 = vpack.c.bf16 %v1222_v3, %v1222_v3 }
 0xade   :  { %2173 = vmatmul.msk.bf16.vlgmr.msra.gmra.mxu1 %vm150_vm2, %v1223_v12  ;;  %v2394_v12 = vld [vmem:[%s3091_s9 + $0x1] ss:$0 sm:$0xff]  ;;  %s2519_s9 = smov 8  }
 0xadf   :  { %1658 = vmatpush.bf16.msra.mxu1 %v2341_v7 }
 0xae3   :  { %1659 = vmatpush.bf16.msra.mxu1 %v2340_v13 }
 0xb1c   :  { %v2375_v23 = vpop.permute.xlu2 %2374 }
 0xb1d   :  { %v2376_v21 = vunpack.i.l.bf16 %v2375_v23  ;;  %v2377_v22 = vunpack.i.h.bf16 %v2375_v23 }
 0xb1f   :  { %v1186_v25 = vsel %vm124_vm1, %v1120_v11, %v2376_v21  ;;  %v2347_v11 = vld [vmem:[#allocation2 + $0x108] sm:$0xff] }
 0xb5b   :  { %v1241_v24 = vpop.f32.mrf.mxu1 }
 0xb5c   :  { %v1307_v30 = vsel %vm124_vm1, %v1241_v24, %v2377_v22 }
 0xb5d   :  { %v1308_v26 = vpack.c.bf16 %v1307_v30, %v1186_v25  ;;  %v2344_v25 = vld [vmem:[#allocation2 + $0xf0] sm:$0xff]  ;;  %v2346_v30 = vld [vmem:[#allocation2 + $0x100] sm:$0xff] }
 0xb5e   :  { %1739 = vmatpush.bf16.msrb.mxu2 %v2344_v25 }
 0xb5f   :  { %2189 = vmatmul.msk.bf16.vlgmr.msrb.gmra.mxu0 %vm102_vm0, %v1308_v26 }
 0xb60   :  { %1778 = vmatpush.bf16.msrb.mxu0 %v2347_v11 }
 0xb63   :  { %v1243_v27 = vpop.f32.mrf.mxu1 }
 0xb64   :  { %1779 = vmatpush.bf16.msrb.mxu0 %v2346_v30 }
 0xbdc   :  { %v1343_v29 = vpop.f32.mrf.mxu0 }
 0xbdd   :  { %v1344_v31 = vadd.f32 %v2392_v28, %v1343_v29 }
 0xbdf   :  { %v1348_v36 = vadd.f32 %v1344_v31, %v2867_v47 }
 0xbe1   :  { %v1354_v32 = vsel %vm102_vm0, %v1348_v36, 0.0 }
 0xbe2   :  { %1355 = vadd.xlane.f32.xlu2 %v1354_v32 }
 0xbe4   :  { %v1345_v33 = vpop.f32.mrf.mxu0 }
 0xbe5   :  { %v1346_v34 = vadd.f32 %v2392_v28, %v1345_v33 }
 0xbe7   :  { %v1349_v35 = vadd.f32 %v1346_v34, %v2869_v48 }
 0xbe9   :  { %v1357_v37 = vsel %vm102_vm0, %v1349_v35, 0.0 }
 0xbea   :  { %1358 = vadd.xlane.f32.xlu1 %v1357_v37 }
 0xc55   :  { %v1356_v38 = vpop.xlane.xlu2 %1355 }
 0xc56   :  { %v1360_v39 = vmul.f32 %v1356_v38, %v2728_v1 }
 0xc58   :  { %v1362_v40 = vsub.f32 %v1348_v36, %v1360_v39 }
 0xc5a   :  { %v1364_v41 = vmul.f32 %v1362_v40, %v1362_v40 }
 0xc5c   :  { %v1366_v42 = vsel %vm102_vm0, %v1364_v41, 0.0 }
 0xc5d   :  { %v1359_v43 = vpop.xlane.xlu1 %1358  ;;  %1367 = vadd.xlane.f32.xlu0 %v1366_v42 }
 0xc5e   :  { %v1361_v47 = vmul.f32 %v1359_v43, %v2728_v1 }
 0xc60   :  { %v2951_v44 = vsub.f32 %v1349_v35, %v1361_v47 }
 0xc62   :  { %v1365_v45 = vmul.f32 %v2951_v44, %v2951_v44 }
 0xc64   :  { %v1369_v48 = vsel %vm102_vm0, %v1365_v45, 0.0 }
 0xc65   :  { %1370 = vadd.xlane.f32.xlu0 %v1369_v48 }
 0xcd0   :  { %v1368_v46 = vpop.xlane.xlu0 %1367 }
 0xcd1   :  { %v1372_v49 = vmul.f32 %v1368_v46, %v2728_v1 }
 0xcd3   :  { %v1374_v50 = vadd.f32 1e-06, %v1372_v49 }
 0xcd5   :  { %2443 = vrsqrt.f32 %v1374_v50  ;;  %vm1382_vm2 = vweird.f32 %v1374_v50 }
 0xcd8   :  { %v1371_v51 = vpop.xlane.xlu0 %1370 }
 0xcd9   :  { %v1373_v52 = vmul.f32 %v1371_v51, %v2728_v1 }
 0xcdb   :  { %v2444_v58 = vpop.eup %2443  ;;  %v1375_v59 = vadd.f32 1e-06, %v1373_v52 }
 0xcdc   :  { %v1377_v62 = vmul.f32 %v2444_v58, %v1374_v50  ;;  %vm1383_vm1 = vweird.f32 %v2444_v58 }
 0xcdd   :  { %2445 = vrsqrt.f32 %v1375_v59  ;;  %vm1384_vm5 = vmor %vm1382_vm2, %vm1383_vm1  ;;  %vm1392_vm7 = vweird.f32 %v1375_v59 }
 0xcde   :  { %v1378_v5 = vmul.f32 %v2444_v58, %v1377_v62 }
 0xce0   :  { %v1379_v6 = vmul.f32 0.5, %v1378_v5 }
 0xce2   :  { %v1380_v8 = vsub.f32 1.5, %v1379_v6 }
 0xce3   :  { %v2446_v54 = vpop.eup %2445 }
 0xce4   :  { %v1381_v16 = vmul.f32 %v2444_v58, %v1380_v8  ;;  %v1387_v17 = vmul.f32 %v2446_v54, %v1375_v59  ;;  %vm1393_vm6 = vweird.f32 %v2446_v54 }
 0xce5   :  { %vm1394_vm8 = vmor %vm1392_vm7, %vm1393_vm6 }
 0xce6   :  { %v1385_v63 = vsel %vm1384_vm5, %v2444_v58, %v1381_v16  ;;  %v1388_v3 = vmul.f32 %v2446_v54, %v1387_v17 }
 0xce7   :  { %v1396_v19 = vmul.f32 %v1385_v63, %v1362_v40 }
 0xce8   :  { %v1389_v20 = vmul.f32 0.5, %v1388_v3 }
 0xce9   :  { %v1401_v23 = vmul.f32 %v2393_v18, %v1396_v19 }
 0xcea   :  { %v1390_v21 = vsub.f32 1.5, %v1389_v20 }
 0xceb   :  { %v2964_v22 = vadd.f32 %v2394_v12, %v1401_v23 }
 0xcec   :  { %v1391_v24 = vmul.f32 %v2446_v54, %v1390_v21 }
 0xced   :  { %v1462_v26 = vmul.f32 %v2964_v22, %v2745_v15 }
 0xcee   :  { %v1395_v27 = vsel %vm1394_vm8, %v2446_v54, %v1391_v24 }
 0xcef   :  { %v1397_v28 = vmul.f32 %v1395_v27, %v2951_v44  ;;  %v1467_v29 = vrot.slane %v1462_v26, 4 }
 0xcf1   :  { %v1402_v31 = vmul.f32 %v2393_v18, %v1397_v28  ;;  %v2972_v32 = vsel %vm168_vm3, 0.0, %v1467_v29  ;;  %v2975_v33 = vsel %vm168_vm3, %v1467_v29, 0.0 }
 0xcf2   :  { %v1479_v37 = vrot.slane %v2972_v32, 1  ;;  %v1480_v38 = vrot.slane %v2975_v33, 1  ;;  %v1548_v39 = vrot.slane %v2972_v32, 2  ;;  %v1549_v40 = vrot.slane %v2975_v33, 2 }
 0xcf3   :  { %v2969_v36 = vadd.f32 %v2394_v12, %v1402_v31  ;;  %v1588_v43 = vrot.slane %v2972_v32, 3  ;;  %v1589_v47 = vrot.slane %v2975_v33, 3  ;;  %v1668_v6 = vrot.slane %v2972_v32, 5 }
 0xcf4   :  { %v1481_v52 = vsel %vm565_vm11, %v1479_v37, %v1480_v38  ;;  %v1550_v56 = vsel %vm635_vm12, %v1548_v39, %v1549_v40  ;;  %v1669_v7 = vrot.slane %v2975_v33, 5  ;;  %v1628_v16 = vrot.slane %v2972_v32, 4  ;;  %v2353_v37 = vld [vmem:[%s3094_s12 + $0x38] sm:$0xff]  ;;  %v2352_v40 = vld [vmem:[%s3094_s12 + $0x30] sm:$0xff] }
 0xcf5   :  { %v1463_v34 = vmul.f32 %v2969_v36, %v2763_v0  ;;  %v1590_v58 = vsel %vm676_vm13, %v1588_v43, %v1589_v47  ;;  %v1629_v17 = vrot.slane %v2975_v33, 4  ;;  %v1708_v18 = vrot.slane %v2972_v32, 6 }
 0xcf6   :  { %v1670_v63 = vsel %vm757_vm14, %v1668_v6, %v1669_v7  ;;  %v1709_v3 = vrot.slane %v2975_v33, 6  ;;  %v1748_v12 = vrot.slane %v2972_v32, 7  ;;  %v1749_v19 = vrot.slane %v2975_v33, 7 }
 0xcf7   :  { %v1472_v35 = vrot.slane %v1463_v34, 4  ;;  %v1630_v25 = vsel %vm168_vm3, %v1628_v16, %v1629_v17 }
 0xcf8   :  { %v1710_v26 = vsel %vm798_vm15, %v1708_v18, %v1709_v3  ;;  %v1750_v27 = vsel %vm839_vm4, %v1748_v12, %v1749_v19  ;;  %v2396_v12 = vld [vmem:[%s3095_s13 + $0x1] ss:$0 sm:$0xff] }
 0xcf9   :  { %v1474_v41 = vsel %vm168_vm3, 0.0, %v1472_v35  ;;  %v1475_v42 = vsel %vm168_vm3, %v1472_v35, 0.0 }
 0xcfa   :  { %v1476_v44 = vpack.c.bf16 %v1474_v41, %v2972_v32  ;;  %v1485_v45 = vrot.slane %v1474_v41, 1  ;;  %v1486_v48 = vrot.slane %v1475_v42, 1  ;;  %v1552_v46 = vrot.slane %v1474_v41, 2 }
 0xcfb   :  { %v1553_v49 = vrot.slane %v1475_v42, 2  ;;  %v1592_v50 = vrot.slane %v1474_v41, 3  ;;  %v1593_v51 = vrot.slane %v1475_v42, 3  ;;  %v1672_v4 = vrot.slane %v1474_v41, 5 }
 0xcfc   :  { %2218 = vmatmul.msk.bf16.vlgmr.msrb.gmra.mxu3 %vm102_vm0, %v1476_v44  ;;  %v1487_v53 = vsel %vm565_vm11, %v1485_v45, %v1486_v48  ;;  %v1673_v5 = vrot.slane %v1475_v42, 5  ;;  %v1632_v9 = vrot.slane %v1474_v41, 4  ;;  %v1633_v10 = vrot.slane %v1475_v42, 4  ;;  %v2351_v44 = vld [vmem:[%s3094_s12 + $0x28] sm:$0xff] }
 0xcfd   :  { %v1489_v55 = vpack.c.bf16 %v1487_v53, %v1481_v52  ;;  %v1554_v57 = vsel %vm635_vm12, %v1552_v46, %v1553_v49  ;;  %v1594_v59 = vsel %vm676_vm13, %v1592_v50, %v1593_v51  ;;  %v1712_v11 = vrot.slane %v1474_v41, 6  ;;  %1866 = vmatpush.bf16.msrb.mxu3 %v2353_v37  ;;  %v2350_v46 = vld [vmem:[%s3094_s12 + $0x20] sm:$0xff] }
 0xcfe   :  { %v1556_v61 = vpack.c.bf16 %v1554_v57, %v1550_v56  ;;  %v1596_v62 = vpack.c.bf16 %v1594_v59, %v1590_v58  ;;  %v1674_v8 = vsel %vm757_vm14, %v1672_v4, %v1673_v5  ;;  %v1713_v13 = vrot.slane %v1475_v42, 6 }
 0xcff   :  { %2209 = vmatmul.msk.bf16.vlgmr.msrb.gmra.mxu1 %vm102_vm0, %v1489_v55  ;;  %v1752_v14 = vrot.slane %v1474_v41, 7  ;;  %v1753_v54 = vrot.slane %v1475_v42, 7  ;;  %v1676_v20 = vpack.c.bf16 %v1674_v8, %v1670_v63  ;;  %v1634_v23 = vsel %vm168_vm3, %v1632_v9, %v1633_v10  ;;  %v2395_v9 = vld [vmem:[%s3093_s11 + $0x1] ss:$0 sm:$0xff] }
 0xd00   :  { %2227 = vmatmul.msk.bf16.vlgmr.msra.gmra.mxu2 %vm102_vm0, %v1556_v61  ;;  %2236 = vmatmul.msk.bf16.vlgmr.msra.gmra.mxu0 %vm102_vm0, %v1596_v62  ;;  %v1714_v21 = vsel %vm798_vm15, %v1712_v11, %v1713_v13  ;;  %v1636_v30 = vpack.c.bf16 %v1634_v23, %v1630_v25  ;;  %v1788_v31 = vpack.c.bf16 %v1475_v42, %v2975_v33  ;;  %vm3110_vm3 = vcmask 523264  }
 0xd01   :  { %1810 = vmatpush.bf16.msrb.mxu1 %v2349_v60  ;;  %v1754_v24 = vsel %vm839_vm4, %v1752_v14, %v1753_v54  ;;  %v1716_v28 = vpack.c.bf16 %v1714_v21, %v1710_v26  ;;  %1867 = vmatpush.bf16.msrb.mxu3 %v2352_v40 }
 0xd02   :  { %v1756_v29 = vpack.c.bf16 %v1754_v24, %v1750_v27 }
 0xd05   :  { %1811 = vmatpush.bf16.msrb.mxu1 %v2348_v2  ;;  %1868 = vmatpush.bf16.msrb.mxu3 %v2351_v44 }
 0xd09   :  { %1869 = vmatpush.bf16.msrb.mxu3 %v2350_v46 }
 0xd0c   :  { %2254 = vmatmul.msk.bf16.vlgmr.msra.gmra.mxu3 %vm102_vm0, %v1676_v20 }
 0xd0f   :  { %2245 = vmatmul.msk.bf16.vlgmr.msra.gmra.mxu1 %vm102_vm0, %v1636_v30 }
 0xd10   :  { %2263 = vmatmul.msk.bf16.vlgmr.msrb.gmra.mxu2 %vm102_vm0, %v1716_v28  ;;  %2272 = vmatmul.msk.bf16.vlgmr.msrb.gmra.mxu0 %vm102_vm0, %v1756_v29 }
 0xd1f   :  { %2281 = vmatmul.msk.bf16.vlgmr.msrb.gmra.mxu1 %vm102_vm0, %v1788_v31 }
 0xd7c   :  { %v1514_v32 = vpop.f32.mrf.mxu1 }
 0xd7d   :  { %v1621_v38 = vpop.f32.mrf.mxu0 }
 0xd7f   :  { %v1543_v34 = vpop.f32.mrf.mxu3 }
 0xd80   :  { %v1544_v41 = vadd.f32 %v1543_v34, %v1514_v32 }
 0xd83   :  { %v1581_v35 = vpop.f32.mrf.mxu2 }
 0xd84   :  { %v1516_v39 = vpop.f32.mrf.mxu1  ;;  %v1586_v33 = vadd.f32 %v1581_v35, %v1544_v41 }
 0xd85   :  { %v1623_v48 = vpop.f32.mrf.mxu0 }
 0xd86   :  { %v1626_v49 = vadd.f32 %v1621_v38, %v1586_v33 }
 0xd87   :  { %v1545_v43 = vpop.f32.mrf.mxu3 }
 0xd88   :  { %v1546_v45 = vadd.f32 %v1545_v43, %v1516_v39 }
 0xd8b   :  { %v1583_v42 = vpop.f32.mrf.mxu2 }
 0xd8c   :  { %v1661_v47 = vpop.f32.mrf.mxu1  ;;  %v1587_v51 = vadd.f32 %v1583_v42, %v1546_v45 }
 0xd8d   :  { %v1666_v52 = vadd.f32 %v1661_v47, %v1626_v49  ;;  %v1781_v59 = vpop.f32.mrf.mxu0  ;;  %v2397_v49 = vld [vmem:[%s3096_s14 + $0x1] ss:$0 sm:$0xff] }
 0xd8e   :  { %v1627_v57 = vadd.f32 %v1623_v48, %v1587_v51 }
 0xd8f   :  { %v1701_v50 = vpop.f32.mrf.mxu3 }
 0xd90   :  { %v1706_v55 = vadd.f32 %v1701_v50, %v1666_v52 }
 0xd93   :  { %v1741_v53 = vpop.f32.mrf.mxu2 }
 0xd94   :  { %v1663_v56 = vpop.f32.mrf.mxu1  ;;  %v1746_v61 = vadd.f32 %v1741_v53, %v1706_v55  ;;  %v2398_v53 = vld [vmem:[%s3097_s15 + $0x1] ss:$0 sm:$0xff] }
 0xd95   :  { %v1667_v58 = vadd.f32 %v1663_v56, %v1627_v57  ;;  %v1783_v10 = vpop.f32.mrf.mxu0 }
 0xd96   :  { %v1786_v5 = vadd.f32 %v1781_v59, %v1746_v61 }
 0xd97   :  { %v1703_v60 = vpop.f32.mrf.mxu3 }
 0xd98   :  { %v1707_v62 = vadd.f32 %v1703_v60, %v1667_v58 }
 0xd9b   :  { %v1743_v2 = vpop.f32.mrf.mxu2 }
 0xd9c   :  { %v1813_v4 = vpop.f32.mrf.mxu1  ;;  %v1747_v6 = vadd.f32 %v1743_v2, %v1707_v62 }
 0xd9d   :  { %v1818_v7 = vadd.f32 %v1813_v4, %v1786_v5 }
 0xd9e   :  { %v1787_v8 = vadd.f32 %v1783_v10, %v1747_v6  ;;  %v1992_v6 = vld [vmem:[%s3111_s5] sm:$0xff] }
 0xd9f   :  { %v1823_v11 = vadd.f32 %v2395_v9, %v1818_v7 }
 0xda1   :  { %v1825_v54 = vmax.f32 %v1823_v11, 0.0 }
 0xda3   :  { %v1827_v18 = vmul.f32 %v1825_v54, %v2745_v15 }
 0xda4   :  { %v1815_v13 = vpop.f32.mrf.mxu1 }
 0xda5   :  { %v1819_v14 = vadd.f32 %v1815_v13, %v1787_v8 }
 0xda7   :  { %v1824_v16 = vadd.f32 %v2395_v9, %v1819_v14 }
 0xda9   :  { %v1826_v17 = vmax.f32 %v1824_v16, 0.0 }
 0xdab   :  { %v1828_v63 = vmul.f32 %v1826_v17, %v2763_v0 }
 0xdad   :  { %v1831_v3 = vpack.c.bf16 %v1828_v63, %v1827_v18  ;;  %v1993_v18 = vld [vmem:[%s3111_s5 + $0x8] sm:$0xff] }
 0xdaf   :  { %2299 = vmatmul.msk.bf16.vlgmr.msrb.gmra.mxu3 %vm3110_vm3, %v1831_v3 }
 0xe32   :  { %v1871_v19 = vpop.f32.mrf.mxu3 }
 0xe33   :  { %v1872_v20 = vadd.f32 %v2396_v12, %v1871_v19 }
 0xe35   :  { %v1876_v23 = vadd.f32 %v1872_v20, %v2964_v22 }
 0xe37   :  { %v1882_v21 = vsel %vm102_vm0, %v1876_v23, 0.0 }
 0xe38   :  { %1883 = vadd.xlane.f32.xlu0 %v1882_v21 }
 0xe3a   :  { %v1873_v24 = vpop.f32.mrf.mxu3 }
 0xe3b   :  { %v1874_v25 = vadd.f32 %v2396_v12, %v1873_v24 }
 0xe3d   :  { %v1877_v15 = vadd.f32 %v1874_v25, %v2969_v36 }
 0xe3f   :  { %v1885_v0 = vsel %vm102_vm0, %v1877_v15, 0.0 }
 0xe40   :  { %1886 = vadd.xlane.f32.xlu0 %v1885_v0 }
 0xeab   :  { %v1884_v30 = vpop.xlane.xlu0 %1883 }
 0xeac   :  { %v1888_v26 = vmul.f32 %v1884_v30, %v2728_v1 }
 0xeae   :  { %v1890_v27 = vsub.f32 %v1876_v23, %v1888_v26 }
 0xeb0   :  { %v1892_v28 = vmul.f32 %v1890_v27, %v1890_v27 }
 0xeb2   :  { %v1894_v29 = vsel %vm102_vm0, %v1892_v28, 0.0  ;;  %v2399_v28 = vld [vmem:[%s3098_s16] ss:$0 sm:$0xff]  ;;  %s2517_s16 = smov [#allocation5]  }
 0xeb3   :  { %1895 = vadd.xlane.f32.xlu2 %v1894_v29  ;;  %v1887_v31 = vpop.xlane.xlu0 %1886  ;;  %s2012_s7 = sshll.u32 %s2517_s16, 4  ;;  %s2013_s7 = int_to_ptr.vmem [resolvable:$true] %s2012_s7 }
 0xeb4   :  { %v1889_v22 = vmul.f32 %v1887_v31, %v2728_v1 }
 0xeb6   :  { %v1891_v32 = vsub.f32 %v1877_v15, %v1889_v22  ;;  %v2400_v22 = vld [vmem:[%s3099_s17] ss:$0 sm:$0xff]  ;;  %s2014_s17 = sshll.u32 %s3100_s18, 4  ;;  %s2015_s17 = int_to_ptr.hbm [resolvable:$true] %s2014_s17 }
 0xeb8   :  { %v1893_v34 = vmul.f32 %v1891_v32, %v1891_v32 }
 0xeba   :  { %v1897_v35 = vsel %vm102_vm0, %v1893_v34, 0.0 }
 0xebb   :  { %1898 = vadd.xlane.f32.xlu0 %v1897_v35 }
 0xf26   :  { %v1896_v36 = vpop.xlane.xlu2 %1895 }
 0xf27   :  { %v1900_v37 = vmul.f32 %v1896_v36, %v2728_v1 }
 0xf29   :  { %v1902_v38 = vadd.f32 1e-06, %v1900_v37 }
 0xf2b   :  { %2447 = vrsqrt.f32 %v1902_v38  ;;  %vm1910_vm12 = vweird.f32 %v1902_v38 }
 0xf2e   :  { %v1899_v39 = vpop.xlane.xlu0 %1898 }
 0xf2f   :  { %v1901_v40 = vmul.f32 %v1899_v39, %v2728_v1 }
 0xf31   :  { %v2448_v41 = vpop.eup %2447  ;;  %v1903_v43 = vadd.f32 1e-06, %v1901_v40 }
 0xf32   :  { %v1905_v33 = vmul.f32 %v2448_v41, %v1902_v38  ;;  %vm1911_vm11 = vweird.f32 %v2448_v41 }
 0xf33   :  { %2449 = vrsqrt.f32 %v1903_v43  ;;  %vm1912_vm13 = vmor %vm1910_vm12, %vm1911_vm11  ;;  %vm1920_vm15 = vweird.f32 %v1903_v43 }
 0xf34   :  { %v1906_v42 = vmul.f32 %v2448_v41, %v1905_v33 }
 0xf36   :  { %v1907_v47 = vmul.f32 0.5, %v1906_v42 }
 0xf38   :  { %v1908_v44 = vsub.f32 1.5, %v1907_v47 }
 0xf39   :  { %v2450_v45 = vpop.eup %2449 }
 0xf3a   :  { %v1909_v48 = vmul.f32 %v2448_v41, %v1908_v44  ;;  %v1915_v46 = vmul.f32 %v2450_v45, %v1903_v43  ;;  %vm1921_vm14 = vweird.f32 %v2450_v45 }
 0xf3b   :  { %vm1922_vm4 = vmor %vm1920_vm15, %vm1921_vm14 }
 0xf3c   :  { %v1916_v50 = vmul.f32 %v2450_v45, %v1915_v46  ;;  %v1913_v51 = vsel %vm1912_vm13, %v2448_v41, %v1909_v48 }
 0xf3d   :  { %v1924_v52 = vmul.f32 %v1913_v51, %v1890_v27 }
 0xf3e   :  { %v1917_v56 = vmul.f32 0.5, %v1916_v50 }
 0xf3f   :  { %v1929_v55 = vmul.f32 %v2397_v49, %v1924_v52 }
 0xf40   :  { %v1918_v57 = vsub.f32 1.5, %v1917_v56 }
 0xf41   :  { %v1934_v58 = vadd.f32 %v2398_v53, %v1929_v55 }
 0xf42   :  { %v1919_v59 = vmul.f32 %v2450_v45, %v1918_v57 }
 0xf43   :  { %v1938_v60 = vsel %vm102_vm0, %v1934_v58, 0.0 }
 0xf44   :  { %1939 = vadd.xlane.f32.xlu2 %v1938_v60  ;;  %v1923_v61 = vsel %vm1922_vm4, %v2450_v45, %v1919_v59 }
 0xf45   :  { %v1925_v62 = vmul.f32 %v1923_v61, %v1891_v32 }
 0xf47   :  { %v1930_v2 = vmul.f32 %v2397_v49, %v1925_v62 }
 0xf49   :  { %v1935_v4 = vadd.f32 %v2398_v53, %v1930_v2 }
 0xf4b   :  { %v1941_v5 = vsel %vm102_vm0, %v1935_v4, 0.0 }
 0xf4c   :  { %1942 = vadd.xlane.f32.xlu1 %v1941_v5 }
 0xf65   :  { %1996 = vperm.xlu1 %2372, %v1992_v6  }
 0xfb7   :  { %v1940_v7 = vpop.xlane.xlu2 %1939 }
 0xfb8   :  { %v1944_v9 = vmul.f32 %v1940_v7, %v2728_v1 }
 0xfba   :  { %v1946_v10 = vsub.f32 %v1934_v58, %v1944_v9 }
 0xfbc   :  { %v1948_v11 = vmul.f32 %v1946_v10, %v1946_v10 }
 0xfbe   :  { %v1950_v8 = vsel %vm102_vm0, %v1948_v11, 0.0 }
 0xfbf   :  { %1951 = vadd.xlane.f32.xlu0 %v1950_v8  ;;  %v1943_v13 = vpop.xlane.xlu1 %1942 }
 0xfc0   :  { %v1945_v14 = vmul.f32 %v1943_v13, %v2728_v1 }
 0xfc2   :  { %v1947_v54 = vsub.f32 %v1935_v4, %v1945_v14 }
 0xfc4   :  { %v1949_v16 = vmul.f32 %v1947_v54, %v1947_v54 }
 0xfc6   :  { %v1953_v17 = vsel %vm102_vm0, %v1949_v16, 0.0 }
 0xfc7   :  { %1954 = vadd.xlane.f32.xlu2 %v1953_v17 }
 0xfd3   :  { %2001 = vperm.xlu0 %2378, %v1993_v18  }
 0xfd7   :  { %v1997_v37 = vpop.permute.xlu1 %1996 }
0x1032   :  { %v1952_v63 = vpop.xlane.xlu0 %1951 }
0x1033   :  { %v1956_v3 = vmul.f32 %v1952_v63, %v2728_v1 }
0x1035   :  { %v1958_v12 = vadd.f32 1e-06, %v1956_v3 }
0x1037   :  { %2451 = vrsqrt.f32 %v1958_v12  ;;  %vm1966_vm10 = vweird.f32 %v1958_v12 }
0x103a   :  { %v1955_v19 = vpop.xlane.xlu2 %1954 }
0x103b   :  { %v1957_v20 = vmul.f32 %v1955_v19, %v2728_v1 }
0x103d   :  { %v2452_v23 = vpop.eup %2451  ;;  %v1959_v21 = vadd.f32 1e-06, %v1957_v20 }
0x103e   :  { %v1961_v24 = vmul.f32 %v2452_v23, %v1958_v12  ;;  %vm1967_vm9 = vweird.f32 %v2452_v23 }
0x103f   :  { %2453 = vrsqrt.f32 %v1959_v21  ;;  %vm1968_vm1 = vmor %vm1966_vm10, %vm1967_vm9  ;;  %vm1976_vm5 = vweird.f32 %v1959_v21 }
0x1040   :  { %v1962_v25 = vmul.f32 %v2452_v23, %v1961_v24 }
0x1042   :  { %v1963_v15 = vmul.f32 0.5, %v1962_v25 }
0x1044   :  { %v1964_v0 = vsub.f32 1.5, %v1963_v15 }
0x1045   :  { %v2454_v30 = vpop.eup %2453  ;;  %v2002_v33 = vpop.permute.xlu0 %2001 }
0x1046   :  { %v1965_v26 = vmul.f32 %v2452_v23, %v1964_v0  ;;  %v1971_v27 = vmul.f32 %v2454_v30, %v1959_v21  ;;  %vm1977_vm2 = vweird.f32 %v2454_v30 }
0x1047   :  { %vm1978_vm6 = vmor %vm1976_vm5, %vm1977_vm2 }
0x1048   :  { %v1969_v29 = vsel %vm1968_vm1, %v2452_v23, %v1965_v26  ;;  %v1972_v31 = vmul.f32 %v2454_v30, %v1971_v27 }
0x1049   :  { %v1980_v1 = vmul.f32 %v1969_v29, %v1946_v10 }
0x104a   :  { %v1973_v32 = vmul.f32 0.5, %v1972_v31 }
0x104b   :  { %v1985_v34 = vmul.f32 %v2399_v28, %v1980_v1 }
0x104c   :  { %v1974_v35 = vsub.f32 1.5, %v1973_v32 }
0x104d   :  { %v1990_v36 = vadd.f32 %v2400_v22, %v1985_v34 }
0x104e   :  { %v1975_v38 = vmul.f32 %v2454_v30, %v1974_v35 }
0x104f   :  { %v2004_v39 = vmul.f32 %v1997_v37, %v1990_v36 }
0x1050   :  { %v1979_v40 = vsel %vm1978_vm6, %v2454_v30, %v1975_v38 }
0x1051   :  { %v1981_v41 = vmul.f32 %v1979_v40, %v1947_v54  ;;  %2006 = vst.msk [vmem:[#allocation5] sm:$0xff] %vm102_vm0, %v2004_v39 }
0x1053   :  { %v1986_v43 = vmul.f32 %v2399_v28, %v1981_v41 }
0x1055   :  { %v1991_v42 = vadd.f32 %v2400_v22, %v1986_v43 }
0x1057   :  { %v2005_v47 = vmul.f32 %v2002_v33, %v1991_v42 }
0x1059   :  { %2007 = vst.msk [vmem:[#allocation5 + $0x8] sm:$0xff] %vm102_vm0, %v2005_v47 }
0x105a   :  { %2020 = dma.vmem_to_hbm [thread:$0]  %s2013_s7, 256, %s2015_s17, [#allocation4], %s2518_s8, %s2518_s8, %s2519_s9  }
0x105b   :  { %2505 = dma.done.wait [#allocation4], 256  }
0x105c   :  { %2506 = vsyncadd [#allocation4], 4294967040 }
0x105d   :  { %2025 = vsyncpa [#allocation3], 1 }
0x105e   :  { %2026 = vsyncpa [#allocation4], 1 }

</bundles_post_ra>
